<compile_context>
chip_gen: v7x
topology: tpu7x:2x2x1
jax: 0.10.0
libtpu: 0.0.40
codegen_flags: <defaults>
</compile_context>

<pallas_src>
import functools
import math

import jax
import jax.numpy as jnp
from jax.experimental import pallas as pl
from jax.experimental.pallas import tpu as pltpu

LANE = 128


def _round_up(x, m):
    return ((x + m - 1) // m) * m


# ------------------------------ Pallas kernel -------------------------------

def fused_forward_kernel(x_ref, w_ref, b_ref, wl_ref, bl_ref, o_ref):
    """Per-image fused Conv3x3 (BN/bias folded) -> ReLU -> avg-pool -> Linear.

    x_ref : (H+2, W+2, C)    spatially padded bf16 image
    w_ref : (9, C, OC_pad)   bf16 conv taps (BN scale folded), offset-major
    b_ref : (1, OC_pad)      f32 folded conv-bias + BN shift
    wl_ref: (OC_pad, NC_pad) f32 classifier weight
    bl_ref: (1, NC_pad)      f32 classifier bias
    o_ref : (8, NC_pad)      f32 logits (row-broadcast into the sublane tile)
    """
    hp, wp, c = x_ref.shape
    h, w = hp - 2, wp - 2
    oc_pad = w_ref.shape[-1]

    # 3x3 conv as 9 shifted-window matmuls; patches are built in VMEM, never
    # materialized in HBM.  bf16 operands, f32 MXU accumulation.
    acc = jnp.zeros((h * w, oc_pad), jnp.float32)
    for di in range(3):
        for dj in range(3):
            patch = x_ref[di:di + h, dj:dj + w, :].reshape(h * w, c)
            acc = acc + jnp.dot(patch, w_ref[di * 3 + dj],
                                preferred_element_type=jnp.float32)

    act = jnp.maximum(acc + b_ref[...], 0.0)                    # folded BN/bias + ReLU
    pooled = jnp.sum(act, axis=0, keepdims=True) * (1.0 / (h * w))   # (1, OC_pad)
    logits = (jnp.dot(pooled, wl_ref[...], preferred_element_type=jnp.float32)
              + bl_ref[...])                                    # (1, NC_pad)
    o_ref[...] = jnp.broadcast_to(logits, o_ref.shape)


# -------------------------------- Wrapper ------------------------------------

def fused_forward(xp, w_conv, b_conv, w_lin, b_lin):
    """xp: [N, H+2, W+2, C] bf16 padded images -> [N, NC_pad] f32 logits."""
    n, hp, wp, c = xp.shape
    oc_pad = w_conv.shape[-1]
    nc_pad = w_lin.shape[-1]

    out = pl.pallas_call(
        fused_forward_kernel,
        out_shape=jax.ShapeDtypeStruct((n, 8, nc_pad), jnp.float32),
        grid=(n,),
        in_specs=[
            pl.BlockSpec((pl.Squeezed(), hp, wp, c), lambda i: (i, 0, 0, 0)),
            pl.BlockSpec((9, c, oc_pad), lambda i: (0, 0, 0)),
            pl.BlockSpec((1, oc_pad), lambda i: (0, 0)),
            pl.BlockSpec((oc_pad, nc_pad), lambda i: (0, 0)),
            pl.BlockSpec((1, nc_pad), lambda i: (0, 0)),
        ],
        out_specs=pl.BlockSpec((pl.Squeezed(), 8, nc_pad), lambda i: (i, 0, 0)),
        compiler_params=pltpu.CompilerParams(
            dimension_semantics=("parallel",),
            vmem_limit_bytes=32 * 1024 * 1024,   # guardrail; also v7x-safe (64 MiB physical)
        ),
    )(xp, w_conv, b_conv, w_lin, b_lin)
    return out[:, 0, :]


@functools.partial(jax.jit, static_argnames=("num_classes",))
def forward(x_nchw, params, *, num_classes):
    """Full forward pass. Input is PyTorch-convention NCHW."""
    x_nhwc = jnp.transpose(x_nchw, (0, 2, 3, 1))                 # NCHW -> NHWC
    xp = jnp.pad(x_nhwc, ((0, 0), (1, 1), (1, 1), (0, 0)))       # 'same' halo pad
    xp = xp.astype(jnp.bfloat16)                                 # halve HBM read
    logits = fused_forward(xp, params["w_conv"], params["b_conv"],
                           params["w_lin"], params["b_lin"])     # [N, NC_pad]
    return logits[:, :num_classes]


def init_params(key, in_ch, out_ch, num_classes, kh=3, kw=3):
    """Deterministic init matching BaseModel.initialize_weights(), with BN/bias
    folded into the conv taps.  Only OC / NUM_CLASSES lane dims are padded to
    128 (the contraction dim keeps its natural size — no zero HBM traffic)."""
    k_conv, k_lin = jax.random.split(key, 2)

    # Conv2d: kaiming_normal_(mode='fan_out', nonlinearity='relu'), bias=0.
    fan_out = out_ch * kh * kw
    std_conv = math.sqrt(2.0 / fan_out)
    w_conv = jax.random.normal(k_conv, (out_ch, in_ch, kh, kw), jnp.float32) * std_conv
    b_conv = jnp.zeros((out_ch,), jnp.float32)

    # BatchNorm2d (eval): weight=1, bias=0, running_mean=0, running_var=1, eps=1e-5.
    eps = 1e-5
    gamma = jnp.ones((out_ch,), jnp.float32)
    beta = jnp.zeros((out_ch,), jnp.float32)
    running_mean = jnp.zeros((out_ch,), jnp.float32)
    running_var = jnp.ones((out_ch,), jnp.float32)
    bn_scale = gamma / jnp.sqrt(running_var + eps)

    # [OC, C, KH, KW] -> [KH, KW, C, OC] -> [KH*KW, C, OC]; fold BN affine + bias.
    w_taps = jnp.transpose(w_conv, (2, 3, 1, 0)).reshape(kh * kw, in_ch, out_ch)
    w_eff = w_taps * bn_scale[None, None, :]
    b_eff = (b_conv - running_mean) * bn_scale + beta

    # Linear: normal_(0, 0.01), bias=0. PyTorch weight [NC, OC] -> kernel uses [OC, NC].
    w_lin_t = jax.random.normal(k_lin, (num_classes, out_ch), jnp.float32) * 0.01
    w_lin = jnp.transpose(w_lin_t, (1, 0))
    b_lin = jnp.zeros((num_classes,), jnp.float32)

    oc_pad = _round_up(out_ch, LANE)
    nc_pad = _round_up(num_classes, LANE)

    w_eff_p = jnp.zeros((kh * kw, in_ch, oc_pad), jnp.float32).at[:, :, :out_ch].set(w_eff)
    b_eff_p = jnp.zeros((1, oc_pad), jnp.float32).at[0, :out_ch].set(b_eff)
    w_lin_p = jnp.zeros((oc_pad, nc_pad), jnp.float32).at[:out_ch, :num_classes].set(w_lin)
    b_lin_p = jnp.zeros((1, nc_pad), jnp.float32).at[0, :num_classes].set(b_lin)

    return {
        "w_conv": w_eff_p.astype(jnp.bfloat16),   # bf16 operands, f32 MXU accumulation
        "b_conv": b_eff_p,                        # f32 epilogue
        "w_lin": w_lin_p,
        "b_lin": b_lin_p,
    }


if __name__ == "__main__":
    key = jax.random.PRNGKey(0)
    k_x, k_p = jax.random.split(key)

    N, C, H, W = 2, 4, 16, 16
    OC, NUM_CLASSES = 8, 10

    x = jax.random.normal(k_x, (N, C, H, W), jnp.float32)   # NCHW, PyTorch convention
    params = init_params(k_p, C, OC, NUM_CLASSES)

    logits = forward(x, params, num_classes=NUM_CLASSES)
    logits = jax.block_until_ready(logits)

    # Pure-JAX reference mirroring the kernel's math (same bf16 padded input,
    # same 9-offset f32 accumulation order).
    def reference(x_nchw):
        x_nhwc = jnp.transpose(x_nchw, (0, 2, 3, 1))
        xp = jnp.pad(x_nhwc, ((0, 0), (1, 1), (1, 1), (0, 0))).astype(jnp.bfloat16)
        wk = params["w_conv"]
        oc_pad = wk.shape[-1]
        acc = jnp.zeros((N, H * W, oc_pad), jnp.float32)
        for di in range(3):
            for dj in range(3):
                sl = xp[:, di:di + H, dj:dj + W, :].reshape(N * H * W, C)
                acc = acc + jnp.dot(
                    sl, wk[di * 3 + dj], preferred_element_type=jnp.float32
                ).reshape(N, H * W, oc_pad)
        act = jnp.maximum(acc + params["b_conv"][None], 0.0)
        pooled = jnp.mean(act, axis=1)
        lg = jnp.dot(pooled, params["w_lin"],
                     preferred_element_type=jnp.float32) + params["b_lin"]
        return lg[:, :NUM_CLASSES]

    ref = jax.block_until_ready(reference(x))

    assert logits.shape == (N, NUM_CLASSES)
    assert bool(jnp.all(jnp.isfinite(logits)))
    assert bool(jnp.allclose(logits, ref, atol=1e-4, rtol=1e-3))
    print("KERNEL_OK")
</pallas_src>

<mosaic_0001>
module attributes {stable_mosaic.version = 11 : i64} {
  func.func @fused_forward_kernel(%arg0: i32, %arg1: memref<1x18x18x4xbf16, #tpu.memory_space<vmem>>, %arg2: memref<9x4x128xbf16, #tpu.memory_space<vmem>>, %arg3: memref<1x128xf32, #tpu.memory_space<vmem>>, %arg4: memref<128x128xf32, #tpu.memory_space<vmem>>, %arg5: memref<1x128xf32, #tpu.memory_space<vmem>>, %arg6: memref<1x8x128xf32, #tpu.memory_space<vmem>>) attributes {dimension_semantics = [#tpu.dimension_semantics<parallel>], iteration_bounds = array<i64: 2>, scalar_prefetch = 0 : i64, scratch_operands = 0 : i64, tpu.core_type = #tpu.core_type<tc>, window_params = [{transform_indices = @transform_0, window_bounds = array<i64: 1, 18, 18, 4>}, {pipeline_mode = #tpu.pipeline_mode<synchronous>, transform_indices = @transform_1, window_bounds = array<i64: 9, 4, 128>}, {pipeline_mode = #tpu.pipeline_mode<synchronous>, transform_indices = @transform_2, window_bounds = array<i64: 1, 128>}, {pipeline_mode = #tpu.pipeline_mode<synchronous>, transform_indices = @transform_3, window_bounds = array<i64: 128, 128>}, {pipeline_mode = #tpu.pipeline_mode<synchronous>, transform_indices = @transform_4, window_bounds = array<i64: 1, 128>}, {transform_indices = @transform_5, window_bounds = array<i64: 1, 8, 128>}]} {
    %cst = arith.constant 0.000000e+00 : f32
    %0 = vector.broadcast %cst : f32 to vector<256x128xf32>
    %c0 = arith.constant 0 : index
    %c0_0 = arith.constant 0 : index
    %c0_1 = arith.constant 0 : index
    %c0_2 = arith.constant 0 : index
    %1 = vector.load %arg1[%c0, %c0_0, %c0_1, %c0_2] : memref<1x18x18x4xbf16, #tpu.memory_space<vmem>>, vector<1x16x16x4xbf16>
    %2 = vector.shape_cast %1 : vector<1x16x16x4xbf16> to vector<16x16x4xbf16>
    %3 = vector.shape_cast %2 : vector<16x16x4xbf16> to vector<256x4xbf16>
    %c0_3 = arith.constant 0 : index
    %c0_4 = arith.constant 0 : index
    %c0_5 = arith.constant 0 : index
    %4 = vector.load %arg2[%c0_3, %c0_4, %c0_5] : memref<9x4x128xbf16, #tpu.memory_space<vmem>>, vector<1x4x128xbf16>
    %5 = vector.shape_cast %4 : vector<1x4x128xbf16> to vector<4x128xbf16>
    %cst_6 = arith.constant dense<0.000000e+00> : vector<256x128xf32>
    %6 = tpu.matmul %3, %5, %cst_6 {dimension_numbers = #tpu.dot_dimension_numbers<[1], [0], [0], [1], [0, 0, 1, 1], [], []>} : vector<256x4xbf16>, vector<4x128xbf16>, vector<256x128xf32> -> vector<256x128xf32>
    %7 = arith.addf %0, %6 : vector<256x128xf32>
    %c0_7 = arith.constant 0 : index
    %c0_8 = arith.constant 0 : index
    %c1 = arith.constant 1 : index
    %c0_9 = arith.constant 0 : index
    %8 = vector.load %arg1[%c0_7, %c0_8, %c1, %c0_9] : memref<1x18x18x4xbf16, #tpu.memory_space<vmem>>, vector<1x16x16x4xbf16>
    %9 = vector.shape_cast %8 : vector<1x16x16x4xbf16> to vector<16x16x4xbf16>
    %10 = vector.shape_cast %9 : vector<16x16x4xbf16> to vector<256x4xbf16>
    %c1_10 = arith.constant 1 : index
    %c0_11 = arith.constant 0 : index
    %c0_12 = arith.constant 0 : index
    %11 = vector.load %arg2[%c1_10, %c0_11, %c0_12] : memref<9x4x128xbf16, #tpu.memory_space<vmem>>, vector<1x4x128xbf16>
    %12 = vector.shape_cast %11 : vector<1x4x128xbf16> to vector<4x128xbf16>
    %cst_13 = arith.constant dense<0.000000e+00> : vector<256x128xf32>
    %13 = tpu.matmul %10, %12, %cst_13 {dimension_numbers = #tpu.dot_dimension_numbers<[1], [0], [0], [1], [0, 0, 1, 1], [], []>} : vector<256x4xbf16>, vector<4x128xbf16>, vector<256x128xf32> -> vector<256x128xf32>
    %14 = arith.addf %7, %13 : vector<256x128xf32>
    %c0_14 = arith.constant 0 : index
    %c0_15 = arith.constant 0 : index
    %c2 = arith.constant 2 : index
    %c0_16 = arith.constant 0 : index
    %15 = vector.load %arg1[%c0_14, %c0_15, %c2, %c0_16] : memref<1x18x18x4xbf16, #tpu.memory_space<vmem>>, vector<1x16x16x4xbf16>
    %16 = vector.shape_cast %15 : vector<1x16x16x4xbf16> to vector<16x16x4xbf16>
    %17 = vector.shape_cast %16 : vector<16x16x4xbf16> to vector<256x4xbf16>
    %c2_17 = arith.constant 2 : index
    %c0_18 = arith.constant 0 : index
    %c0_19 = arith.constant 0 : index
    %18 = vector.load %arg2[%c2_17, %c0_18, %c0_19] : memref<9x4x128xbf16, #tpu.memory_space<vmem>>, vector<1x4x128xbf16>
    %19 = vector.shape_cast %18 : vector<1x4x128xbf16> to vector<4x128xbf16>
    %cst_20 = arith.constant dense<0.000000e+00> : vector<256x128xf32>
    %20 = tpu.matmul %17, %19, %cst_20 {dimension_numbers = #tpu.dot_dimension_numbers<[1], [0], [0], [1], [0, 0, 1, 1], [], []>} : vector<256x4xbf16>, vector<4x128xbf16>, vector<256x128xf32> -> vector<256x128xf32>
    %21 = arith.addf %14, %20 : vector<256x128xf32>
    %c0_21 = arith.constant 0 : index
    %c1_22 = arith.constant 1 : index
    %c0_23 = arith.constant 0 : index
    %c0_24 = arith.constant 0 : index
    %22 = vector.load %arg1[%c0_21, %c1_22, %c0_23, %c0_24] : memref<1x18x18x4xbf16, #tpu.memory_space<vmem>>, vector<1x16x16x4xbf16>
    %23 = vector.shape_cast %22 : vector<1x16x16x4xbf16> to vector<16x16x4xbf16>
    %24 = vector.shape_cast %23 : vector<16x16x4xbf16> to vector<256x4xbf16>
    %c3 = arith.constant 3 : index
    %c0_25 = arith.constant 0 : index
    %c0_26 = arith.constant 0 : index
    %25 = vector.load %arg2[%c3, %c0_25, %c0_26] : memref<9x4x128xbf16, #tpu.memory_space<vmem>>, vector<1x4x128xbf16>
    %26 = vector.shape_cast %25 : vector<1x4x128xbf16> to vector<4x128xbf16>
    %cst_27 = arith.constant dense<0.000000e+00> : vector<256x128xf32>
    %27 = tpu.matmul %24, %26, %cst_27 {dimension_numbers = #tpu.dot_dimension_numbers<[1], [0], [0], [1], [0, 0, 1, 1], [], []>} : vector<256x4xbf16>, vector<4x128xbf16>, vector<256x128xf32> -> vector<256x128xf32>
    %28 = arith.addf %21, %27 : vector<256x128xf32>
    %c0_28 = arith.constant 0 : index
    %c1_29 = arith.constant 1 : index
    %c1_30 = arith.constant 1 : index
    %c0_31 = arith.constant 0 : index
    %29 = vector.load %arg1[%c0_28, %c1_29, %c1_30, %c0_31] : memref<1x18x18x4xbf16, #tpu.memory_space<vmem>>, vector<1x16x16x4xbf16>
    %30 = vector.shape_cast %29 : vector<1x16x16x4xbf16> to vector<16x16x4xbf16>
    %31 = vector.shape_cast %30 : vector<16x16x4xbf16> to vector<256x4xbf16>
    %c4 = arith.constant 4 : index
    %c0_32 = arith.constant 0 : index
    %c0_33 = arith.constant 0 : index
    %32 = vector.load %arg2[%c4, %c0_32, %c0_33] : memref<9x4x128xbf16, #tpu.memory_space<vmem>>, vector<1x4x128xbf16>
    %33 = vector.shape_cast %32 : vector<1x4x128xbf16> to vector<4x128xbf16>
    %cst_34 = arith.constant dense<0.000000e+00> : vector<256x128xf32>
    %34 = tpu.matmul %31, %33, %cst_34 {dimension_numbers = #tpu.dot_dimension_numbers<[1], [0], [0], [1], [0, 0, 1, 1], [], []>} : vector<256x4xbf16>, vector<4x128xbf16>, vector<256x128xf32> -> vector<256x128xf32>
    %35 = arith.addf %28, %34 : vector<256x128xf32>
    %c0_35 = arith.constant 0 : index
    %c1_36 = arith.constant 1 : index
    %c2_37 = arith.constant 2 : index
    %c0_38 = arith.constant 0 : index
    %36 = vector.load %arg1[%c0_35, %c1_36, %c2_37, %c0_38] : memref<1x18x18x4xbf16, #tpu.memory_space<vmem>>, vector<1x16x16x4xbf16>
    %37 = vector.shape_cast %36 : vector<1x16x16x4xbf16> to vector<16x16x4xbf16>
    %38 = vector.shape_cast %37 : vector<16x16x4xbf16> to vector<256x4xbf16>
    %c5 = arith.constant 5 : index
    %c0_39 = arith.constant 0 : index
    %c0_40 = arith.constant 0 : index
    %39 = vector.load %arg2[%c5, %c0_39, %c0_40] : memref<9x4x128xbf16, #tpu.memory_space<vmem>>, vector<1x4x128xbf16>
    %40 = vector.shape_cast %39 : vector<1x4x128xbf16> to vector<4x128xbf16>
    %cst_41 = arith.constant dense<0.000000e+00> : vector<256x128xf32>
    %41 = tpu.matmul %38, %40, %cst_41 {dimension_numbers = #tpu.dot_dimension_numbers<[1], [0], [0], [1], [0, 0, 1, 1], [], []>} : vector<256x4xbf16>, vector<4x128xbf16>, vector<256x128xf32> -> vector<256x128xf32>
    %42 = arith.addf %35, %41 : vector<256x128xf32>
    %c0_42 = arith.constant 0 : index
    %c2_43 = arith.constant 2 : index
    %c0_44 = arith.constant 0 : index
    %c0_45 = arith.constant 0 : index
    %43 = vector.load %arg1[%c0_42, %c2_43, %c0_44, %c0_45] : memref<1x18x18x4xbf16, #tpu.memory_space<vmem>>, vector<1x16x16x4xbf16>
    %44 = vector.shape_cast %43 : vector<1x16x16x4xbf16> to vector<16x16x4xbf16>
    %45 = vector.shape_cast %44 : vector<16x16x4xbf16> to vector<256x4xbf16>
    %c6 = arith.constant 6 : index
    %c0_46 = arith.constant 0 : index
    %c0_47 = arith.constant 0 : index
    %46 = vector.load %arg2[%c6, %c0_46, %c0_47] : memref<9x4x128xbf16, #tpu.memory_space<vmem>>, vector<1x4x128xbf16>
    %47 = vector.shape_cast %46 : vector<1x4x128xbf16> to vector<4x128xbf16>
    %cst_48 = arith.constant dense<0.000000e+00> : vector<256x128xf32>
    %48 = tpu.matmul %45, %47, %cst_48 {dimension_numbers = #tpu.dot_dimension_numbers<[1], [0], [0], [1], [0, 0, 1, 1], [], []>} : vector<256x4xbf16>, vector<4x128xbf16>, vector<256x128xf32> -> vector<256x128xf32>
    %49 = arith.addf %42, %48 : vector<256x128xf32>
    %c0_49 = arith.constant 0 : index
    %c2_50 = arith.constant 2 : index
    %c1_51 = arith.constant 1 : index
    %c0_52 = arith.constant 0 : index
    %50 = vector.load %arg1[%c0_49, %c2_50, %c1_51, %c0_52] : memref<1x18x18x4xbf16, #tpu.memory_space<vmem>>, vector<1x16x16x4xbf16>
    %51 = vector.shape_cast %50 : vector<1x16x16x4xbf16> to vector<16x16x4xbf16>
    %52 = vector.shape_cast %51 : vector<16x16x4xbf16> to vector<256x4xbf16>
    %c7 = arith.constant 7 : index
    %c0_53 = arith.constant 0 : index
    %c0_54 = arith.constant 0 : index
    %53 = vector.load %arg2[%c7, %c0_53, %c0_54] : memref<9x4x128xbf16, #tpu.memory_space<vmem>>, vector<1x4x128xbf16>
    %54 = vector.shape_cast %53 : vector<1x4x128xbf16> to vector<4x128xbf16>
    %cst_55 = arith.constant dense<0.000000e+00> : vector<256x128xf32>
    %55 = tpu.matmul %52, %54, %cst_55 {dimension_numbers = #tpu.dot_dimension_numbers<[1], [0], [0], [1], [0, 0, 1, 1], [], []>} : vector<256x4xbf16>, vector<4x128xbf16>, vector<256x128xf32> -> vector<256x128xf32>
    %56 = arith.addf %49, %55 : vector<256x128xf32>
    %c0_56 = arith.constant 0 : index
    %c2_57 = arith.constant 2 : index
    %c2_58 = arith.constant 2 : index
    %c0_59 = arith.constant 0 : index
    %57 = vector.load %arg1[%c0_56, %c2_57, %c2_58, %c0_59] : memref<1x18x18x4xbf16, #tpu.memory_space<vmem>>, vector<1x16x16x4xbf16>
    %58 = vector.shape_cast %57 : vector<1x16x16x4xbf16> to vector<16x16x4xbf16>
    %59 = vector.shape_cast %58 : vector<16x16x4xbf16> to vector<256x4xbf16>
    %c8 = arith.constant 8 : index
    %c0_60 = arith.constant 0 : index
    %c0_61 = arith.constant 0 : index
    %60 = vector.load %arg2[%c8, %c0_60, %c0_61] : memref<9x4x128xbf16, #tpu.memory_space<vmem>>, vector<1x4x128xbf16>
    %61 = vector.shape_cast %60 : vector<1x4x128xbf16> to vector<4x128xbf16>
    %cst_62 = arith.constant dense<0.000000e+00> : vector<256x128xf32>
    %62 = tpu.matmul %59, %61, %cst_62 {dimension_numbers = #tpu.dot_dimension_numbers<[1], [0], [0], [1], [0, 0, 1, 1], [], []>} : vector<256x4xbf16>, vector<4x128xbf16>, vector<256x128xf32> -> vector<256x128xf32>
    %63 = arith.addf %56, %62 : vector<256x128xf32>
    %c0_63 = arith.constant 0 : index
    %c0_64 = arith.constant 0 : index
    %64 = vector.load %arg3[%c0_63, %c0_64] : memref<1x128xf32, #tpu.memory_space<vmem>>, vector<1x128xf32>
    %65 = vector.broadcast %64 : vector<1x128xf32> to vector<256x128xf32>
    %66 = arith.addf %63, %65 : vector<256x128xf32>
    %cst_65 = arith.constant 0.000000e+00 : f32
    %67 = vector.broadcast %cst_65 : f32 to vector<256x128xf32>
    %68 = arith.maximumf %66, %67 : vector<256x128xf32>
    %cst_66 = arith.constant dense<0.000000e+00> : vector<128xf32>
    %69 = vector.multi_reduction <add>, %68, %cst_66 [0] : vector<256x128xf32> to vector<128xf32>
    %70 = vector.shape_cast %69 : vector<128xf32> to vector<1x128xf32>
    %cst_67 = arith.constant 3.906250e-03 : f32
    %71 = vector.broadcast %cst_67 : f32 to vector<1x128xf32>
    %72 = arith.mulf %70, %71 : vector<1x128xf32>
    %c0_68 = arith.constant 0 : index
    %c0_69 = arith.constant 0 : index
    %73 = vector.load %arg4[%c0_68, %c0_69] : memref<128x128xf32, #tpu.memory_space<vmem>>, vector<128x128xf32>
    %cst_70 = arith.constant dense<0.000000e+00> : vector<1x128xf32>
    %74 = tpu.matmul %72, %73, %cst_70 {dimension_numbers = #tpu.dot_dimension_numbers<[1], [0], [0], [1], [0, 0, 1, 1], [], []>} : vector<1x128xf32>, vector<128x128xf32>, vector<1x128xf32> -> vector<1x128xf32>
    %c0_71 = arith.constant 0 : index
    %c0_72 = arith.constant 0 : index
    %75 = vector.load %arg5[%c0_71, %c0_72] : memref<1x128xf32, #tpu.memory_space<vmem>>, vector<1x128xf32>
    %76 = arith.addf %74, %75 : vector<1x128xf32>
    %77 = vector.shape_cast %76 : vector<1x128xf32> to vector<1x128xf32>
    %78 = vector.broadcast %77 : vector<1x128xf32> to vector<8x128xf32>
    %c0_73 = arith.constant 0 : index
    %c0_74 = arith.constant 0 : index
    %c0_75 = arith.constant 0 : index
    %79 = vector.load %arg6[%c0_73, %c0_74, %c0_75] : memref<1x8x128xf32, #tpu.memory_space<vmem>>, vector<1x8x128xf32>
    %80 = vector.shape_cast %79 : vector<1x8x128xf32> to vector<8x128xf32>
    %81 = vector.shape_cast %78 : vector<8x128xf32> to vector<1x8x128xf32>
    tpu.vector_store %arg6[%c0_73, %c0_74, %c0_75], %81 {strides = array<i32>} : memref<1x8x128xf32, #tpu.memory_space<vmem>>, vector<1x8x128xf32>,
    return
  }
  func.func @transform_0(%arg0: i32) -> (i32, i32, i32, i32) {
    %c0_i32 = arith.constant 0 : i32
    %c0_i32_0 = arith.constant 0 : i32
    %c0_i32_1 = arith.constant 0 : i32
    %c0_i32_2 = arith.constant 0 : i32
    return %arg0, %c0_i32, %c0_i32_0, %c0_i32_1 : i32, i32, i32, i32
  }
  func.func @transform_1(%arg0: i32) -> (i32, i32, i32) {
    %c0_i32 = arith.constant 0 : i32
    %c0_i32_0 = arith.constant 0 : i32
    %c0_i32_1 = arith.constant 0 : i32
    %c0_i32_2 = arith.constant 0 : i32
    return %c0_i32, %c0_i32_0, %c0_i32_1 : i32, i32, i32
  }
  func.func @transform_2(%arg0: i32) -> (i32, i32) {
    %c0_i32 = arith.constant 0 : i32
    %c0_i32_0 = arith.constant 0 : i32
    %c0_i32_1 = arith.constant 0 : i32
    return %c0_i32, %c0_i32_0 : i32, i32
  }
  func.func @transform_3(%arg0: i32) -> (i32, i32) {
    %c0_i32 = arith.constant 0 : i32
    %c0_i32_0 = arith.constant 0 : i32
    %c0_i32_1 = arith.constant 0 : i32
    return %c0_i32, %c0_i32_0 : i32, i32
  }
  func.func @transform_4(%arg0: i32) -> (i32, i32) {
    %c0_i32 = arith.constant 0 : i32
    %c0_i32_0 = arith.constant 0 : i32
    %c0_i32_1 = arith.constant 0 : i32
    return %c0_i32, %c0_i32_0 : i32, i32
  }
  func.func @transform_5(%arg0: i32) -> (i32, i32, i32) {
    %c0_i32 = arith.constant 0 : i32
    %c0_i32_0 = arith.constant 0 : i32
    %c0_i32_1 = arith.constant 0 : i32
    return %arg0, %c0_i32, %c0_i32_0 : i32, i32, i32
  }
}

</mosaic_0001>

<bundles_post_ra>
// kernel: forward.1
= control target key start
LH: loop header
LB: loop body
LE: loop exit
PB: predicated region body
PF: predicated region fallthrough
CT: control target
= control target key end

     0   :  { %s6547_s18 = smov 0   ;;  %s8437_s0 = inlined_call_operand.vmem [shape: bf16[2,18,18,4], index: 0, kind: input, shape index: {}]   ;;  %s8438_s1 = inlined_call_operand.vmem [shape: bf16[9,4,128], index: 1, kind: input, shape index: {}]   ;;  %s8439_s2 = inlined_call_operand.vmem [shape: f32[1,128], index: 2, kind: input, shape index: {}]   ;;  %s8440_s3 = inlined_call_operand.vmem [shape: f32[128,128], index: 3, kind: input, shape index: {}]   ;;  %s8441_s4 = inlined_call_operand.vmem [shape: f32[1,128], index: 4, kind: input, shape index: {}]   ;;  %s8442_s5 = inlined_call_operand.vmem [shape: f32[2,8,128], index: 5, kind: output, shape index: {}]  }
   0x1 LB: > { %s5037_s19 = sadd.s32 4294967295, %s6512_s18   ;;  %p5041_p0 = scmp.ge.s32.totalorder %s6512_s18, 1  ;;  %s6512_s18 = sphi %s6547_s18, %s15_s18  }
   0x2   : > { %p187_p1 = scmp.lt.s32.totalorder %s6512_s18, 3 }
   0x4   : > { %p188_p2 = pnand %p5041_p0, %p187_p1 }
   0x6   : > { %191 = sbr.rel (%p188_p2) target bundleno = 812 (0x32c), region = 40 }
   0xd   : > { %v5044_v0 = vld [vmem:[%s8438_s1 + $0x2] sm:$0x3]  ;;  %vm759_vm0 = vcmask 1041408   ;;  %p214_p3 = scmp.lt.s32.totalorder %s5037_s19, 1  ;;  %v5271_v2 = vld [vmem:[%s8438_s1 + $0x8] sm:$0x3] }
   0xe   : > { %6378 = vmatprep.subr.msk.bf16.mxu0 %vm759_vm0, %v5044_v0  ;;  %6379 = vmatprep.subr.msk.bf16.mxu1 %vm759_vm0, %v5044_v0  ;;  %v761_v1 = vsel %vm759_vm0, %v5044_v0, 0  ;;  %v6569_v3 = vld [vmem:[%s8438_s1] sm:$0x3]  ;;  %vm273_vm1 = vsmask.f32 3328  ;;  %vm710_vm3 = vcmask 31744  }
   0xf   : > { %5754 = vmatpush3.bf16.msra.mxu0 %v761_v1  ;;  %6119 = vmatpush3.bf16.msra.mxu1 %v761_v1  ;;  %s8519_s19 = smov (!%p214_p3, %s5037_s19), 1  ;;  %vm274_vm2 = vsmask.f32 7440  ;;  %v6607_v33 = vsel %vm759_vm0, %v5271_v2, 0  ;;  %v6621_v47 = vld [vmem:[%s8438_s1 + $0xa] sm:$0x3] }
  0x10   : > { %6383 = vmatprep.subr.msk.bf16.mxu0 %vm759_vm0, %v5271_v2  ;;  %6380 = vmatprep.subr.msk.bf16.mxu1 %vm759_vm0, %v6569_v3  ;;  %s6389_s26 = smul.u32 216, %s8519_s19  ;;  %vm6602_vm4 = vmor %vm273_vm1, %vm274_vm2  ;;  %v6633_v61 = vsel %vm759_vm0, %v6569_v3, 0  ;;  %v6637_v62 = vsel %vm759_vm0, %v6621_v47, 0  ;;  %vm1264_vm5 = vcmask 1042432   ;;  %vm1265_vm6 = vcmask 1046532   ;;  %v4892_v29 = vld [vmem:[%s8440_s3] sm:$0xff] }
  0x11   : > { %vm6889_vm7 = vmor %vm1264_vm5, %vm1265_vm6  ;;  %vm6515_vm8 = vmmov 0   ;;  %s5043_s9 = sshll.u32 %s8519_s19, 3 }
  0x12   : > { %s6578_s29 = scalar_lea.vmem %s8437_s0, %s6389_s26  ;;  %s222_s12 = scalar_lea.vmem %s8442_s5, %s5043_s9 }
  0x13   : > { %v6581_v4 = vld [vmem:[%s6578_s29] sm:$0xf]  ;;  %v6584_v5 = vld [vmem:[%s6578_s29 + $0x4] sm:$0xf]  ;;  %v257_v6 = vld [vmem:[%s6578_s29 + $0x8] sm:$0x1] }
  0x14   : > { %v277_v7 = vshrl.u32 %v6581_v4, 16  ;;  %v280_v8 = vshll.u32 %v6581_v4, 16  ;;  %v286_v9 = vshll.u32 %v6584_v5, 16  ;;  %v290_v10 = vshrl.u32 %v6584_v5, 16  ;;  %v236_v11 = vld [vmem:[%s6578_s29 + $0x48] sm:$0xf] }
  0x15   : > { %v296_v12 = vshll.u32 %v257_v6, 16  ;;  %v237_v13 = vld [vmem:[%s6578_s29 + $0x4c] sm:$0xf]  ;;  %v263_v14 = vld [vmem:[%s6578_s29 + $0x50] sm:$0x1]  ;;  %v421_v20 = vshrl.u32 %v236_v11, 16 }
  0x16   : > { %v279_v15 = vrot.slane %v277_v7, 4  ;;  %v282_v16 = vrot.slane %v280_v8, 5  ;;  %v288_v17 = vrot.slane %v286_v9, 5  ;;  %v292_v18 = vrot.slane %v290_v10, 4  ;;  %v6595_v27 = vld [vmem:[%s6578_s29 + $0xc] sm:$0xf] }
  0x17   : > { %v298_v19 = vrot.slane %v296_v12, 5  ;;  %v424_v21 = vshll.u32 %v236_v11, 16  ;;  %v430_v22 = vshll.u32 %v237_v13, 16  ;;  %v434_v25 = vshrl.u32 %v237_v13, 16  ;;  %v6598_v28 = vld [vmem:[%s6578_s29 + $0x10] sm:$0xf] }
  0x18   : > { %v283_v23 = vor.u32 %v282_v16, %v279_v15  ;;  %v293_v24 = vor.u32 %v292_v18, %v288_v17  ;;  %v440_v26 = vshll.u32 %v263_v14, 16  ;;  %v423_v30 = vrot.slane %v421_v20, 4  ;;  %v258_v39 = vld [vmem:[%s6578_s29 + $0x14] sm:$0x1]  ;;  %v6625_v57 = vld [vmem:[%s6578_s29 + $0x58] sm:$0xf] }
  0x19   : > { %v426_v31 = vrot.slane %v424_v21, 5  ;;  %v432_v32 = vrot.slane %v430_v22, 5  ;;  %v436_v36 = vrot.slane %v434_v25, 4  ;;  %v301_v40 = vshrl.u32 %v6595_v27, 16  ;;  %v238_v52 = vld [vmem:[%s6578_s29 + $0x54] sm:$0xf] }
  0x1a   : > { %v284_v34 = vrot.slane %v283_v23, 4  ;;  %v294_v35 = vrot.slane %v293_v24, 4  ;;  %v442_v37 = vrot.slane %v440_v26, 5  ;;  %v304_v41 = vshll.u32 %v6595_v27, 16  ;;  %v264_v60 = vld [vmem:[%s6578_s29 + $0x5c] sm:$0x1] }
  0x1b   : > { %v427_v38 = vor.u32 %v426_v31, %v423_v30  ;;  %v310_v42 = vshll.u32 %v6598_v28, 16  ;;  %v437_v45 = vor.u32 %v436_v36, %v432_v32  ;;  %v314_v46 = vshrl.u32 %v6598_v28, 16  ;;  %v6642_v6 = vld [vmem:[%s6578_s29 + $0x18] sm:$0xf]  ;;  %v6647_v14 = vld [vmem:[%s6578_s29 + $0x1c] sm:$0xf] }
  0x1c   : > { %v289_v43 = vsel %vm6602_vm4, %v284_v34, %v288_v17  ;;  %v299_v44 = vsel %vm6602_vm4, %v294_v35, %v298_v19  ;;  %v303_v50 = vrot.slane %v301_v40, 4  ;;  %v306_v51 = vrot.slane %v304_v41, 5  ;;  %v259_v18 = vld [vmem:[%s6578_s29 + $0x20] sm:$0x1] }
  0x1d   : > { %v5045_v48 = vcombine.low %v289_v43, %v299_v44  ;;  %v428_v49 = vrot.slane %v427_v38, 4  ;;  %v438_v53 = vrot.slane %v437_v45, 4  ;;  %v312_v54 = vrot.slane %v310_v42, 5  ;;  %v6658_v24 = vld [vmem:[%s6578_s29 + $0x60] sm:$0xf] }
  0x1e   : > { %v316_v55 = vrot.slane %v314_v46, 4  ;;  %v320_v56 = vshll.u32 %v258_v39, 16  ;;  %v307_v59 = vor.u32 %v306_v51, %v303_v50  ;;  %v445_v2 = vshrl.u32 %v238_v52, 16  ;;  %v265_v46 = vld [vmem:[%s6578_s29 + $0x68] sm:$0x1] }
  0x1f   : > { %5755 = vmatprep.mubr.msk.bf16.mxu0 %vm710_vm3, %v5045_v48  ;;  %v433_v58 = vsel %vm6602_vm4, %v428_v49, %v432_v32  ;;  %v443_v63 = vsel %vm6602_vm4, %v438_v53, %v442_v37  ;;  %v448_v9 = vshll.u32 %v238_v52, 16  ;;  %v454_v10 = vshll.u32 %v6625_v57, 16  ;;  %v6663_v37 = vld [vmem:[%s6578_s29 + $0x64] sm:$0xf] }
  0x20   : > { %v317_v0 = vor.u32 %v316_v55, %v312_v54  ;;  %v322_v1 = vrot.slane %v320_v56, 5  ;;  %v5051_v7 = vcombine.low %v433_v58, %v443_v63  ;;  %v308_v8 = vrot.slane %v307_v59, 4  ;;  %v6674_v52 = vld [vmem:[%s6578_s29 + $0x24] sm:$0xf]  ;;  %v6682_v58 = vld [vmem:[%s6578_s29 + $0x28] sm:$0xf] }
  0x21   : > { %v447_v11 = vrot.slane %v445_v2, 4  ;;  %v458_v12 = vshrl.u32 %v6625_v57, 16  ;;  %v464_v13 = vshll.u32 %v264_v60, 16  ;;  %v450_v16 = vrot.slane %v448_v9, 5 }
  0x22   : > { %v318_v3 = vrot.slane %v317_v0, 4  ;;  %5767 = vmatprep.mubr.msk.bf16.mxu1 %vm710_vm3, %v5051_v7  ;;  %v313_v15 = vsel %vm6602_vm4, %v308_v8, %v312_v54  ;;  %v456_v17 = vrot.slane %v454_v10, 5  ;;  %v325_v19 = vshrl.u32 %v6642_v6, 16  ;;  %v260_v8 = vld [vmem:[%s6578_s29 + $0x2c] sm:$0x1] }
  0x23   : > { %v460_v21 = vrot.slane %v458_v12, 4  ;;  %v466_v22 = vrot.slane %v464_v13, 5  ;;  %v328_v23 = vshll.u32 %v6642_v6, 16  ;;  %v451_v26 = vor.u32 %v450_v16, %v447_v11  ;;  %v6697_v13 = vld [vmem:[%s6578_s29 + $0x6c] sm:$0xf] }
  0x24   : > { %v323_v20 = vsel %vm6602_vm4, %v318_v3, %v322_v1  ;;  %v327_v30 = vrot.slane %v325_v19, 4  ;;  %v334_v31 = vshll.u32 %v6647_v14, 16  ;;  %v338_v35 = vshrl.u32 %v6647_v14, 16  ;;  %v6687_v1 = vld [vmem:[%s8438_s1 + $0x4] sm:$0x3] }
  0x25   : > { %v5046_v25 = vcombine.low %v313_v15, %v323_v20  ;;  %v461_v32 = vor.u32 %v460_v21, %v456_v17  ;;  %v330_v34 = vrot.slane %v328_v23, 5  ;;  %v344_v36 = vshll.u32 %v259_v18, 16  ;;  %v6704_v19 = vld [vmem:[%s6578_s29 + $0x70] sm:$0xf] }
  0x26   : > { %v452_v38 = vrot.slane %v451_v26, 4  ;;  %v336_v39 = vrot.slane %v334_v31, 5  ;;  %v469_v40 = vshrl.u32 %v6658_v24, 16  ;;  %v472_v41 = vshll.u32 %v6658_v24, 16 }
  0x27   : > { %5756 = vmatmul.mubr.msk.bf16.vlgmr.msra.gmra.mrb[0].mxu0 %vm710_vm3, %v5046_v25  ;;  %v462_v42 = vrot.slane %v461_v32, 4  ;;  %v331_v43 = vor.u32 %v330_v34, %v327_v30  ;;  %v340_v44 = vrot.slane %v338_v35, 4  ;;  %v346_v45 = vrot.slane %v344_v36, 5  ;;  %v266_v30 = vld [vmem:[%s6578_s29 + $0x74] sm:$0x1] }
  0x28   : > { %5890 = vmatpush3.bf16.msra.mxu0 %v6607_v33  ;;  %v457_v48 = vsel %vm6602_vm4, %v452_v38, %v456_v17  ;;  %v471_v49 = vrot.slane %v469_v40, 4  ;;  %v474_v50 = vrot.slane %v472_v41, 5  ;;  %v478_v51 = vshll.u32 %v6663_v37, 16  ;;  %v6717_v38 = vld [vmem:[%s6578_s29 + $0x30] sm:$0xf] }
  0x29   : > { %6385 = vmatprep.subr.msk.bf16.mxu0 %vm759_vm0, %v6621_v47  ;;  %v467_v53 = vsel %vm6602_vm4, %v462_v42, %v466_v22  ;;  %v332_v54 = vrot.slane %v331_v43, 4  ;;  %v341_v55 = vor.u32 %v340_v44, %v336_v39  ;;  %v482_v56 = vshrl.u32 %v6663_v37, 16  ;;  %v6722_v43 = vld [vmem:[%s6578_s29 + $0x34] sm:$0xf] }
  0x2a   : > { %v5052_v59 = vcombine.low %v457_v48, %v467_v53  ;;  %v475_v60 = vor.u32 %v474_v50, %v471_v49  ;;  %v480_v63 = vrot.slane %v478_v51, 5  ;;  %v488_v0 = vshll.u32 %v265_v46, 16 }
  0x2b   : > { %v337_v47 = vsel %vm6602_vm4, %v332_v54, %v336_v39  ;;  %v342_v2 = vrot.slane %v341_v55, 4  ;;  %v484_v7 = vrot.slane %v482_v56, 4  ;;  %v349_v9 = vshrl.u32 %v6674_v52, 16  ;;  %v261_v56 = vld [vmem:[%s6578_s29 + $0x38] sm:$0x1] }
  0x2c   : > { %5768 = vmatmul.mubr.msk.bf16.vlgmr.msra.gmra.mrb[0].mxu1 %vm710_vm3, %v5052_v59  ;;  %v476_v10 = vrot.slane %v475_v60, 4  ;;  %v490_v3 = vrot.slane %v488_v0, 5  ;;  %v352_v11 = vshll.u32 %v6674_v52, 16  ;;  %v358_v12 = vshll.u32 %v6682_v58, 16 }
  0x2d   : > { %5788 = vmatpush3.bf16.msra.mxu1 %v6633_v61  ;;  %v347_v15 = vsel %vm6602_vm4, %v342_v2, %v346_v45  ;;  %v485_v16 = vor.u32 %v484_v7, %v480_v63  ;;  %v351_v17 = vrot.slane %v349_v9, 4  ;;  %v362_v18 = vshrl.u32 %v6682_v58, 16 }
  0x2e   : > { %v5047_v20 = vcombine.low %v337_v47, %v347_v15  ;;  %v481_v21 = vsel %vm6602_vm4, %v476_v10, %v480_v63  ;;  %v354_v22 = vrot.slane %v352_v11, 5  ;;  %v360_v23 = vrot.slane %v358_v12, 5  ;;  %6381 = vmatprep.subr.msk.bf16.mxu1 %vm759_vm0, %v6687_v1  ;;  %v6732_v63 = vld [vmem:[%s6578_s29 + $0x78] sm:$0xf] }
  0x2f   : > { %v486_v61 = vrot.slane %v485_v16, 4  ;;  %v364_v25 = vrot.slane %v362_v18, 4  ;;  %v368_v26 = vshll.u32 %v260_v8, 16  ;;  %v493_v31 = vshrl.u32 %v6697_v13, 16  ;;  %v6737_v8 = vld [vmem:[%s6578_s29 + $0x7c] sm:$0xf] }
  0x30   : > { %5759 = vmatprep.mubr.msk.bf16.mxu0 %vm710_vm3, %v5047_v20  ;;  %v355_v32 = vor.u32 %v354_v22, %v351_v17  ;;  %v496_v34 = vshll.u32 %v6697_v13, 16  ;;  %v502_v35 = vshll.u32 %v6704_v19, 16  ;;  %v506_v36 = vshrl.u32 %v6704_v19, 16 }
  0x31   : > { %v491_v39 = vsel %vm6602_vm4, %v486_v61, %v490_v3  ;;  %v365_v40 = vor.u32 %v364_v25, %v360_v23  ;;  %v370_v41 = vrot.slane %v368_v26, 5  ;;  %v495_v42 = vrot.slane %v493_v31, 4  ;;  %v6748_v61 = vld [vmem:[%s6578_s29 + $0x3c] sm:$0xf] }
  0x32   : > { %v5053_v44 = vcombine.low %v481_v21, %v491_v39  ;;  %v356_v45 = vrot.slane %v355_v32, 4  ;;  %v498_v46 = vrot.slane %v496_v34, 5  ;;  %v504_v48 = vrot.slane %v502_v35, 5  ;;  %v267_v21 = vld [vmem:[%s6578_s29 + $0x80] sm:$0x1] }
  0x33   : > { %v366_v49 = vrot.slane %v365_v40, 4  ;;  %v508_v50 = vrot.slane %v506_v36, 4  ;;  %v512_v51 = vshll.u32 %v266_v30, 16  ;;  %v373_v53 = vshrl.u32 %v6717_v38, 16  ;;  %v6753_v32 = vld [vmem:[%s6578_s29 + $0x40] sm:$0xf] }
  0x34   : > { %5771 = vmatprep.mubr.msk.bf16.mxu1 %vm710_vm3, %v5053_v44  ;;  %v361_v54 = vsel %vm6602_vm4, %v356_v45, %v360_v23  ;;  %v499_v55 = vor.u32 %v498_v46, %v495_v42  ;;  %v376_v59 = vshll.u32 %v6717_v38, 16  ;;  %v382_v60 = vshll.u32 %v6722_v43, 16 }
  0x35   : > { %v371_v0 = vsel %vm6602_vm4, %v366_v49, %v370_v41  ;;  %v509_v47 = vor.u32 %v508_v50, %v504_v48  ;;  %v514_v2 = vrot.slane %v512_v51, 5  ;;  %v375_v7 = vrot.slane %v373_v53, 4  ;;  %v6764_v51 = vld [vmem:[%s6578_s29 + $0x84] sm:$0xf] }
  0x36   : > { %v5048_v9 = vcombine.low %v361_v54, %v371_v0  ;;  %v500_v10 = vrot.slane %v499_v55, 4  ;;  %v378_v3 = vrot.slane %v376_v59, 5  ;;  %v384_v11 = vrot.slane %v382_v60, 5 }
  0x37   : > { %v510_v12 = vrot.slane %v509_v47, 4  ;;  %v386_v15 = vshrl.u32 %v6722_v43, 16  ;;  %v392_v16 = vshll.u32 %v261_v56, 16  ;;  %v517_v17 = vshrl.u32 %v6732_v63, 16 }
  0x38   : > { %5760 = vmatmul.mubr.msk.bf16.gmra.mrb[4].mxu0 %vm710_vm3, %v5048_v9  ;;  %v505_v18 = vsel %vm6602_vm4, %v500_v10, %v504_v48  ;;  %v379_v20 = vor.u32 %v378_v3, %v375_v7  ;;  %v520_v22 = vshll.u32 %v6732_v63, 16  ;;  %v526_v23 = vshll.u32 %v6737_v8, 16  ;;  %v262_v48 = vld [vmem:[%s6578_s29 + $0x44] sm:$0x1]  ;;  %v6770_v10 = vld [vmem:[%s6578_s29 + $0x88] sm:$0xf] }
  0x39   : > { %v515_v25 = vsel %vm6602_vm4, %v510_v12, %v514_v2  ;;  %v388_v26 = vrot.slane %v386_v15, 4  ;;  %v394_v30 = vrot.slane %v392_v16, 5  ;;  %v519_v31 = vrot.slane %v517_v17, 4  ;;  %v268_v17 = vld [vmem:[%s6578_s29 + $0x8c] sm:$0x1] }
  0x3a   : > { %v5054_v34 = vcombine.low %v505_v18, %v515_v25  ;;  %v380_v35 = vrot.slane %v379_v20, 4  ;;  %v522_v36 = vrot.slane %v520_v22, 5  ;;  %v528_v39 = vrot.slane %v526_v23, 5  ;;  %v6777_v18 = vld [vmem:[%s6578_s29 + $0x90] sm:$0xf] }
  0x3b   : > { %v389_v40 = vor.u32 %v388_v26, %v384_v11  ;;  %v530_v41 = vshrl.u32 %v6737_v8, 16  ;;  %v536_v42 = vshll.u32 %v267_v21, 16  ;;  %v397_v44 = vshrl.u32 %v6748_v61, 16 }
  0x3c   : > { %5772 = vmatmul.mubr.msk.bf16.gmra.mrb[4].mxu1 %vm710_vm3, %v5054_v34  ;;  %v385_v45 = vsel %vm6602_vm4, %v380_v35, %v384_v11  ;;  %v523_v46 = vor.u32 %v522_v36, %v519_v31  ;;  %v400_v49 = vshll.u32 %v6748_v61, 16  ;;  %v406_v50 = vshll.u32 %v6753_v32, 16 }
  0x3d   : > { %v390_v53 = vrot.slane %v389_v40, 4  ;;  %v532_v54 = vrot.slane %v530_v41, 4  ;;  %v538_v55 = vrot.slane %v536_v42, 5  ;;  %v399_v56 = vrot.slane %v397_v44, 4 }
  0x3e   : > { %v524_v59 = vrot.slane %v523_v46, 4  ;;  %v402_v60 = vrot.slane %v400_v49, 5  ;;  %v408_v0 = vrot.slane %v406_v50, 5  ;;  %v410_v47 = vshrl.u32 %v6753_v32, 16  ;;  %v269_v46 = vld [vmem:[%s6578_s29 + $0x98] sm:$0x1] }
  0x3f   : > { %v395_v2 = vsel %vm6602_vm4, %v390_v53, %v394_v30  ;;  %v533_v7 = vor.u32 %v532_v54, %v528_v39  ;;  %v416_v9 = vshll.u32 %v262_v48, 16  ;;  %v541_v3 = vshrl.u32 %v6764_v51, 16  ;;  %v5223_v54 = vld [vmem:[%s6578_s29 + $0xc] sm:$0xf] }
  0x40   : > { %v5049_v11 = vcombine.low %v385_v45, %v395_v2  ;;  %v529_v12 = vsel %vm6602_vm4, %v524_v59, %v528_v39  ;;  %v403_v15 = vor.u32 %v402_v60, %v399_v56  ;;  %v412_v16 = vrot.slane %v410_v47, 4  ;;  %v6786_v39 = vld [vmem:[%s6578_s29 + $0x94] sm:$0xf] }
  0x41   : > { %v534_v20 = vrot.slane %v533_v7, 4  ;;  %v418_v21 = vrot.slane %v416_v9, 5  ;;  %v543_v22 = vrot.slane %v541_v3, 4  ;;  %v544_v23 = vshll.u32 %v6764_v51, 16  ;;  %v6800_v9 = vld [vmem:[%s6578_s29 + $0x10] sm:$0xf] }
  0x42   : > { %5763 = vmatprep.mubr.msk.bf16.mxu0 %vm710_vm3, %v5049_v11  ;;  %v404_v25 = vrot.slane %v403_v15, 4  ;;  %v413_v26 = vor.u32 %v412_v16, %v408_v0  ;;  %v550_v30 = vshll.u32 %v6770_v10, 16  ;;  %v554_v31 = vshrl.u32 %v6770_v10, 16  ;;  %v6803_v15 = vld [vmem:[%s6578_s29 + $0x14] sm:$0x1] }
  0x43   : > { %v539_v34 = vsel %vm6602_vm4, %v534_v20, %v538_v55  ;;  %v546_v35 = vrot.slane %v544_v23, 5  ;;  %v560_v36 = vshll.u32 %v268_v17, 16  ;;  %v565_v40 = vshrl.u32 %v6777_v18, 16 }
  0x44   : > { %v5055_v41 = vcombine.low %v529_v12, %v539_v34  ;;  %v409_v42 = vsel %vm6602_vm4, %v404_v25, %v408_v0  ;;  %v414_v44 = vrot.slane %v413_v26, 4  ;;  %v552_v45 = vrot.slane %v550_v30, 5 }
  0x45   : > { %v547_v48 = vor.u32 %v546_v35, %v543_v22  ;;  %v556_v49 = vrot.slane %v554_v31, 4  ;;  %v562_v50 = vrot.slane %v560_v36, 5  ;;  %v567_v53 = vrot.slane %v565_v40, 4  ;;  %v6810_v31 = vld [vmem:[%s6578_s29 + $0x9c] sm:$0xf] }
  0x46   : > { %5775 = vmatprep.mubr.msk.bf16.mxu1 %vm710_vm3, %v5055_v41  ;;  %v419_v55 = vsel %vm6602_vm4, %v414_v44, %v418_v21  ;;  %v568_v56 = vshll.u32 %v6777_v18, 16  ;;  %v574_v59 = vshll.u32 %v6786_v39, 16  ;;  %v578_v60 = vshrl.u32 %v6786_v39, 16  ;;  %v6817_v41 = vld [vmem:[%s6578_s29 + $0xa0] sm:$0xf] }
  0x47   : > { %v5050_v0 = vcombine.low %v409_v42, %v419_v55  ;;  %v548_v47 = vrot.slane %v547_v48, 4  ;;  %v557_v2 = vor.u32 %v556_v49, %v552_v45  ;;  %v584_v7 = vshll.u32 %v269_v46, 16 }
  0x48   : > { %v570_v3 = vrot.slane %v568_v56, 5  ;;  %v576_v11 = vrot.slane %v574_v59, 5  ;;  %v580_v12 = vrot.slane %v578_v60, 4  ;;  %v2081_v16 = vshrl.u32 %v5223_v54, 16 }
  0x49   : > { %5764 = vmatmul.mubr.msk.bf16.gmra.mrb[8].mxu0 %vm710_vm3, %v5050_v0  ;;  %v553_v17 = vsel %vm6602_vm4, %v548_v47, %v552_v45  ;;  %v558_v20 = vrot.slane %v557_v2, 4  ;;  %v586_v21 = vrot.slane %v584_v7, 5  ;;  %v2084_v22 = vshll.u32 %v5223_v54, 16  ;;  %v270_v54 = vld [vmem:[%s6578_s29 + $0xa4] sm:$0x1] }
  0x4a   : > { %v571_v23 = vor.u32 %v570_v3, %v567_v53  ;;  %v581_v25 = vor.u32 %v580_v12, %v576_v11  ;;  %v2083_v26 = vrot.slane %v2081_v16, 4  ;;  %v2090_v30 = vshll.u32 %v6800_v9, 16  ;;  %v5226_v0 = vld [vmem:[%s6578_s29 + $0x18] sm:$0xf]  ;;  %v6830_v12 = vld [vmem:[%s6578_s29 + $0x1c] sm:$0xf] }
  0x4b   : > { %v563_v34 = vsel %vm6602_vm4, %v558_v20, %v562_v50  ;;  %v2086_v35 = vrot.slane %v2084_v22, 5  ;;  %v2094_v36 = vshrl.u32 %v6800_v9, 16  ;;  %v2100_v40 = vshll.u32 %v6803_v15, 16 }
  0x4c   : > { %v5056_v42 = vcombine.low %v553_v17, %v563_v34  ;;  %v572_v44 = vrot.slane %v571_v23, 4  ;;  %v582_v45 = vrot.slane %v581_v25, 4  ;;  %v2092_v46 = vrot.slane %v2090_v30, 5  ;;  %v6837_v23 = vld [vmem:[%s6578_s29 + $0x20] sm:$0x1] }
  0x4d   : > { %v2087_v48 = vor.u32 %v2086_v35, %v2083_v26  ;;  %v2096_v49 = vrot.slane %v2094_v36, 4  ;;  %v2102_v53 = vrot.slane %v2100_v40, 5  ;;  %v589_v55 = vshrl.u32 %v6810_v31, 16  ;;  %v6841_v40 = vld [vmem:[%s6578_s29 + $0xa8] sm:$0xf] }
  0x4e   : > { %5776 = vmatmul.mubr.msk.bf16.gmra.mrb[8].mxu1 %vm710_vm3, %v5056_v42  ;;  %v577_v50 = vsel %vm6602_vm4, %v572_v44, %v576_v11  ;;  %v587_v56 = vsel %vm6602_vm4, %v582_v45, %v586_v21  ;;  %v592_v59 = vshll.u32 %v6810_v31, 16  ;;  %v598_v60 = vshll.u32 %v6817_v41, 16 }
  0x4f   : > { %v5057_v47 = vcombine.low %v577_v50, %v587_v56  ;;  %v2088_v2 = vrot.slane %v2087_v48, 4  ;;  %v2097_v7 = vor.u32 %v2096_v49, %v2092_v46  ;;  %v591_v3 = vrot.slane %v589_v55, 4  ;;  %v6847_v48 = vld [vmem:[%s6578_s29 + $0xac] sm:$0xf] }
  0x50   : > { %v594_v16 = vrot.slane %v592_v59, 5  ;;  %v600_v17 = vrot.slane %v598_v60, 5  ;;  %v602_v11 = vshrl.u32 %v6817_v41, 16  ;;  %v608_v20 = vshll.u32 %v270_v54, 16 }
  0x51   : > { %5779 = vmatprep.mubr.msk.bf16.mxu1 %vm710_vm3, %v5057_v47  ;;  %v2093_v21 = vsel %vm6602_vm4, %v2088_v2, %v2092_v46  ;;  %v2098_v22 = vrot.slane %v2097_v7, 4  ;;  %v2105_v25 = vshrl.u32 %v5226_v0, 16  ;;  %v2108_v26 = vshll.u32 %v5226_v0, 16  ;;  %v6855_v2 = vld [vmem:[%s6578_s29 + $0xb0] sm:$0x1] }
  0x52   : > { %v595_v30 = vor.u32 %v594_v16, %v591_v3  ;;  %v604_v34 = vrot.slane %v602_v11, 4  ;;  %v610_v35 = vrot.slane %v608_v20, 5  ;;  %v2114_v36 = vshll.u32 %v6830_v12, 16 }
  0x53   : > { %v2103_v42 = vsel %vm6602_vm4, %v2098_v22, %v2102_v53  ;;  %v2107_v44 = vrot.slane %v2105_v25, 4  ;;  %v2110_v45 = vrot.slane %v2108_v26, 5  ;;  %v2118_v46 = vshrl.u32 %v6830_v12, 16  ;;  %v6860_v22 = vld [vmem:[%s6578_s29 + $0xb4] sm:$0xf] }
  0x54   : > { %v5272_v49 = vcombine.low %v2093_v21, %v2103_v42  ;;  %v596_v54 = vrot.slane %v595_v30, 4  ;;  %v605_v55 = vor.u32 %v604_v34, %v600_v17  ;;  %v2116_v50 = vrot.slane %v2114_v36, 5  ;;  %v6866_v34 = vld [vmem:[%s6578_s29 + $0xb8] sm:$0xf] }
  0x55   : > { %v2111_v56 = vor.u32 %v2110_v45, %v2107_v44  ;;  %v2120_v59 = vrot.slane %v2118_v46, 4  ;;  %v2124_v60 = vshll.u32 %v6837_v23, 16  ;;  %v613_v0 = vshrl.u32 %v6841_v40, 16  ;;  %v6872_v46 = vld [vmem:[%s6578_s29 + $0xbc] sm:$0x1] }
  0x56   : > { %5891 = vmatprep.mubr.msk.bf16.mxu0 %vm710_vm3, %v5272_v49  ;;  %v601_v53 = vsel %vm6602_vm4, %v596_v54, %v600_v17  ;;  %v606_v47 = vrot.slane %v605_v55, 4  ;;  %v616_v7 = vshll.u32 %v6841_v40, 16  ;;  %v622_v3 = vshll.u32 %v6847_v48, 16  ;;  %v5304_v49 = vld [vmem:[%s6578_s29 + $0xc] sm:$0xe] }
  0x57   : > { %v2112_v16 = vrot.slane %v2111_v56, 4  ;;  %v2121_v11 = vor.u32 %v2120_v59, %v2116_v50  ;;  %v2126_v20 = vrot.slane %v2124_v60, 5  ;;  %v615_v21 = vrot.slane %v613_v0, 4 }
  0x58   : > { %v611_v25 = vsel %vm6602_vm4, %v606_v47, %v610_v35  ;;  %v618_v26 = vrot.slane %v616_v7, 5  ;;  %v624_v17 = vrot.slane %v622_v3, 5  ;;  %v626_v30 = vshrl.u32 %v6847_v48, 16 }
  0x59   : > { %v5058_v36 = vcombine.low %v601_v53, %v611_v25  ;;  %v2117_v42 = vsel %vm6602_vm4, %v2112_v16, %v2116_v50  ;;  %v2122_v44 = vrot.slane %v2121_v11, 4  ;;  %v632_v45 = vshll.u32 %v6855_v2, 16  ;;  %v5401_v53 = vld [vmem:[%s8438_s1 + $0xc] sm:$0x3]  ;;  %v5305_v11 = vld [vmem:[%s6578_s29 + $0x18] sm:$0xe] }
  0x5a   : > { %v619_v54 = vor.u32 %v618_v26, %v615_v21  ;;  %v628_v55 = vrot.slane %v626_v30, 4  ;;  %v637_v35 = vshrl.u32 %v6860_v22, 16  ;;  %v640_v56 = vshll.u32 %v6860_v22, 16  ;;  %v4894_v30 = vld [vmem:[%s8440_s3 + $0x10] sm:$0xff] }
  0x5b   : > { %5780 = vmatmul.mubr.msk.bf16.gmra.mrb[12].mxu1 %vm710_vm3, %v5058_v36  ;;  %v2127_v59 = vsel %vm6602_vm4, %v2122_v44, %v2126_v20  ;;  %v634_v60 = vrot.slane %v632_v45, 5  ;;  %v646_v50 = vshll.u32 %v6866_v34, 16  ;;  %v650_v0 = vshrl.u32 %v6866_v34, 16 }
  0x5c   : > { %v5273_v47 = vcombine.low %v2117_v42, %v2127_v59  ;;  %v620_v7 = vrot.slane %v619_v54, 4  ;;  %v629_v3 = vor.u32 %v628_v55, %v624_v17  ;;  %v639_v16 = vrot.slane %v637_v35, 4  ;;  %v5230_v59 = vld [vmem:[%s6578_s29 + $0x28] sm:$0xf] }
  0x5d   : > { %v642_v21 = vrot.slane %v640_v56, 5  ;;  %v648_v25 = vrot.slane %v646_v50, 5  ;;  %v652_v20 = vrot.slane %v650_v0, 4  ;;  %v656_v26 = vshll.u32 %v6872_v46, 16  ;;  %v5231_v50 = vld [vmem:[%s6578_s29 + $0x2c] sm:$0x1] }
  0x5e   : > { %5892 = vmatmul.mubr.msk.bf16.vlgmr.msra.gmra.mrb[12].mxu0 %vm710_vm3, %v5273_v47  ;;  %v625_v36 = vsel %vm6602_vm4, %v620_v7, %v624_v17  ;;  %v630_v42 = vrot.slane %v629_v3, 4  ;;  %v5320_v44 = vrot.slane %v5304_v49, 9  ;;  %v2824_v45 = vrot.slane %v6800_v9, 5  ;;  %v5306_v0 = vld [vmem:[%s6578_s29 + $0x24] sm:$0xe] }
  0x5f   : > { %5924 = vmatpush3.bf16.msra.mxu0 %v6637_v62  ;;  %v643_v54 = vor.u32 %v642_v21, %v639_v16  ;;  %v653_v55 = vor.u32 %v652_v20, %v648_v25  ;;  %v658_v35 = vrot.slane %v656_v26, 5  ;;  %v2827_v56 = vrot.slane %v6803_v15, 5  ;;  %v6914_v26 = vld [vmem:[%s6578_s29 + $0x34] sm:$0xf] }
  0x60   : > { %v635_v47 = vsel %vm6602_vm4, %v630_v42, %v634_v60  ;;  %v2825_v17 = vsel %vm6889_vm7, %v5320_v44, %v2824_v45  ;;  %v2826_v49 = vrot.slane %v2824_v45, 4  ;;  %6386 = vmatprep.subr.msk.bf16.mxu0 %vm759_vm0, %v5401_v53  ;;  %v5321_v62 = vrot.slane %v5305_v11, 9  ;;  %v5307_v42 = vld [vmem:[%s6578_s29 + $0x30] sm:$0xe] }
  0x61   : > { %v5059_v9 = vcombine.low %v625_v36, %v635_v47  ;;  %v644_v7 = vrot.slane %v643_v54, 4  ;;  %v654_v3 = vrot.slane %v653_v55, 4  ;;  %v2831_v15 = vrot.slane %v6830_v12, 5  ;;  %v6926_v54 = vld [vmem:[%s6578_s29 + $0x38] sm:$0x1] }
  0x62   : > { %v2828_v16 = vsel %vm6889_vm7, %v2826_v49, %v2827_v56  ;;  %v2834_v21 = vrot.slane %v6837_v23, 5  ;;  %v5077_v60 = vcombine.low %v6581_v4, %v6584_v5  ;;  %v5322_v20 = vrot.slane %v5306_v0, 9  ;;  %v5308_v47 = vld [vmem:[%s6578_s29 + $0x3c] sm:$0xe] }
  0x63   : > { %5783 = vmatprep.mubr.msk.bf16.mxu1 %vm710_vm3, %v5059_v9  ;;  %v649_v11 = vsel %vm6602_vm4, %v644_v7, %v648_v25  ;;  %v659_v12 = vsel %vm6602_vm4, %v654_v3, %v658_v35  ;;  %v5337_v36 = vcombine.low %v2825_v17, %v2828_v16  ;;  %v2832_v23 = vsel %vm6889_vm7, %v5321_v62, %v2831_v15  ;;  %v5236_v25 = vld [vmem:[%s6578_s29 + $0x40] sm:$0xf]  ;;  %v5239_v62 = vld [vmem:[%s6578_s29 + $0x4c] sm:$0xf]  ;;  %v5309_v16 = vld [vmem:[%s6578_s29 + $0x48] sm:$0xe] }
  0x64   : > { %v5060_v44 = vcombine.low %v649_v11, %v659_v12  ;;  %v2833_v4 = vrot.slane %v2831_v15, 4  ;;  %v2838_v5 = vrot.slane %v5230_v59, 5  ;;  %v2841_v45 = vrot.slane %v5231_v50, 5  ;;  %v5237_v59 = vld [vmem:[%s6578_s29 + $0x44] sm:$0x1] }
  0x65   : > { %5925 = vmatprep.mubr.msk.bf16.mxu0 %vm710_vm3, %v5337_v36  ;;  %v2845_v0 = vrot.slane %v6914_v26, 5  ;;  %v3392_v17 = vsel %vm759_vm0, %v5401_v53, 0  ;;  %v5323_v49 = vrot.slane %v5307_v42, 9  ;;  %v2848_v3 = vrot.slane %v6926_v54, 5  ;;  %v5240_v12 = vld [vmem:[%s6578_s29 + $0x50] sm:$0x1] }
  0x66   : > { %5784 = vmatmul.mubr.msk.bf16.gmra.mrb[16].mxu1 %vm710_vm3, %v5060_v44  ;;  %v2835_v55 = vsel %vm6889_vm7, %v2833_v4, %v2834_v21  ;;  %v2839_v35 = vsel %vm6889_vm7, %v5322_v20, %v2838_v5  ;;  %v2840_v56 = vrot.slane %v2838_v5, 4  ;;  %v6947_v21 = vld [vmem:[%s8438_s1 + $0xe] sm:$0x3]  ;;  %v5078_v53 = vcombine.low %v6595_v27, %v6598_v28  ;;  %v5242_v28 = vld [vmem:[%s6578_s29 + $0x58] sm:$0xf] }
  0x67   : > { %v5338_v50 = vcombine.low %v2832_v23, %v2835_v55  ;;  %5789 = vmatprep.mubr.msk.bf16.mxu1 %vm710_vm3, %v5077_v60  ;;  %v2847_v7 = vrot.slane %v2845_v0, 4  ;;  %v5324_v60 = vrot.slane %v5308_v47, 9  ;;  %v2852_v20 = vrot.slane %v5236_v25, 5  ;;  %v5310_v25 = vld [vmem:[%s6578_s29 + $0x54] sm:$0xe] }
  0x68   : > { %v2842_v9 = vsel %vm6889_vm7, %v2840_v56, %v2841_v45  ;;  %v2855_v11 = vrot.slane %v5237_v59, 5  ;;  %v2846_v36 = vsel %vm6889_vm7, %v5323_v49, %v2845_v0  ;;  %v5079_v42 = vcombine.low %v6642_v6, %v6647_v14  ;;  %v5243_v45 = vld [vmem:[%s6578_s29 + $0x5c] sm:$0x1]  ;;  %v6972_v55 = vld [vmem:[%s8438_s1 + $0x6] sm:$0x3] }
  0x69   : > { %v5339_v15 = vcombine.low %v2839_v35, %v2842_v9  ;;  %v2849_v23 = vsel %vm6889_vm7, %v2847_v7, %v2848_v3  ;;  %v2859_v27 = vrot.slane %v5239_v62, 5  ;;  %v1478_v44 = vsel %vm759_vm0, %v6687_v1, 0  ;;  %v5245_v56 = vld [vmem:[%s6578_s29 + $0x64] sm:$0xf]  ;;  %v5248_v62 = vld [vmem:[%s6578_s29 + $0x70] sm:$0xf] }
  0x6a   : > { %5926 = vmatmul.mubr.msk.bf16.vlgmr.msra.gmra.mrb[12].mxu0 %vm710_vm3, %v5338_v50  ;;  %v2853_v4 = vsel %vm6889_vm7, %v5324_v60, %v2852_v20  ;;  %v2854_v5 = vrot.slane %v2852_v20, 4  ;;  %v5340_v6 = vcombine.low %v2846_v36, %v2849_v23  ;;  %v5325_v1 = vrot.slane %v5309_v16, 9  ;;  %v5246_v7 = vld [vmem:[%s6578_s29 + $0x68] sm:$0x1]  ;;  %v5249_v20 = vld [vmem:[%s6578_s29 + $0x74] sm:$0x1] }
  0x6b   : > { %5958 = vmatpush3.bf16.msra.mxu0 %v3392_v17  ;;  %5929 = vmatprep.mubr.msk.bf16.mxu0 %vm710_vm3, %v5339_v15  ;;  %v2866_v35 = vrot.slane %v5242_v28, 5  ;;  %v2861_v59 = vrot.slane %v2859_v27, 4  ;;  %v2862_v47 = vrot.slane %v5240_v12, 5  ;;  %v5326_v50 = vrot.slane %v5310_v25, 9  ;;  %v5312_v12 = vld [vmem:[%s6578_s29 + $0x6c] sm:$0xe] }
  0x6c   : > { %6387 = vmatprep.subr.msk.bf16.mxu0 %vm759_vm0, %v6947_v21  ;;  %v2856_v14 = vsel %vm6889_vm7, %v2854_v5, %v2855_v11  ;;  %v2869_v49 = vrot.slane %v5243_v45, 5  ;;  %v5080_v9 = vcombine.low %v6674_v52, %v6682_v58  ;;  %v2860_v3 = vsel %vm6889_vm7, %v5325_v1, %v2859_v27  ;;  %v5311_v58 = vld [vmem:[%s6578_s29 + $0x60] sm:$0xe]  ;;  %v5254_v5 = vld [vmem:[%s6578_s29 + $0x88] sm:$0xf] }
  0x6d   : > { %v5341_v0 = vcombine.low %v2853_v4, %v2856_v14  ;;  %v2868_v17 = vrot.slane %v2866_v35, 4  ;;  %v2863_v15 = vsel %vm6889_vm7, %v2861_v59, %v2862_v47  ;;  %v5081_v16 = vcombine.low %v6717_v38, %v6722_v43  ;;  %v5251_v4 = vld [vmem:[%s6578_s29 + $0x7c] sm:$0xf]  ;;  %v6449_v14 = vld [vmem:[%s6578_s29 + $0x48] sm:$0xf] }
  0x6e   : > { %5790 = vmatmul.mubr.msk.bf16.vlgmr.msra.gmra.mrb[20].mxu1 %vm710_vm3, %v5078_v53  ;;  %v2873_v53 = vrot.slane %v5245_v56, 5  ;;  %v2867_v60 = vsel %vm6889_vm7, %v5326_v50, %v2866_v35  ;;  %v2880_v11 = vrot.slane %v5248_v62, 5  ;;  %v5342_v36 = vcombine.low %v2860_v3, %v2863_v15  ;;  %v7014_v1 = vld [vmem:[%s6578_s29 + $0x4c] sm:$0xf]  ;;  %v5252_v56 = vld [vmem:[%s6578_s29 + $0x80] sm:$0x1] }
  0x6f   : > { %5822 = vmatpush3.bf16.msra.mxu1 %v1478_v44  ;;  %5793 = vmatprep.mubr.msk.bf16.mxu1 %vm710_vm3, %v5079_v42  ;;  %v2870_v52 = vsel %vm6889_vm7, %v2868_v17, %v2869_v49  ;;  %v5327_v43 = vrot.slane %v5311_v58, 9  ;;  %v2876_v42 = vrot.slane %v5246_v7, 5  ;;  %v5328_v27 = vrot.slane %v5312_v12, 9  ;;  %v5255_v47 = vld [vmem:[%s6578_s29 + $0x8c] sm:$0x1] }
  0x70   : > { %6382 = vmatprep.subr.msk.bf16.mxu1 %vm759_vm0, %v6972_v55  ;;  %v5343_v38 = vcombine.low %v2867_v60, %v2870_v52  ;;  %v2875_v23 = vrot.slane %v2873_v53, 4  ;;  %v2882_v28 = vrot.slane %v2880_v11, 4  ;;  %v2883_v44 = vrot.slane %v5249_v20, 5  ;;  %v5314_v17 = vld [vmem:[%s6578_s29 + $0x84] sm:$0xe] }
  0x71   : > { %v5082_v45 = vcombine.low %v6748_v61, %v6753_v32  ;;  %v2874_v25 = vsel %vm6889_vm7, %v5327_v43, %v2873_v53  ;;  %v5083_v35 = vcombine.low %v6449_v14, %v7014_v1  ;;  %v2887_v59 = vrot.slane %v5251_v4, 5  ;;  %v5257_v60 = vld [vmem:[%s6578_s29 + $0x94] sm:$0xf]  ;;  %v5260_v52 = vld [vmem:[%s6578_s29 + $0xa0] sm:$0xf] }
  0x72   : > { %5930 = vmatmul.mubr.msk.bf16.gmra.mrb[16].mxu0 %vm710_vm3, %v5340_v6  ;;  %v2877_v6 = vsel %vm6889_vm7, %v2875_v23, %v2876_v42  ;;  %v2881_v61 = vsel %vm6889_vm7, %v5328_v27, %v2880_v11  ;;  %v2884_v32 = vsel %vm6889_vm7, %v2882_v28, %v2883_v44  ;;  %v2894_v50 = vrot.slane %v5254_v5, 5  ;;  %v6451_v20 = vld [vmem:[%s6578_s29 + $0x54] sm:$0xf]  ;;  %v5258_v12 = vld [vmem:[%s6578_s29 + $0x98] sm:$0x1] }
  0x73   : > { %5933 = vmatprep.mubr.msk.bf16.mxu0 %vm710_vm3, %v5341_v0  ;;  %v5313_v0 = vld [vmem:[%s6578_s29 + $0x78] sm:$0xe]  ;;  %v5344_v49 = vcombine.low %v2874_v25, %v2877_v6  ;;  %v5345_v62 = vcombine.low %v2881_v61, %v2884_v32  ;;  %v2889_v7 = vrot.slane %v2887_v59, 4  ;;  %v2890_v3 = vrot.slane %v5252_v56, 5  ;;  %v5315_v27 = vld [vmem:[%s6578_s29 + $0x90] sm:$0xe] }
  0x74   : > { %v5330_v15 = vrot.slane %v5314_v17, 9  ;;  %v2897_v53 = vrot.slane %v5255_v47, 5  ;;  %v5092_v58 = vcombine.low %v6860_v22, %v6866_v34  ;;  %v5084_v11 = vcombine.low %v6451_v20, %v6625_v57  ;;  %v5261_v44 = vld [vmem:[%s6578_s29 + $0xa4] sm:$0x1]  ;;  %v5316_v4 = vld [vmem:[%s6578_s29 + $0x9c] sm:$0xe] }
  0x75   : > { %v5085_v43 = vcombine.low %v6658_v24, %v6663_v37  ;;  %v2901_v23 = vrot.slane %v5257_v60, 5  ;;  %v2908_v28 = vrot.slane %v5260_v52, 5  ;;  %v5331_v25 = vrot.slane %v5315_v27, 9  ;;  %v5263_v6 = vld [vmem:[%s6578_s29 + $0xac] sm:$0xf] }
  0x76   : > { %5794 = vmatmul.mubr.msk.bf16.gmra.mrb[24].mxu1 %vm710_vm3, %v5080_v9  ;;  %v5329_v9 = vrot.slane %v5313_v0, 9  ;;  %v2895_v42 = vsel %vm6889_vm7, %v5330_v15, %v2894_v50  ;;  %v2904_v37 = vrot.slane %v5258_v12, 5  ;;  %v5332_v14 = vrot.slane %v5316_v4, 9  ;;  %v5266_v0 = vld [vmem:[%s6578_s29 + $0xb8] sm:$0xf] }
  0x77   : > { %5797 = vmatprep.mubr.msk.bf16.mxu1 %vm710_vm3, %v5081_v16  ;;  %v2896_v16 = vrot.slane %v2894_v50, 4  ;;  %v2903_v24 = vrot.slane %v2901_v23, 4  ;;  %v2911_v56 = vrot.slane %v5261_v44, 5  ;;  %v2902_v61 = vsel %vm6889_vm7, %v5331_v25, %v2901_v23  ;;  %v5269_v15 = vld [vmem:[%s6578_s29 + $0xc4] sm:$0xf] }
  0x78   : > { %v5087_v47 = vcombine.low %v6732_v63, %v6737_v8  ;;  %v2915_v50 = vrot.slane %v5263_v6, 5  ;;  %v2909_v17 = vsel %vm6889_vm7, %v5332_v14, %v2908_v28  ;;  %v1231_v27 = vld [vmem:[%s6578_s29 + $0xb4] sm:$0xe]  ;;  %v6452_v4 = vld [vmem:[%s6578_s29 + $0x4] sm:$0xf]  ;;  %v5090_v14 = vcombine.low %v6810_v31, %v6817_v41 }
  0x79   : > { %v2898_v57 = vsel %vm6889_vm7, %v2896_v16, %v2897_v53  ;;  %v2905_v32 = vsel %vm6889_vm7, %v2903_v24, %v2904_v37  ;;  %v1216_v24 = vld [vmem:[%s6578_s29] sm:$0xe]  ;;  %v6454_v37 = vld [vmem:[%s6578_s29 + $0x10] sm:$0xf]  ;;  %v1377_v31 = vrot.slane %v6872_v46, 5  ;;  %v6417_v46 = vld [vmem:[%s6578_s29 + $0x18] sm:$0xff]  }
  0x7a   : > { %5934 = vmatmul.mubr.msk.bf16.gmra.mrb[20].mxu0 %vm710_vm3, %v5342_v36  ;;  %v2888_v36 = vsel %vm6889_vm7, %v5329_v9, %v2887_v59  ;;  %v5086_v59 = vcombine.low %v6697_v13, %v6704_v19  ;;  %v5317_v13 = vld [vmem:[%s6578_s29 + $0xa8] sm:$0xe]  ;;  %v2922_v19 = vrot.slane %v5266_v0, 5  ;;  %v5267_v9 = vld [vmem:[%s6578_s29 + $0xbc] sm:$0x1]  ;;  %v2917_v8 = vrot.slane %v2915_v50, 4 }
  0x7b   : > { %5937 = vmatprep.mubr.msk.bf16.mxu0 %vm710_vm3, %v5343_v38  ;;  %v2891_v38 = vsel %vm6889_vm7, %v2889_v7, %v2890_v3  ;;  %v5318_v7 = vld [vmem:[%s6578_s29 + $0xb4] sm:$0xe]  ;;  %v5348_v3 = vcombine.low %v2902_v61, %v2905_v32  ;;  %v5333_v63 = vrot.slane %v5317_v13, 9  ;;  %v2925_v20 = vrot.slane %v5267_v9, 5  ;;  %v1217_v61 = vld [vmem:[%s6578_s29 + $0xc] sm:$0xe] }
  0x7c   : > { %v5346_v5 = vcombine.low %v2888_v36, %v2891_v38  ;;  %v5334_v60 = vrot.slane %v5318_v7, 9  ;;  %v2924_v52 = vrot.slane %v2922_v19, 4  ;;  %v5089_v38 = vcombine.low %v6777_v18, %v6786_v39  ;;  %v6455_v13 = vld [vmem:[%s6578_s29 + $0x14] sm:$0x1]  ;;  %v6456_v7 = vld [vmem:[%s6578_s29 + $0x1c] sm:$0xf] }
  0x7d   : > { %v2916_v12 = vsel %vm6889_vm7, %v5333_v63, %v2915_v50  ;;  %v1276_v6 = vrot.slane %v6454_v37, 5  ;;  %v1374_v32 = vrot.slane %v6866_v34, 5  ;;  %v5109_v41 = vrot.slane %v1216_v24, 9  ;;  %v6460_v24 = vld [vmem:[%s6578_s29 + $0x34] sm:$0xf] }
  0x7e   : > { %5798 = vmatmul.mubr.msk.bf16.gmra.mrb[28].mxu1 %vm710_vm3, %v5082_v45  ;;  %v5347_v45 = vcombine.low %v2895_v42, %v2898_v57  ;;  %v2923_v23 = vsel %vm6889_vm7, %v5334_v60, %v2922_v19  ;;  %v5319_v42 = vld [vmem:[%s6578_s29 + $0xc0] sm:$0xe]  ;;  %v2166_v50 = vshrl.u32 %v6914_v26, 16  ;;  %v1279_v19 = vrot.slane %v6455_v13, 5  ;;  %v6419_v34 = vld [vmem:[%s6578_s29 + $0x30] sm:$0xff]  }
  0x7f   : > { %5801 = vmatprep.mubr.msk.bf16.mxu1 %vm710_vm3, %v5083_v35  ;;  %v2910_v35 = vrot.slane %v2908_v28, 4  ;;  %v5335_v18 = vrot.slane %v5319_v42, 9  ;;  %v5110_v9 = vrot.slane %v1217_v61, 9  ;;  %v1278_v63 = vrot.slane %v1276_v6, 4  ;;  %v6465_v13 = vld [vmem:[%s6578_s29 + $0x64] sm:$0xf] }
  0x80   : > { %v1297_v37 = vrot.slane %v6460_v24, 5 }
  0x81   : > { %v7151_v42 = vsel %vm6889_vm7, %v1278_v63, %v1279_v19  ;;  %v1325_v19 = vrot.slane %v6465_v13, 5  ;;  %v6467_v63 = vld [vmem:[%s6578_s29 + $0x44] sm:$0x1]  ;;  %v7287_v13 = vld [vmem:[%s6578_s29 + $0x1c] sm:$0xf] }
  0x82   : > { %5938 = vmatmul.mubr.msk.bf16.gmra.mrb[24].mxu0 %vm710_vm3, %v5344_v49  ;;  %v2912_v49 = vsel %vm6889_vm7, %v2910_v35, %v2911_v56  ;;  %v5091_v35 = vcombine.low %v6841_v40, %v6847_v48  ;;  %v5124_v56 = vrot.slane %v1231_v27, 9  ;;  %v2162_v40 = vshll.u32 %v6914_v26, 16  ;;  %v6459_v27 = vld [vmem:[%s6578_s29 + $0x28] sm:$0xf] }
  0x83   : > { %5941 = vmatprep.mubr.msk.bf16.mxu0 %vm710_vm3, %v5345_v62  ;;  %v5264_v62 = vld [vmem:[%s6578_s29 + $0xb0] sm:$0x1]  ;;  %v5349_v16 = vcombine.low %v2909_v17, %v2912_v49  ;;  %v1376_v49 = vrot.slane %v1374_v32, 4 }
  0x84   : > { %v2918_v53 = vrot.slane %v5264_v62, 5  ;;  %v7114_v17 = vsel %vm6889_vm7, %v5124_v56, %v1374_v32  ;;  %v7132_v60 = vrot.slane %v2162_v40, 5  ;;  %v1223_v56 = vld [vmem:[%s6578_s29 + $0x54] sm:$0xe]  ;;  %v6462_v32 = vld [vmem:[%s6578_s29 + $0x2c] sm:$0x1] }
  0x85   : > { %v7123_v26 = vsel %vm6889_vm7, %v1376_v49, %v1377_v31  ;;  %v1293_v31 = vrot.slane %v6462_v32, 5  ;;  %v1225_v40 = vld [vmem:[%s6578_s29 + $0x6c] sm:$0xe]  ;;  %v6464_v49 = vld [vmem:[%s6578_s29 + $0x38] sm:$0x1] }
  0x86   : > { %5802 = vmatmul.mubr.msk.bf16.gmra.mrb[0].mxu1 %vm710_vm3, %v5084_v11  ;;  %v5088_v11 = vcombine.low %v6764_v51, %v6770_v10  ;;  %v2919_v36 = vsel %vm6889_vm7, %v2917_v8, %v2918_v53  ;;  %v2926_v51 = vsel %vm6889_vm7, %v2924_v52, %v2925_v20  ;;  %v5270_v10 = vld [vmem:[%s6578_s29 + $0xc8] sm:$0x1]  ;;  %v1218_v8 = vld [vmem:[%s6578_s29 + $0x18] sm:$0xe]  ;;  %v7134_v52 = vrot.slane %v2166_v50, 4 }
  0x87   : > { %5805 = vmatprep.mubr.msk.bf16.mxu1 %vm710_vm3, %v5085_v43  ;;  %v2929_v43 = vrot.slane %v5269_v15, 5  ;;  %v5350_v57 = vcombine.low %v2916_v12, %v2919_v36  ;;  %v5351_v28 = vcombine.low %v2923_v23, %v2926_v51  ;;  %v2932_v44 = vrot.slane %v5270_v10, 5  ;;  %v7139_v12 = vld [vmem:[%s6578_s29 + $0x50] sm:$0x1]  ;;  %v6458_v51 = vld [vmem:[%s6578_s29 + $0x20] sm:$0x1] }
  0x88   : > { %v2172_v20 = vshll.u32 %v6926_v54, 16  ;;  %v1314_v36 = vrot.slane %v7139_v12, 5  ;;  %v1286_v10 = vrot.slane %v6458_v51, 5  ;;  %v7147_v54 = vsel %vm6889_vm7, %v5110_v9, %v1276_v6  ;;  %v6461_v6 = vld [vmem:[%s6578_s29 + $0x40] sm:$0xf] }
  0x89   : > { %v2931_v39 = vrot.slane %v2929_v43, 4  ;;  %v2930_v0 = vsel %vm6889_vm7, %v5335_v18, %v2929_v43  ;;  %v5111_v43 = vrot.slane %v1218_v8, 9  ;;  %v7155_v18 = vld [vmem:[%s6578_s29 + $0x30] sm:$0xe]  ;;  %v5127_v22 = vcombine.low %v7147_v54, %v7151_v42  ;;  %v6469_v54 = vld [vmem:[%s6578_s29 + $0x68] sm:$0x1] }
  0x8a   : > { %5942 = vmatmul.mubr.msk.bf16.gmra.mrb[28].mxu0 %vm710_vm3, %v5346_v5  ;;  %v1269_v5 = vrot.slane %v6452_v4, 5  ;;  %v6418_v4 = vld [vmem:[%s6578_s29 + $0x24] sm:$0xff]   ;;  %v5113_v50 = vrot.slane %v7155_v18, 9  ;;  %v7201_v9 = vld [vmem:[%s8438_s1 + $0x10] sm:$0x3]  ;;  %v1307_v8 = vrot.slane %v6467_v63, 5 }
  0x8b   : > { %5945 = vmatprep.mubr.msk.bf16.mxu0 %vm710_vm3, %v5347_v45  ;;  %v6453_v45 = vld [vmem:[%s6578_s29 + $0x8] sm:$0x1]  ;;  %v1328_v42 = vrot.slane %v6469_v54, 5  ;;  %v6470_v18 = vld [vmem:[%s6578_s29 + $0x74] sm:$0x1] }
  0x8c   : > { %v1272_v25 = vrot.slane %v6453_v45, 5  ;;  %v1270_v15 = vsel %vm6889_vm7, %v5109_v41, %v1269_v5  ;;  %v4118_v45 = vsel %vm759_vm0, %v6947_v21, 0  ;;  %v6463_v41 = vld [vmem:[%s6578_s29 + $0x58] sm:$0xf]  ;;  %v1298_v24 = vsel %vm6889_vm7, %v5113_v50, %v1297_v37 }
  0x8e   : > { %5806 = vmatmul.mubr.msk.bf16.gmra.mrb[4].mxu1 %vm710_vm3, %v5086_v59  ;;  %v2933_v59 = vsel %vm6889_vm7, %v2931_v39, %v2932_v44  ;;  %v2169_v39 = vor.u32 %v7134_v52, %v7132_v60  ;;  %v7159_v44 = vrot.slane %v2172_v20, 5 }
  0x8f   : > { %5809 = vmatprep.mubr.msk.bf16.mxu1 %vm710_vm3, %v5087_v47  ;;  %v1271_v47 = vrot.slane %v1269_v5, 4  ;;  %v5352_v62 = vcombine.low %v2930_v0, %v2933_v59  ;;  %v7163_v5 = vld [vmem:[%s6578_s29 + $0x3c] sm:$0xe]  ;;  %v1224_v0 = vld [vmem:[%s6578_s29 + $0x60] sm:$0xe] }
  0x92   : > { %5946 = vmatmul.mubr.msk.bf16.gmra.mrb[32].mxu0 %vm710_vm3, %v5348_v3  ;;  %v1283_v3 = vrot.slane %v6456_v7, 5 }
  0x93   : > { %5949 = vmatprep.mubr.msk.bf16.mxu0 %vm710_vm3, %v5349_v16  ;;  %v1273_v16 = vsel %vm6889_vm7, %v1271_v47, %v1272_v25  ;;  %v1837_v25 = vsel %vm759_vm0, %v6972_v55, 0  ;;  %v1318_v47 = vrot.slane %v6463_v41, 5 }
  0x94   : > { %v1285_v23 = vrot.slane %v1283_v3, 4  ;;  %v1284_v21 = vsel %vm6889_vm7, %v5111_v43, %v1283_v3  ;;  %v1299_v3 = vrot.slane %v1297_v37, 4 }
  0x95   : > { %v1320_v43 = vrot.slane %v1318_v47, 4 }
  0x96   : > { %5810 = vmatmul.mubr.msk.bf16.gmra.mrb[8].mxu1 %vm710_vm3, %v5088_v11  ;;  %v1219_v11 = vld [vmem:[%s6578_s29 + $0x24] sm:$0xe]  ;;  %v1287_v55 = vsel %vm6889_vm7, %v1285_v23, %v1286_v10  ;;  %v6468_v23 = vld [vmem:[%s6578_s29 + $0x5c] sm:$0x1]  ;;  %v5117_v10 = vrot.slane %v1224_v0, 9 }
  0x97   : > { %5813 = vmatprep.mubr.msk.bf16.mxu1 %vm710_vm3, %v5089_v38  ;;  %v5126_v38 = vcombine.low %v1270_v15, %v1273_v16  ;;  %v5128_v7 = vcombine.low %v1284_v21, %v1287_v55  ;;  %v5114_v15 = vrot.slane %v7163_v5, 9  ;;  %v1321_v51 = vrot.slane %v6468_v23, 5  ;;  %v6420_v5 = vld [vmem:[%s6578_s29 + $0x3c] sm:$0xff]   ;;  %v6421_v21 = vld [vmem:[%s6578_s29 + $0x48] sm:$0xff]  }
  0x9a   : > { %5950 = vmatmul.mubr.msk.bf16.gmra.mrb[36].mxu0 %vm710_vm3, %v5350_v57  ;;  %v5112_v57 = vrot.slane %v1219_v11, 9 }
  0x9b   : > { %5953 = vmatprep.mubr.msk.bf16.mxu0 %vm710_vm3, %v5351_v28  ;;  %v1290_v28 = vrot.slane %v6459_v27, 5  ;;  %v5118_v27 = vrot.slane %v1225_v40, 9 }
  0x9d   : > { %v7189_v59 = vsel %vm6889_vm7, %v5112_v57, %v1290_v28  ;;  %v1292_v61 = vrot.slane %v1290_v28, 4  ;;  %v1327_v57 = vrot.slane %v1325_v19, 4 }
  0x9e   : > { %5814 = vmatmul.mubr.msk.bf16.gmra.mrb[12].mxu1 %vm710_vm3, %v5090_v14  ;;  %v1304_v14 = vrot.slane %v6461_v6, 5 }
  0x9f   : > { %5817 = vmatprep.mubr.msk.bf16.mxu1 %vm710_vm3, %v5091_v35  ;;  %v1222_v35 = vld [vmem:[%s6578_s29 + $0x48] sm:$0xe]  ;;  %v7266_v0 = vsel %vm6889_vm7, %v1327_v57, %v1328_v42  ;;  %v7314_v42 = vld [vmem:[%s6578_s29 + $0x9c] sm:$0xe]  ;;  %v3645_v57 = vshll.u32 %v7287_v13, 16 }
  0xa0   : > { %v1306_v16 = vrot.slane %v1304_v14, 4  ;;  %v5115_v20 = vrot.slane %v1222_v35, 9  ;;  %v7222_v35 = vsel %vm6889_vm7, %v5114_v15, %v1304_v14  ;;  %v5437_v15 = vld [vmem:[%s6578_s29 + $0x24] sm:$0xf] }
  0xa2   : > { %5954 = vmatmul.mubr.msk.bf16.gmra.mrb[40].mxu0 %vm710_vm3, %v5352_v62  ;;  %v1300_v62 = vrot.slane %v6464_v49, 5  ;;  %v7234_v37 = vsel %vm6889_vm7, %v1306_v16, %v1307_v8  ;;  %v7283_v49 = vld [vmem:[%s6578_s29 + $0x90] sm:$0xe] }
  0xa3   : > { %5959 = vmatprep.mubr.msk.bf16.mxu0 %vm710_vm3, %v6417_v46  ;;  %v5131_v40 = vcombine.low %v7222_v35, %v7234_v37 }
  0xa4   : > { %v1301_v6 = vsel %vm6889_vm7, %v1299_v3, %v1300_v62  ;;  %v5434_v62 = vld [vmem:[%s6578_s29 + $0x18] sm:$0xf] }
  0xa5   : > { %v3639_v54 = vshll.u32 %v5434_v62, 16 }
  0xa6   : > { %5818 = vmatmul.mubr.msk.bf16.gmra.mrb[16].mxu1 %vm710_vm3, %v5092_v58  ;;  %v1311_v58 = vrot.slane %v7014_v1, 5  ;;  %v6466_v1 = vld [vmem:[%s6578_s29 + $0x70] sm:$0xf] }
  0xa7   : > { %5823 = vmatprep.mubr.msk.bf16.mxu1 %vm710_vm3, %v5126_v38  ;;  %v1332_v46 = vrot.slane %v6466_v1, 5  ;;  %v5116_v38 = vrot.slane %v1223_v56, 9  ;;  %v1227_v56 = vld [vmem:[%s6578_s29 + $0x84] sm:$0xe] }
  0xa8   : > { %v1313_v11 = vrot.slane %v1311_v58, 4  ;;  %v7238_v55 = vsel %vm6889_vm7, %v5115_v20, %v1311_v58  ;;  %v6471_v58 = vld [vmem:[%s6578_s29 + $0x7c] sm:$0xf]  ;;  %v7300_v20 = vld [vmem:[%s6578_s29 + $0x8c] sm:$0x1] }
  0xa9   : > { %v1334_v28 = vrot.slane %v1332_v46, 4  ;;  %v7248_v52 = vsel %vm6889_vm7, %v5116_v38, %v1318_v47  ;;  %v1339_v12 = vrot.slane %v6471_v58, 5  ;;  %v5130_v47 = vcombine.low %v1298_v24, %v1301_v6  ;;  %v7304_v38 = vld [vmem:[%s6578_s29 + $0x28] sm:$0xf]  ;;  %v6476_v58 = vld [vmem:[%s6578_s29 + $0x94] sm:$0xf] }
  0xaa   : > { %5960 = vmatmul.mubr.msk.bf16.vlgmr.msra.gmra.mrb[12].mxu0 %vm710_vm3, %v6418_v4  ;;  %v1335_v4 = vrot.slane %v6470_v18, 5  ;;  %v7244_v14 = vsel %vm6889_vm7, %v1313_v11, %v1314_v36  ;;  %v6472_v36 = vld [vmem:[%s8438_s1 + $0x8] sm:$0x3]  ;;  %v1349_v11 = vrot.slane %v7300_v20, 5  ;;  %v3663_v18 = vshll.u32 %v5437_v15, 16 }
  0xab   : > { %5992 = vmatpush3.bf16.msra.mxu0 %v4118_v45  ;;  %5963 = vmatprep.mubr.msk.bf16.mxu0 %vm710_vm3, %v6419_v34  ;;  %v1294_v45 = vsel %vm6889_vm7, %v1292_v61, %v1293_v31  ;;  %v1226_v34 = vld [vmem:[%s6578_s29 + $0x78] sm:$0xe]  ;;  %v7270_v61 = vsel %vm6889_vm7, %v5118_v27, %v1332_v46  ;;  %v5132_v50 = vcombine.low %v7238_v55, %v7244_v14  ;;  %v5120_v46 = vrot.slane %v1227_v56, 9  ;;  %v1230_v24 = vld [vmem:[%s6578_s29 + $0xa8] sm:$0xe] }
  0xac   : > { %6388 = vmatprep.subr.msk.bf16.mxu0 %vm759_vm0, %v7201_v9  ;;  %v7274_v32 = vsel %vm6889_vm7, %v1334_v28, %v1335_v4  ;;  %v5119_v31 = vrot.slane %v1226_v34, 9  ;;  %v5129_v41 = vcombine.low %v7189_v59, %v1294_v45  ;;  %v1341_v8 = vrot.slane %v1339_v12, 4  ;;  %v6423_v4 = vld [vmem:[%s6578_s29 + $0x60] sm:$0xff]   ;;  %v6477_v56 = vld [vmem:[%s6578_s29 + $0x98] sm:$0x1] }
  0xad   : > { %v3649_v27 = vshrl.u32 %v7287_v13, 16  ;;  %v3660_v28 = vshrl.u32 %v5437_v15, 16  ;;  %v3669_v6 = vshll.u32 %v7304_v38, 16  ;;  %v3673_v34 = vshrl.u32 %v7304_v38, 16 }
  0xae   : > { %5824 = vmatmul.mubr.msk.bf16.vlgmr.msra.gmra.mrb[20].mxu1 %vm710_vm3, %v5127_v22  ;;  %v7228_v22 = vrot.slane %v2169_v39, 4  ;;  %v7252_v39 = vsel %vm6889_vm7, %v1320_v43, %v1321_v51  ;;  %v6422_v43 = vld [vmem:[%s6578_s29 + $0x54] sm:$0xff]   ;;  %v7309_v23 = vsel %vm6889_vm7, %v5119_v31, %v1339_v12  ;;  %v5121_v51 = vrot.slane %v7283_v49, 9  ;;  %v6478_v31 = vld [vmem:[%s6578_s29 + $0xa0] sm:$0xf] }
  0xaf   : > { %5856 = vmatpush3.bf16.msra.mxu1 %v1837_v25  ;;  %5827 = vmatprep.mubr.msk.bf16.mxu1 %vm710_vm3, %v5128_v7  ;;  %v7256_v25 = vsel %vm6889_vm7, %v5117_v10, %v1325_v19  ;;  %v6473_v19 = vld [vmem:[%s6578_s29 + $0x80] sm:$0x1]  ;;  %v6474_v7 = vld [vmem:[%s6578_s29 + $0x88] sm:$0xf]  ;;  %v3636_v10 = vshrl.u32 %v5434_v62, 16  ;;  %v1353_v12 = vrot.slane %v6476_v58, 5 }
  0xb0   : > { %6384 = vmatprep.subr.msk.bf16.mxu1 %vm759_vm0, %v6472_v36  ;;  %v1342_v1 = vrot.slane %v6473_v19, 5  ;;  %v1346_v3 = vrot.slane %v6474_v7, 5  ;;  %v1356_v36 = vrot.slane %v6477_v56, 5  ;;  %v5122_v62 = vrot.slane %v7314_v42, 9  ;;  %v7344_v56 = vld [vmem:[%s6578_s29 + $0x34] sm:$0xf] }
  0xb1   : > { %v1367_v19 = vrot.slane %v6847_v48, 5  ;;  %v3638_v7 = vrot.slane %v3636_v10, 4  ;;  %v3651_v15 = vrot.slane %v3649_v27, 4  ;;  %v3665_v58 = vrot.slane %v3663_v18, 5  ;;  %v7348_v42 = vld [vmem:[%s6578_s29 + $0x2c] sm:$0x1] }
  0xb2   : > { %5964 = vmatmul.mubr.msk.bf16.gmra.mrb[16].mxu0 %vm710_vm3, %v6420_v5  ;;  %v7322_v5 = vsel %vm6889_vm7, %v5120_v46, %v1346_v3  ;;  %v1348_v45 = vrot.slane %v1346_v3, 4  ;;  %v7338_v46 = vld [vmem:[%s6578_s29 + $0x20] sm:$0x1]  ;;  %v3641_v3 = vrot.slane %v3639_v54, 5  ;;  %v7350_v48 = vrot.slane %v3669_v6, 5  ;;  %v6424_v6 = vld [vmem:[%s6578_s29 + $0x6c] sm:$0xff]  }
  0xb3   : > { %5967 = vmatprep.mubr.msk.bf16.mxu0 %vm710_vm3, %v6421_v21  ;;  %v7329_v21 = vsel %vm6889_vm7, %v1341_v8, %v1342_v1  ;;  %v7341_v1 = vrot.slane %v3645_v57, 5  ;;  %v3662_v8 = vrot.slane %v3660_v28, 4  ;;  %v1355_v54 = vrot.slane %v1353_v12, 4  ;;  %v6479_v57 = vld [vmem:[%s6578_s29 + $0xa4] sm:$0x1] }
  0xb4   : > { %v1363_v63 = vrot.slane %v6479_v57, 5  ;;  %v5123_v27 = vrot.slane %v1230_v24, 9  ;;  %v1369_v28 = vrot.slane %v1367_v19, 4  ;;  %v1370_v18 = vrot.slane %v6855_v2, 5  ;;  %v6425_v2 = vld [vmem:[%s6578_s29 + $0x78] sm:$0xff]  }
  0xb5   : > { %v3693_v16 = vshll.u32 %v7344_v56, 16  ;;  %v3655_v57 = vshll.u32 %v7338_v46, 16  ;;  %v3679_v24 = vshll.u32 %v7348_v42, 16  ;;  %v3666_v59 = vor.u32 %v3665_v58, %v3662_v8  ;;  %v7399_v49 = vld [vmem:[%s6578_s29 + $0x38] sm:$0x1] }
  0xb6   : > { %5828 = vmatmul.mubr.msk.bf16.gmra.mrb[24].mxu1 %vm710_vm3, %v5129_v41  ;;  %v1360_v41 = vrot.slane %v6478_v31, 5  ;;  %v3675_v31 = vrot.slane %v3673_v34, 4  ;;  %v3642_v34 = vor.u32 %v3641_v3, %v3638_v7  ;;  %v7374_v7 = vsel %vm6889_vm7, %v1348_v45, %v1349_v11  ;;  %v5443_v45 = vld [vmem:[%s6578_s29 + $0x3c] sm:$0xf]  ;;  %v7414_v58 = vld [vmem:[%s6578_s29 + $0x40] sm:$0xf] }
  0xb7   : > { %5831 = vmatprep.mubr.msk.bf16.mxu1 %vm710_vm3, %v5130_v47  ;;  %v5440_v47 = vld [vmem:[%s6578_s29 + $0x30] sm:$0xf]  ;;  %v7380_v55 = vsel %vm6889_vm7, %v5121_v51, %v1353_v12  ;;  %v7384_v14 = vsel %vm6889_vm7, %v1355_v54, %v1356_v36  ;;  %v7396_v20 = vsel %vm6889_vm7, %v5123_v27, %v1367_v19  ;;  %v7401_v11 = vrot.slane %v3693_v16, 5  ;;  %v6426_v54 = vld [vmem:[%s6578_s29 + $0x84] sm:$0xff]  }
  0xb8   : > { %v3684_v10 = vshrl.u32 %v5440_v47, 16  ;;  %v3687_v53 = vshll.u32 %v5440_v47, 16  ;;  %v3652_v47 = vor.u32 %v3651_v15, %v7341_v1  ;;  %v3676_v35 = vor.u32 %v3675_v31, %v7350_v48  ;;  %v7495_v27 = vld [vmem:[%s6578_s29 + $0x50] sm:$0x1] }
  0xb9   : > { %v7407_v12 = vsel %vm6889_vm7, %v1369_v28, %v1370_v18  ;;  %v3681_v3 = vrot.slane %v3679_v24, 5  ;;  %v3703_v8 = vshll.u32 %v7399_v49, 16  ;;  %v3708_v31 = vshrl.u32 %v5443_v45, 16  ;;  %v7441_v24 = vld [vmem:[%s6578_s29 + $0x44] sm:$0x1]  ;;  %8464 = vst [vmem:[#allocation5_spill] sm:$0xff] %v7495_v27 }
  0xba   : > { %5968 = vmatmul.mubr.msk.bf16.gmra.mrb[20].mxu0 %vm710_vm3, %v6422_v43  ;;  %v1362_v43 = vrot.slane %v1360_v41, 4  ;;  %v3686_v37 = vrot.slane %v3684_v10, 4  ;;  %v3653_v36 = vrot.slane %v3652_v47, 4  ;;  %v3677_v19 = vrot.slane %v3676_v35, 4  ;;  %v7505_v15 = vld [vmem:[%s6578_s29 + $0x70] sm:$0xf] }
  0xbb   : > { %5971 = vmatprep.mubr.msk.bf16.mxu0 %vm710_vm3, %v6423_v4  ;;  %v3697_v4 = vshrl.u32 %v7344_v56, 16  ;;  %v3711_v10 = vshll.u32 %v5443_v45, 16  ;;  %v8459_v18 = vcombine.low %v7248_v52, %v7252_v39  ;;  %v5446_v52 = vld [vmem:[%s6578_s29 + $0x48] sm:$0xf]  ;;  %v8460_v39 = vcombine.low %v7256_v25, %v7266_v0  ;;  %v7464_v0 = vld [vmem:[%s6578_s29 + $0x58] sm:$0xf] }
  0xbc   : > { %v7458_v45 = vrot.slane %v3708_v31, 4  ;;  %v3721_v25 = vshrl.u32 %v7414_v58, 16  ;;  %8462 = vst [vmem:[#allocation3_spill] sm:$0xff] %v7464_v0  ;;  %8466 = vst [vmem:[#allocation6_spill] sm:$0xff] %v7505_v15 }
  0xbd   : > { %v3699_v51 = vrot.slane %v3697_v4, 4  ;;  %v6427_v4 = vld [vmem:[%s6578_s29 + $0x90] sm:$0xff]  }
  0xbe   : > { %5832 = vmatmul.mubr.msk.bf16.gmra.mrb[28].mxu1 %vm710_vm3, %v5131_v40  ;;  %v3689_v40 = vrot.slane %v3687_v53, 5  ;;  %v7392_v53 = vsel %vm6889_vm7, %v1362_v43, %v1363_v63  ;;  %v3643_v63 = vrot.slane %v3642_v34, 4 }
  0xbf   : > { %5835 = vmatprep.mubr.msk.bf16.mxu1 %vm710_vm3, %v5132_v50  ;;  %v7388_v50 = vsel %vm6889_vm7, %v5122_v62, %v1360_v41  ;;  %v3657_v41 = vrot.slane %v3655_v57, 5  ;;  %v3667_v62 = vrot.slane %v3666_v59, 4  ;;  %v3700_v28 = vor.u32 %v3699_v51, %v7401_v11  ;;  %v5455_v59 = vld [vmem:[%s6578_s29 + $0x6c] sm:$0xf] }
  0xc0   : > { %v3690_v16 = vor.u32 %v3689_v40, %v3686_v37  ;;  %v3648_v34 = vsel %vm6602_vm4, %v3643_v63, %v7341_v1  ;;  %v7438_v57 = vsel %vm759_vm0, %v7201_v9, 0  ;;  %v3717_v37 = vshll.u32 %v7414_v58, 16  ;;  %v7455_v9 = vld [vmem:[%s6578_s29 + $0x4c] sm:$0xf]  ;;  %v5449_v40 = vld [vmem:[%s6578_s29 + $0x54] sm:$0xf] }
  0xc1   : > { %v3658_v47 = vsel %vm6602_vm4, %v3653_v36, %v3657_v41  ;;  %v3672_v1 = vsel %vm6602_vm4, %v3667_v62, %v7350_v48  ;;  %8461 = vst [vmem:[#allocation2_spill] sm:$0xff] %v7455_v9  ;;  %v3705_v51 = vrot.slane %v3703_v8, 5  ;;  %v7460_v63 = vrot.slane %v3711_v10, 5 }
  0xc2   : > { %5972 = vmatmul.mubr.msk.bf16.gmra.mrb[24].mxu0 %vm710_vm3, %v6424_v6  ;;  %v3691_v35 = vrot.slane %v3690_v16, 4  ;;  %v3701_v48 = vrot.slane %v3700_v28, 4  ;;  %v3727_v36 = vshll.u32 %v7441_v24, 16  ;;  %v3732_v41 = vshrl.u32 %v5446_v52, 16 }
  0xc3   : > { %5975 = vmatprep.mubr.msk.bf16.mxu0 %vm710_vm3, %v6425_v2  ;;  %v3682_v2 = vsel %vm6602_vm4, %v3677_v19, %v3681_v3  ;;  %v3735_v62 = vshll.u32 %v5446_v52, 16  ;;  %v3741_v19 = vshll.u32 %v7455_v9, 16  ;;  %v3745_v3 = vshrl.u32 %v7455_v9, 16  ;;  %v7546_v9 = vld [vmem:[%s6578_s29 + $0x7c] sm:$0xf] }
  0xc4   : > { %v3756_v16 = vshrl.u32 %v5449_v40, 16  ;;  %v3759_v8 = vshll.u32 %v5449_v40, 16  ;;  %v7471_v31 = vcombine.low %v3648_v34, %v3658_v47  ;;  %v7473_v10 = vcombine.low %v3672_v1, %v3682_v2  ;;  %v5452_v34 = vld [vmem:[%s6578_s29 + $0x60] sm:$0xf]  ;;  %v7487_v47 = vld [vmem:[%s6578_s29 + $0x64] sm:$0xf] }
  0xc5   : > { %v3765_v28 = vshll.u32 %v7464_v0, 16  ;;  %v3696_v52 = vsel %vm6602_vm4, %v3691_v35, %v7401_v11  ;;  %v7483_v40 = vrot.slane %v3717_v37, 5  ;;  %8463 = vst [vmem:[#allocation4_spill] sm:$0xff] %v7487_v47  ;;  %v6429_v1 = vld [vmem:[%s6578_s29 + $0xa8] sm:$0xff]   ;;  %v3706_v2 = vsel %vm6602_vm4, %v3701_v48, %v3705_v51  ;;  %v7512_v48 = vld [vmem:[%s6578_s29 + $0x5c] sm:$0x1] }
  0xc6   : > { %5836 = vmatmul.mubr.msk.bf16.gmra.mrb[0].mxu1 %vm710_vm3, %v8459_v18  ;;  %v6428_v18 = vld [vmem:[%s6578_s29 + $0x9c] sm:$0xff]   ;;  %v7492_v6 = vrot.slane %v3727_v36, 5  ;;  %v3734_v11 = vrot.slane %v3732_v41, 4  ;;  %v3737_v35 = vrot.slane %v3735_v62, 5  ;;  %v8465_v37 = vcombine.low %v7270_v61, %v7274_v32  ;;  %8468 = vst [vmem:[#allocation7_spill] sm:$0xff] %v7512_v48 }
  0xc7   : > { %5839 = vmatprep.mubr.msk.bf16.mxu1 %vm710_vm3, %v8460_v39  ;;  %v3714_v39 = vor.u32 %v7460_v63, %v7458_v45  ;;  %v7502_v45 = vrot.slane %v3741_v19, 5  ;;  %v3747_v63 = vrot.slane %v3745_v3, 4  ;;  %v3761_v43 = vrot.slane %v3759_v8, 5 }
  0xc8   : > { %v8467_v51 = vcombine.low %v7309_v23, %v7329_v21  ;;  %v7514_v36 = vrot.slane %v3765_v28, 5  ;;  %v3780_v61 = vshrl.u32 %v5452_v34, 16  ;;  %v3783_v32 = vshll.u32 %v5452_v34, 16 }
  0xc9   : > { %v3789_v62 = vshll.u32 %v7487_v47, 16  ;;  %v3793_v19 = vshrl.u32 %v7487_v47, 16  ;;  %v3804_v3 = vshrl.u32 %v5455_v59, 16  ;;  %v7518_v8 = vcombine.low %v3696_v52, %v3706_v2 }
  0xca   : > { %5976 = vmatmul.mubr.msk.bf16.gmra.mrb[28].mxu0 %vm710_vm3, %v6426_v54  ;;  %v3769_v54 = vshrl.u32 %v7464_v0, 16  ;;  %v3813_v21 = vshll.u32 %v7505_v15, 16  ;;  %v3817_v28 = vshrl.u32 %v7505_v15, 16  ;;  %v3748_v34 = vor.u32 %v3747_v63, %v7502_v45  ;;  %v6430_v15 = vld [vmem:[%s6578_s29 + $0xb4] sm:$0xff]  }
  0xcb   : > { %5979 = vmatprep.mubr.msk.bf16.mxu0 %vm710_vm3, %v6427_v4  ;;  %v3723_v4 = vrot.slane %v3721_v25, 4  ;;  %v3758_v25 = vrot.slane %v3756_v16, 4  ;;  %v3807_v16 = vshll.u32 %v5455_v59, 16  ;;  %v3782_v2 = vrot.slane %v3780_v61, 4 }
  0xcc   : > { %v3771_v41 = vrot.slane %v3769_v54, 4  ;;  %v3738_v54 = vor.u32 %v3737_v35, %v3734_v11  ;;  %v3785_v47 = vrot.slane %v3783_v32, 5  ;;  %v3795_v11 = vrot.slane %v3793_v19, 4  ;;  %v7536_v35 = vld [vmem:[%s6578_s29 + $0x74] sm:$0x1] }
  0xcd   : > { %v3724_v23 = vor.u32 %v3723_v4, %v7483_v40  ;;  %v3762_v59 = vor.u32 %v3761_v43, %v3758_v25  ;;  %v7530_v4 = vld [vmem:[%s6578_s29 + $0x68] sm:$0x1]  ;;  %v3806_v63 = vrot.slane %v3804_v3, 4  ;;  %v7538_v0 = vrot.slane %v3813_v21, 5  ;;  %v5458_v25 = vld [vmem:[%s6578_s29 + $0x78] sm:$0xf] }
  0xce   : > { %5840 = vmatmul.mubr.msk.bf16.gmra.mrb[4].mxu1 %vm710_vm3, %v8465_v37  ;;  %v3751_v37 = vshll.u32 %v7495_v27, 16  ;;  %v3772_v52 = vor.u32 %v3771_v41, %v7514_v36  ;;  %v3715_v27 = vrot.slane %v3714_v39, 4  ;;  %v3819_v43 = vrot.slane %v3817_v28, 4  ;;  %v6431_v39 = vld [vmem:[%s6578_s29 + $0xc0] sm:$0xff]  }
  0xcf   : > { %5843 = vmatprep.mubr.msk.bf16.mxu1 %vm710_vm3, %v8467_v51  ;;  %v3775_v51 = vshll.u32 %v7512_v48, 16  ;;  %v3809_v48 = vrot.slane %v3807_v16, 5  ;;  %v8469_v41 = vcombine.low %v7322_v5, %v7374_v7  ;;  %v3739_v61 = vrot.slane %v3738_v54, 4 }
  0xd0   : > { %v3749_v32 = vrot.slane %v3748_v34, 4  ;;  %v8470_v3 = vcombine.low %v7380_v55, %v7384_v14  ;;  %v3763_v16 = vrot.slane %v3762_v59, 4  ;;  %v3786_v21 = vor.u32 %v3785_v47, %v3782_v2  ;;  %v5461_v2 = vld [vmem:[%s6578_s29 + $0x84] sm:$0xf] }
  0xd1   : > { %v3777_v19 = vrot.slane %v3775_v51, 5  ;;  %v3799_v28 = vshll.u32 %v7530_v4, 16  ;;  %v3810_v7 = vor.u32 %v3809_v48, %v3806_v63  ;;  %v3823_v54 = vshll.u32 %v7536_v35, 16 }
  0xd2   : > { %5980 = vmatmul.mubr.msk.bf16.gmra.mrb[32].mxu0 %vm710_vm3, %v6428_v18  ;;  %v7533_v18 = vrot.slane %v3789_v62, 5  ;;  %v3753_v62 = vrot.slane %v3751_v37, 5  ;;  %v3828_v34 = vshrl.u32 %v5458_v25, 16  ;;  %v3820_v37 = vor.u32 %v3819_v43, %v7538_v0  ;;  %v7582_v43 = vld [vmem:[%s6578_s29 + $0x80] sm:$0x1] }
  0xd3   : > { %5983 = vmatprep.mubr.msk.bf16.mxu0 %vm710_vm3, %v6429_v1  ;;  %v3725_v1 = vrot.slane %v3724_v23, 4  ;;  %v3773_v23 = vrot.slane %v3772_v52, 4  ;;  %v3831_v51 = vshll.u32 %v5458_v25, 16  ;;  %v3837_v55 = vshll.u32 %v7546_v9, 16 }
  0xd4   : > { %v3796_v5 = vor.u32 %v3795_v11, %v7533_v18  ;;  %v3841_v14 = vshrl.u32 %v7546_v9, 16  ;;  %v3720_v47 = vsel %vm6602_vm4, %v3715_v27, %v7483_v40  ;;  %v3744_v59 = vsel %vm6602_vm4, %v3739_v61, %v7502_v45  ;;  %v7579_v11 = vld [vmem:[%s6578_s29 + $0x88] sm:$0xf] }
  0xd5   : > { %v3730_v48 = vsel %vm6602_vm4, %v3725_v1, %v7492_v6  ;;  %v3754_v52 = vsel %vm6602_vm4, %v3749_v32, %v3753_v62  ;;  %v3778_v27 = vsel %vm6602_vm4, %v3773_v23, %v3777_v19  ;;  %v3787_v40 = vrot.slane %v3786_v21, 4  ;;  %v5464_v62 = vld [vmem:[%s6578_s29 + $0x90] sm:$0xf] }
  0xd6   : > { %5844 = vmatmul.mubr.msk.bf16.gmra.mrb[8].mxu1 %vm710_vm3, %v8469_v41  ;;  %v3801_v6 = vrot.slane %v3799_v28, 5  ;;  %v3797_v45 = vrot.slane %v3796_v5, 4  ;;  %v3811_v63 = vrot.slane %v3810_v7, 4  ;;  %v3825_v1 = vrot.slane %v3823_v54, 5  ;;  %v7608_v54 = vld [vmem:[%s6578_s29 + $0x94] sm:$0xf] }
  0xd7   : > { %5847 = vmatprep.mubr.msk.bf16.mxu1 %vm710_vm3, %v8470_v3  ;;  %v3830_v25 = vrot.slane %v3828_v34, 4  ;;  %v3821_v41 = vrot.slane %v3820_v37, 4  ;;  %v3833_v61 = vrot.slane %v3831_v51, 5  ;;  %v7584_v32 = vrot.slane %v3837_v55, 5  ;;  %v6432_v3 = vld [vmem:[%s6578_s29 + $0xcc] sm:$0xff]  }
  0xd8   : > { %v8471_v19 = vcombine.low %v7388_v50, %v7392_v53  ;;  %v3861_v23 = vshll.u32 %v7579_v11, 16  ;;  %v3865_v21 = vshrl.u32 %v7579_v11, 16  ;;  %v8472_v28 = vcombine.low %v7396_v20, %v7407_v12  ;;  %v5467_v51 = vld [vmem:[%s6578_s29 + $0x9c] sm:$0xf]  ;;  %v6433_v55 = vld [vmem:[%s6578_s29 + $0xc] sm:$0xff]  }
  0xd9   : > { %v7598_v5 = vcombine.low %v3720_v47, %v3730_v48  ;;  %v7600_v7 = vcombine.low %v3744_v59, %v3754_v52  ;;  %v3792_v53 = vsel %vm6602_vm4, %v3787_v40, %v7533_v18  ;;  %v3802_v34 = vsel %vm6602_vm4, %v3797_v45, %v3801_v6  ;;  %v7625_v40 = vld [vmem:[%s6578_s29 + $0xa0] sm:$0xf] }
  0xda   : > { %5984 = vmatmul.mubr.msk.bf16.gmra.mrb[36].mxu0 %vm710_vm3, %v6430_v15  ;;  %v3768_v15 = vsel %vm6602_vm4, %v3763_v16, %v7514_v36  ;;  %v3843_v36 = vrot.slane %v3841_v14, 4  ;;  %v3855_v16 = vshll.u32 %v5461_v2, 16  ;;  %v3847_v20 = vshll.u32 %v7582_v43, 16 }
  0xdb   : > { %5987 = vmatprep.mubr.msk.bf16.mxu0 %vm710_vm3, %v6431_v39  ;;  %v3852_v39 = vshrl.u32 %v5461_v2, 16  ;;  %v7602_v50 = vcombine.low %v3768_v15, %v3778_v27  ;;  %v3876_v12 = vshrl.u32 %v5464_v62, 16  ;;  %v3879_v37 = vshll.u32 %v5464_v62, 16 }
  0xdc   : > { %v3816_v14 = vsel %vm6602_vm4, %v3811_v63, %v7538_v0  ;;  %v3826_v18 = vsel %vm6602_vm4, %v3821_v41, %v3825_v1  ;;  %v3834_v47 = vor.u32 %v3833_v61, %v3830_v25  ;;  %v3844_v48 = vor.u32 %v3843_v36, %v7584_v32  ;;  %v7630_v0 = vld [vmem:[%s6578_s29 + $0x8c] sm:$0x1] }
  0xdd   : > { %v3854_v59 = vrot.slane %v3852_v39, 4  ;;  %v3857_v52 = vrot.slane %v3855_v16, 5  ;;  %v7622_v15 = vrot.slane %v3861_v23, 5  ;;  %v3867_v27 = vrot.slane %v3865_v21, 4 }
  0xde   : > { %5848 = vmatmul.mubr.msk.bf16.gmra.mrb[12].mxu1 %vm710_vm3, %v8471_v19  ;;  %v3885_v6 = vshll.u32 %v7608_v54, 16  ;;  %v3889_v2 = vshrl.u32 %v7608_v54, 16  ;;  %v3900_v45 = vshrl.u32 %v5467_v51, 16  ;;  %v3903_v63 = vshll.u32 %v5467_v51, 16 }
  0xdf   : > { %5851 = vmatprep.mubr.msk.bf16.mxu1 %vm710_vm3, %v8472_v28  ;;  %v7634_v1 = vcombine.low %v3792_v53, %v3802_v34  ;;  %v7636_v25 = vrot.slane %v3847_v20, 5  ;;  %v3878_v41 = vrot.slane %v3876_v12, 4  ;;  %v3881_v61 = vrot.slane %v3879_v37, 5  ;;  %v5470_v53 = vld [vmem:[%s6578_s29 + $0xa8] sm:$0xf] }
  0xe0   : > { %v7638_v36 = vcombine.low %v3816_v14, %v3826_v18  ;;  %v7640_v62 = vrot.slane %v3834_v47, 4  ;;  %v3913_v19 = vshrl.u32 %v7625_v40, 16  ;;  %v8473_v39 = vcombine.low %v7114_v17, %v7123_v26  ;;  %v7658_v17 = vld [vmem:[%s6578_s29 + $0xac] sm:$0xf]  ;;  %v7661_v26 = vld [vmem:[%s6578_s29 + $0x98] sm:$0x1] }
  0xe1   : > { %v7649_v16 = vrot.slane %v3844_v48, 4  ;;  %v3858_v23 = vor.u32 %v3857_v52, %v3854_v59  ;;  %v3868_v21 = vor.u32 %v3867_v27, %v7622_v15  ;;  %v3871_v28 = vshll.u32 %v7630_v0, 16 }
  0xe2   : > { %5988 = vmatmul.mubr.msk.bf16.gmra.mrb[40].mxu0 %vm710_vm3, %v6432_v3  ;;  %v5232_v3 = vld [vmem:[%s6578_s29 + $0x30] sm:$0xf]  ;;  %v7655_v34 = vrot.slane %v3885_v6, 5  ;;  %v3891_v20 = vrot.slane %v3889_v2, 4  ;;  %v3902_v12 = vrot.slane %v3900_v45, 4  ;;  %v3905_v37 = vrot.slane %v3903_v63, 5 }
  0xe3   : > { %5993 = vmatprep.mubr.msk.bf16.mxu0 %vm710_vm3, %v7471_v31  ;;  %v3909_v31 = vshll.u32 %v7625_v40, 16  ;;  %v3882_v51 = vor.u32 %v3881_v61, %v3878_v41  ;;  %v2153_v14 = vshrl.u32 %v5232_v3, 16  ;;  %v2156_v18 = vshll.u32 %v5232_v3, 16  ;;  %v7673_v6 = vld [vmem:[%s6578_s29 + $0xa4] sm:$0x1] }
  0xe4   : > { %v2175_v47 = vsel %vm6602_vm4, %v7228_v22, %v7159_v44  ;;  %v3915_v59 = vrot.slane %v3913_v19, 4  ;;  %v3924_v52 = vshrl.u32 %v5470_v53, 16  ;;  %v3927_v27 = vshll.u32 %v5470_v53, 16  ;;  %v6435_v44 = vld [vmem:[%s6578_s29 + $0x24] sm:$0xff]  }
  0xe5   : > { %v7668_v48 = vrot.slane %v3909_v31, 5  ;;  %v3933_v2 = vshll.u32 %v7658_v17, 16  ;;  %v3937_v45 = vshrl.u32 %v7658_v17, 16  ;;  %v2155_v63 = vrot.slane %v2153_v14, 4 }
  0xe6   : > { %5852 = vmatmul.mubr.msk.bf16.gmra.mrb[16].mxu1 %vm710_vm3, %v8473_v39  ;;  %v2158_v41 = vrot.slane %v2156_v18, 5  ;;  %v7681_v22 = vrot.slane %v3871_v28, 5  ;;  %v3892_v61 = vor.u32 %v3891_v20, %v7655_v34  ;;  %v3906_v31 = vor.u32 %v3905_v37, %v3902_v12  ;;  %v7698_v20 = vld [vmem:[%s6578_s29 + $0xb0] sm:$0x1]  ;;  %v5473_v37 = vld [vmem:[%s6578_s29 + $0xb4] sm:$0xf] }
  0xe7   : > { %5857 = vmatprep.mubr.msk.bf16.mxu1 %vm710_vm3, %v6433_v55  ;;  %v6434_v55 = vld [vmem:[%s6578_s29 + $0x18] sm:$0xff]   ;;  %v7685_v19 = vrot.slane %v3858_v23, 4  ;;  %v7687_v3 = vrot.slane %v3868_v21, 4  ;;  %v7689_v39 = vrot.slane %v3882_v51, 4  ;;  %v3919_v28 = vshll.u32 %v7673_v6, 16 }
  0xe8   : > { %v2159_v53 = vor.u32 %v2158_v41, %v2155_v63  ;;  %v3926_v14 = vrot.slane %v3924_v52, 4  ;;  %v3929_v23 = vrot.slane %v3927_v27, 5  ;;  %v7701_v21 = vrot.slane %v3933_v2, 5  ;;  %v5476_v2 = vld [vmem:[%s6578_s29 + $0xc0] sm:$0xf] }
  0xe9   : > { %v3939_v12 = vrot.slane %v3937_v45, 4  ;;  %v3850_v18 = vsel %vm6602_vm4, %v7649_v16, %v7636_v25  ;;  %v3907_v52 = vrot.slane %v3906_v31, 4  ;;  %v3864_v27 = vsel %vm6602_vm4, %v7685_v19, %v7622_v15  ;;  %v7723_v16 = vld [vmem:[%s6578_s29 + $0xb8] sm:$0xf] }
  0xea   : > { %5994 = vmatmul.mubr.msk.bf16.vlgmr.msra.gmra.mrb[12].mxu0 %vm710_vm3, %v7473_v10  ;;  %v3895_v10 = vshll.u32 %v7661_v26, 16  ;;  %v2160_v51 = vrot.slane %v2159_v53, 4  ;;  %v3888_v25 = vsel %vm6602_vm4, %v7689_v39, %v7655_v34  ;;  %8474 = vst [vmem:[#allocation8_spill] sm:$0xff] %v7723_v16  ;;  %v3921_v15 = vrot.slane %v3919_v28, 5  ;;  %v6436_v34 = vld [vmem:[%s6578_s29 + $0x30] sm:$0xff]  }
  0xeb   : > { %6026 = vmatpush3.bf16.msra.mxu0 %v7438_v57  ;;  %5997 = vmatprep.mubr.msk.bf16.mxu0 %vm710_vm3, %v7518_v8  ;;  %v3916_v8 = vor.u32 %v3915_v59, %v7668_v48  ;;  %v3893_v59 = vrot.slane %v3892_v61, 4  ;;  %v3943_v63 = vshll.u32 %v7698_v20, 16  ;;  %v3948_v41 = vshrl.u32 %v5473_v37, 16 }
  0xec   : > { %v2165_v45 = vsel %vm6602_vm4, %v2160_v51, %v7132_v60  ;;  %v3940_v31 = vor.u32 %v3939_v12, %v7701_v21  ;;  %v3951_v19 = vshll.u32 %v5473_v37, 16  ;;  %v6437_v60 = vld [vmem:[%s6578_s29 + $0x3c] sm:$0xff]   ;;  %v3961_v53 = vshrl.u32 %v7723_v16, 16 }
  0xed   : > { %v3917_v61 = vrot.slane %v3916_v8, 4  ;;  %v3972_v8 = vshrl.u32 %v5476_v2, 16  ;;  %v3975_v28 = vshll.u32 %v5476_v2, 16  ;;  %v3945_v12 = vrot.slane %v3943_v63, 5 }
  0xee   : > { %5858 = vmatmul.mubr.msk.bf16.vlgmr.msra.gmra.mrb[20].mxu1 %vm710_vm3, %v6434_v55  ;;  %v3897_v55 = vrot.slane %v3895_v10, 5  ;;  %v3930_v10 = vor.u32 %v3929_v23, %v3926_v14  ;;  %v3950_v37 = vrot.slane %v3948_v41, 4  ;;  %v3953_v2 = vrot.slane %v3951_v19, 5 }
  0xef   : > { %6121 = vmatpush3.bf16.msra.mxu1 %v6607_v33  ;;  %5861 = vmatprep.mubr.msk.bf16.mxu1 %vm710_vm3, %v6435_v44  ;;  %v3874_v33 = vsel %vm6602_vm4, %v7687_v3, %v7681_v22  ;;  %v7731_v44 = vld [vmem:[%s6578_s29 + $0xc4] sm:$0xf]  ;;  %v7733_v22 = vcombine.low %v2165_v45, %v2175_v47  ;;  %v5479_v3 = vld [vmem:[%s6578_s29 + $0xcc] sm:$0xf]  ;;  %v3912_v47 = vsel %vm6602_vm4, %v3907_v52, %v7668_v48  ;;  %v3941_v52 = vrot.slane %v3940_v31, 4 }
  0xf0   : > { %8475 = vst [vmem:[#allocation9_spill] sm:$0xff] %v7731_v44  ;;  %v3898_v39 = vsel %vm6602_vm4, %v3893_v59, %v3897_v55  ;;  %v3981_v14 = vshll.u32 %v7731_v44, 16  ;;  %v3985_v23 = vshrl.u32 %v7731_v44, 16  ;;  %v3996_v51 = vshrl.u32 %v5479_v3, 16  ;;  %v7759_v45 = vld [vmem:[%s6578_s29 + $0xbc] sm:$0x1] }
  0xf1   : > { %v3999_v59 = vshll.u32 %v5479_v3, 16  ;;  %v3922_v48 = vsel %vm6602_vm4, %v3917_v61, %v3921_v15  ;;  %v3931_v55 = vrot.slane %v3930_v10, 4  ;;  %8477 = vst [vmem:[#allocation11_spill] sm:$0xff] %v7759_v45  ;;  %v3963_v63 = vrot.slane %v3961_v53, 4 }
  0xf2   : > { %5998 = vmatmul.mubr.msk.bf16.gmra.mrb[16].mxu0 %vm710_vm3, %v7598_v5  ;;  %v3957_v5 = vshll.u32 %v7723_v16, 16  ;;  %v3977_v44 = vrot.slane %v3975_v28, 5  ;;  %v7766_v15 = vrot.slane %v3981_v14, 5  ;;  %v3987_v61 = vrot.slane %v3985_v23, 4  ;;  %v6438_v28 = vld [vmem:[%s6578_s29 + $0x48] sm:$0xff]  }
  0xf3   : > { %6001 = vmatprep.mubr.msk.bf16.mxu0 %vm710_vm3, %v7600_v7  ;;  %v7753_v7 = vld [vmem:[%s6578_s29 + $0xd0] sm:$0xf]  ;;  %v8478_v10 = vsel %vm6602_vm4, %v7640_v62, %v7584_v32  ;;  %v3998_v53 = vrot.slane %v3996_v51, 4  ;;  %v7782_v14 = vcombine.low %v3864_v27, %v3874_v33  ;;  %v7784_v23 = vcombine.low %v3888_v25, %v3898_v39  ;;  %v6439_v51 = vld [vmem:[%s6578_s29 + $0x54] sm:$0xff]  }
  0xf4   : > { %8476 = vst [vmem:[#allocation10_spill] sm:$0xff] %v7753_v7  ;;  %v7762_v57 = vrot.slane %v3957_v5, 5  ;;  %v4005_v41 = vshll.u32 %v7753_v7, 16  ;;  %v4009_v3 = vshrl.u32 %v7753_v7, 16  ;;  %v5491_v31 = vcombine.low %v8478_v10, %v3850_v18  ;;  %v7777_v5 = vld [vmem:[%s6578_s29 + $0xc8] sm:$0x1] }
  0xf5   : > { %8480 = vst [vmem:[#allocation13_spill] sm:$0xff] %v7777_v5  ;;  %v7786_v32 = vcombine.low %v3912_v47, %v3922_v48  ;;  %v3936_v62 = vsel %vm6602_vm4, %v3931_v55, %v7701_v21  ;;  %v5229_v10 = vld [vmem:[%s6578_s29 + $0x24] sm:$0xf]  ;;  %v7801_v25 = vld [vmem:[%s6578_s29 + $0xd4] sm:$0x1]  ;;  %v3946_v21 = vsel %vm6602_vm4, %v3941_v52, %v3945_v12  ;;  %v4379_v12 = vrot.slane %v7287_v13, 5 }
  0xf6   : > { %5862 = vmatmul.mubr.msk.bf16.gmra.mrb[24].mxu1 %vm710_vm3, %v6436_v34  ;;  %v3974_v34 = vrot.slane %v3972_v8, 4  ;;  %v4001_v8 = vrot.slane %v3999_v59, 5  ;;  %v3964_v27 = vor.u32 %v3963_v63, %v7762_v57  ;;  %8483 = vst [vmem:[#allocation16_spill] sm:$0xff] %v7801_v25  ;;  %v7803_v39 = vrot.slane %v4005_v41, 5  ;;  %v5515_v63 = vld [vmem:[%s6578_s29 + $0x18] sm:$0xe] }
  0xf7   : > { %5865 = vmatprep.mubr.msk.bf16.mxu1 %vm710_vm3, %v6437_v60  ;;  %v3967_v60 = vshll.u32 %v7759_v45, 16  ;;  %v4011_v47 = vrot.slane %v4009_v3, 4  ;;  %v4015_v41 = vshll.u32 %v7801_v25, 16  ;;  %v6480_v52 = vld [vmem:[%s6578_s29 + $0x28] sm:$0xf] }
  0xf8   : > { %v3978_v48 = vor.u32 %v3977_v44, %v3974_v34  ;;  %v2138_v3 = vshll.u32 %v6480_v52, 16  ;;  %v2142_v44 = vshrl.u32 %v6480_v52, 16  ;;  %v7819_v34 = vcombine.low %v3936_v62, %v3946_v21  ;;  %v5516_v52 = vld [vmem:[%s6578_s29 + $0x24] sm:$0xe] }
  0xf9   : > { %v7811_v55 = vrot.slane %v3967_v60, 5  ;;  %v7823_v60 = vrot.slane %v3964_v27, 4  ;;  %v4382_v62 = vrot.slane %v7338_v46, 5  ;;  %v6440_v27 = vld [vmem:[%s6578_s29 + $0x60] sm:$0xff]   ;;  %v4381_v21 = vrot.slane %v4379_v12, 4 }
  0xfa   : > { %v7773_v19 = vpop.f32.mrb[0].mxu0  ;;  %6002 = vmatmul.mubr.msk.bf16.gmra.mrb[20].mxu0 %vm710_vm3, %v7602_v50  ;;  %v3954_v50 = vor.u32 %v3953_v2, %v3950_v37  ;;  %v3991_v37 = vshll.u32 %v7777_v5, 16  ;;  %v4002_v2 = vor.u32 %v4001_v8, %v3998_v53  ;;  %v4012_v53 = vor.u32 %v4011_v47, %v7803_v39  ;;  %v6483_v5 = vld [vmem:[%s6578_s29 + $0x4c] sm:$0xf] }
  0xfb   : > { %8479 = vst [vmem:[#allocation12_spill] sm:$0xff] %v7773_v19  ;;  %v7791_v18 = vpop.f32.mrb[1].mxu0  ;;  %6005 = vmatprep.mubr.msk.bf16.mxu0 %vm710_vm3, %v7634_v1  ;;  %v3988_v1 = vor.u32 %v3987_v61, %v7766_v15  ;;  %v7826_v8 = vrot.slane %v3978_v48, 4  ;;  %v7839_v47 = vrot.slane %v4015_v41, 5  ;;  %v7841_v48 = vrot.slane %v2138_v3, 5 }
  0xfc   : > { %8481 = vst [vmem:[#allocation14_spill] sm:$0xff] %v7791_v18  ;;  %v7798_v33 = vpop.f32.mrb[2].mxu0  ;;  %v2132_v18 = vshll.u32 %v5229_v10, 16  ;;  %v7821_v61 = vrot.slane %v3954_v50, 4  ;;  %v7830_v13 = vrot.slane %v3991_v37, 5  ;;  %v6441_v37 = vld [vmem:[%s6578_s29 + $0x6c] sm:$0xff]  }
  0xfd   : > { %8482 = vst [vmem:[#allocation15_spill] sm:$0xff] %v7798_v33  ;;  %v7807_v59 = vpop.f32.mrb[3].mxu0  ;;  %v2129_v33 = vshrl.u32 %v5229_v10, 16  ;;  %v5531_v10 = vrot.slane %v5515_v63, 9  ;;  %v5532_v46 = vrot.slane %v5516_v52, 9  ;;  %v2210_v45 = vshll.u32 %v6483_v5, 16 }
  0xfe   : > { %8484 = vst [vmem:[#allocation17_spill] sm:$0xff] %v7807_v59  ;;  %5866 = vmatmul.mubr.msk.bf16.gmra.mrb[28].mxu1 %vm710_vm3, %v6438_v28  ;;  %v7828_v28 = vrot.slane %v3988_v1, 4  ;;  %v7833_v59 = vrot.slane %v4002_v2, 4  ;;  %v2134_v50 = vrot.slane %v2132_v18, 5  ;;  %v2144_v1 = vrot.slane %v2142_v44, 4 }
  0xff   : > { %5869 = vmatprep.mubr.msk.bf16.mxu1 %vm710_vm3, %v6439_v51  ;;  %v2131_v51 = vrot.slane %v2129_v33, 4  ;;  %v7845_v2 = vrot.slane %v4012_v53, 4  ;;  %v4386_v18 = vrot.slane %v7304_v38, 5  ;;  %v6481_v33 = vld [vmem:[%s6578_s29 + $0x2c] sm:$0x1]  ;;  %v7871_v44 = vsel %vm6889_vm7, %v5531_v10, %v4379_v12 }
 0x100   : > { %v2148_v63 = vshll.u32 %v6481_v33, 16  ;;  %v5517_v52 = vld [vmem:[%s6578_s29 + $0x30] sm:$0xe]  ;;  %v4393_v33 = vrot.slane %v7344_v56, 5  ;;  %v7879_v38 = vsel %vm6889_vm7, %v4381_v21, %v4382_v62  ;;  %v2145_v3 = vor.u32 %v2144_v1, %v7841_v48  ;;  %v5238_v1 = vld [vmem:[%s6578_s29 + $0x48] sm:$0xf] }
 0x101   : > { %v2135_v53 = vor.u32 %v2134_v50, %v2131_v51  ;;  %v4400_v12 = vrot.slane %v7414_v58, 5  ;;  %v4018_v56 = vsel %vm6602_vm4, %v7845_v2, %v7839_v47  ;;  %v7891_v10 = vsel %vm6889_vm7, %v5532_v46, %v4386_v18  ;;  %v6482_v19 = vld [vmem:[%s6578_s29 + $0x40] sm:$0xf]  ;;  %v6442_v46 = vld [vmem:[%s6578_s29 + $0x78] sm:$0xff]  }
 0x102   : > { %6006 = vmatmul.mubr.msk.bf16.gmra.mrb[24].mxu0 %vm710_vm3, %v7638_v36  ;;  %v4389_v36 = vrot.slane %v7348_v42, 5  ;;  %v4388_v62 = vrot.slane %v4386_v18, 4  ;;  %v2150_v51 = vrot.slane %v2148_v63, 5  ;;  %v5518_v42 = vld [vmem:[%s6578_s29 + $0x3c] sm:$0xe]  ;;  %v5533_v50 = vrot.slane %v5517_v52, 9 }
 0x103   : > { %6009 = vmatprep.mubr.msk.bf16.mxu0 %vm710_vm3, %v5491_v31  ;;  %v5235_v31 = vld [vmem:[%s6578_s29 + $0x3c] sm:$0xf]  ;;  %v4395_v41 = vrot.slane %v4393_v33, 4  ;;  %v2186_v47 = vshll.u32 %v6482_v19, 16  ;;  %v2190_v2 = vshrl.u32 %v6482_v19, 16  ;;  %v2146_v18 = vrot.slane %v2145_v3, 4 }
 0x104   : > { %v2177_v58 = vshrl.u32 %v5235_v31, 16  ;;  %v2180_v21 = vshll.u32 %v5235_v31, 16  ;;  %v5534_v63 = vrot.slane %v5518_v42, 9  ;;  %v4402_v25 = vrot.slane %v4400_v12, 4 }
 0x105   : > { %v4403_v52 = vrot.slane %v7441_v24, 5  ;;  %v2204_v7 = vshll.u32 %v5238_v1, 16  ;;  %v2214_v19 = vshrl.u32 %v6483_v5, 16  ;;  %v7915_v24 = vsel %vm6889_vm7, %v5533_v50, %v4393_v33 }
 0x106   : > { %5870 = vmatmul.mubr.msk.bf16.gmra.mrb[0].mxu1 %vm710_vm3, %v6440_v27  ;;  %v4396_v27 = vrot.slane %v7399_v49, 5  ;;  %v6443_v49 = vld [vmem:[%s6578_s29 + $0x84] sm:$0xff]   ;;  %v2182_v3 = vrot.slane %v2180_v21, 5  ;;  %v2151_v33 = vsel %vm6602_vm4, %v2146_v18, %v2150_v51  ;;  %v7935_v50 = vsel %vm6889_vm7, %v5534_v63, %v4400_v12 }
 0x107   : > { %5873 = vmatprep.mubr.msk.bf16.mxu1 %vm710_vm3, %v6441_v37  ;;  %v2136_v37 = vrot.slane %v2135_v53, 4  ;;  %v2201_v53 = vshrl.u32 %v5238_v1, 16  ;;  %v2206_v21 = vrot.slane %v2204_v7, 5  ;;  %v2216_v51 = vrot.slane %v2214_v19, 4  ;;  %v8491_v19 = vld [vmem:[#allocation2_spill] sm:$0xff] }
 0x108   : > { %v7924_v5 = vsel %vm6889_vm7, %v4395_v41, %v4396_v27  ;;  %v6484_v41 = vld [vmem:[%s6578_s29 + $0x44] sm:$0x1]  ;;  %v8486_v12 = vsel %vm6602_vm4, %v7823_v60, %v7811_v55  ;;  %v8488_v7 = vsel %vm6602_vm4, %v7828_v28, %v7830_v13  ;;  %v8490_v55 = vsel %vm6602_vm4, %v7833_v59, %v7803_v39  ;;  %v6444_v13 = vld [vmem:[%s6578_s29 + $0x90] sm:$0xff]  }
 0x109   : > { %v2141_v1 = vsel %vm6602_vm4, %v2136_v37, %v7841_v48  ;;  %v7939_v48 = vsel %vm6889_vm7, %v4402_v25, %v4403_v52  ;;  %v2196_v27 = vshll.u32 %v6484_v41, 16  ;;  %v7943_v37 = vrot.slane %v2210_v45, 5  ;;  %v6445_v52 = vld [vmem:[%s6578_s29 + $0x9c] sm:$0xff]   ;;  %v6487_v39 = vld [vmem:[%s6578_s29 + $0x64] sm:$0xf] }
 0x10a   : > { %6010 = vmatmul.mubr.msk.bf16.gmra.mrb[28].mxu0 %vm710_vm3, %v7782_v14  ;;  %v7911_v14 = vsel %vm6889_vm7, %v4388_v62, %v4389_v36  ;;  %v2192_v36 = vrot.slane %v2190_v2, 4  ;;  %v8487_v25 = vsel %vm6602_vm4, %v7821_v61, %v7762_v57  ;;  %v8489_v45 = vsel %vm6602_vm4, %v7826_v8, %v7766_v15  ;;  %v5519_v15 = vld [vmem:[%s6578_s29 + $0x48] sm:$0xe]  ;;  %v5241_v8 = vld [vmem:[%s6578_s29 + $0x54] sm:$0xf] }
 0x10b   : > { %6013 = vmatprep.mubr.msk.bf16.mxu0 %vm710_vm3, %v7784_v23  ;;  %v7904_v31 = vpop.f32.mrb[4].mxu0  ;;  %v2179_v23 = vrot.slane %v2177_v58, 4  ;;  %v2203_v58 = vrot.slane %v2201_v53, 4  ;;  %v5497_v2 = vcombine.low %v8489_v45, %v8488_v7  ;;  %v7970_v57 = vcombine.low %v8490_v55, %v4018_v56  ;;  %v6485_v56 = vld [vmem:[%s6578_s29 + $0x50] sm:$0x1]  ;;  %v8492_v7 = vld [vmem:[#allocation3_spill] sm:$0xff] }
 0x10c   : > { %v7907_v16 = vpop.f32.mrb[5].mxu0  ;;  %v7982_v18 = vcombine.low %v2141_v1, %v2151_v33  ;;  %v2220_v63 = vshll.u32 %v6485_v56, 16  ;;  %v5520_v33 = vld [vmem:[%s6578_s29 + $0x54] sm:$0xe]  ;;  %v2225_v41 = vshrl.u32 %v5241_v8, 16  ;;  %v4414_v45 = vrot.slane %v8492_v7, 5 }
 0x10d   : > { %8485 = vst [vmem:[#allocation18_spill] sm:$0xff] %v7907_v16  ;;  %v7917_v42 = vpop.f32.mrb[6].mxu0  ;;  %v7926_v16 = vrot.slane %v2186_v47, 5  ;;  %v5496_v47 = vcombine.low %v8487_v25, %v8486_v12  ;;  %v2207_v53 = vor.u32 %v2206_v21, %v2203_v58  ;;  %v2228_v12 = vshll.u32 %v5241_v8, 16  ;;  %v6486_v55 = vld [vmem:[%s6578_s29 + $0x58] sm:$0xf] }
 0x10e   : > { %5874 = vmatmul.mubr.msk.bf16.gmra.mrb[4].mxu1 %vm710_vm3, %v6442_v46  ;;  %v7929_v62 = vpop.f32.mrb[7].mxu0  ;;  %v2183_v46 = vor.u32 %v2182_v3, %v2179_v23  ;;  %v4407_v23 = vrot.slane %v8491_v19, 5  ;;  %v5244_v3 = vld [vmem:[%s6578_s29 + $0x60] sm:$0xf]  ;;  %v2234_v56 = vshll.u32 %v6486_v55, 16  ;;  %v8493_v58 = vld [vmem:[#allocation5_spill] sm:$0xff] }
 0x10f   : > { %5877 = vmatprep.mubr.msk.bf16.mxu1 %vm710_vm3, %v6443_v49  ;;  %v2193_v28 = vor.u32 %v2192_v36, %v7926_v16  ;;  %v2198_v49 = vrot.slane %v2196_v27, 5  ;;  %v5535_v36 = vrot.slane %v5519_v15, 9  ;;  %v2222_v27 = vrot.slane %v2220_v63, 5 }
 0x110   : > { %v2184_v1 = vrot.slane %v2183_v46, 4  ;;  %v4410_v21 = vrot.slane %v8493_v58, 5  ;;  %v2252_v19 = vshll.u32 %v5244_v3, 16  ;;  %v2208_v46 = vrot.slane %v2207_v53, 4 }
 0x111   : > { %v2194_v25 = vrot.slane %v2193_v28, 4  ;;  %v4409_v8 = vrot.slane %v4407_v23, 4  ;;  %v5536_v28 = vrot.slane %v5520_v33, 9  ;;  %v2227_v59 = vrot.slane %v2225_v41, 4  ;;  %v6447_v41 = vld [vmem:[%s6578_s29 + $0xb4] sm:$0xff]  }
 0x112   : > { %6014 = vmatmul.mubr.msk.bf16.gmra.mrb[32].mxu0 %vm710_vm3, %v7786_v32  ;;  %v2217_v32 = vor.u32 %v2216_v51, %v7943_v37  ;;  %v2249_v51 = vshrl.u32 %v5244_v3, 16  ;;  %v2230_v7 = vrot.slane %v2228_v12, 5  ;;  %v2258_v60 = vshll.u32 %v6487_v39, 16 }
 0x113   : > { %6017 = vmatprep.mubr.msk.bf16.mxu0 %vm710_vm3, %v7819_v34  ;;  %v2238_v34 = vshrl.u32 %v6486_v55, 16  ;;  %v2262_v55 = vshrl.u32 %v6487_v39, 16  ;;  %v4416_v61 = vrot.slane %v4414_v45, 4  ;;  %v8003_v58 = vrot.slane %v2234_v56, 5 }
 0x114   : > { %v2218_v15 = vrot.slane %v2217_v32, 4  ;;  %v2189_v53 = vsel %vm6602_vm4, %v2184_v1, %v7926_v16  ;;  %v8012_v32 = vsel %vm6889_vm7, %v5535_v36, %v4407_v23  ;;  %v2251_v33 = vrot.slane %v2249_v51, 4  ;;  %v5247_v1 = vld [vmem:[%s6578_s29 + $0x6c] sm:$0xf] }
 0x115   : > { %v2240_v3 = vrot.slane %v2238_v34, 4  ;;  %v2254_v39 = vrot.slane %v2252_v19, 5  ;;  %v2199_v12 = vsel %vm6602_vm4, %v2194_v25, %v2198_v49  ;;  %v8023_v16 = vsel %vm6889_vm7, %v4409_v8, %v4410_v21  ;;  %v6488_v21 = vld [vmem:[%s6578_s29 + $0x5c] sm:$0x1]  ;;  %v6489_v19 = vld [vmem:[%s6578_s29 + $0x68] sm:$0x1] }
 0x116   : > { %5878 = vmatmul.mubr.msk.bf16.gmra.mrb[8].mxu1 %vm710_vm3, %v6444_v13  ;;  %v8494_v13 = vld [vmem:[#allocation7_spill] sm:$0xff]  ;;  %v8027_v23 = vsel %vm6889_vm7, %v5536_v28, %v4414_v45  ;;  %v2231_v49 = vor.u32 %v2230_v7, %v2227_v59  ;;  %v8034_v25 = vrot.slane %v2258_v60, 5  ;;  %v2264_v56 = vrot.slane %v2262_v55, 4 }
 0x117   : > { %5881 = vmatprep.mubr.msk.bf16.mxu1 %vm710_vm3, %v6445_v52  ;;  %v4417_v63 = vrot.slane %v8494_v13, 5  ;;  %v6446_v52 = vld [vmem:[%s6578_s29 + $0xa8] sm:$0xff]   ;;  %v2241_v45 = vor.u32 %v2240_v3, %v8003_v58  ;;  %v2244_v51 = vshll.u32 %v6488_v21, 16  ;;  %v8048_v60 = vcombine.low %v2189_v53, %v2199_v12  ;;  %v6490_v13 = vld [vmem:[%s6578_s29 + $0x70] sm:$0xf] }
 0x118   : > { %v2255_v59 = vor.u32 %v2254_v39, %v2251_v33  ;;  %v2273_v8 = vshrl.u32 %v5247_v1, 16  ;;  %v2286_v3 = vshrl.u32 %v6490_v13, 16  ;;  %v2232_v53 = vrot.slane %v2231_v49, 4  ;;  %v8497_v39 = vld [vmem:[#allocation4_spill] sm:$0xff] }
 0x119   : > { %v8040_v34 = vsel %vm6889_vm7, %v4416_v61, %v4417_v63  ;;  %v2276_v61 = vshll.u32 %v5247_v1, 16  ;;  %v2282_v63 = vshll.u32 %v6490_v13, 16  ;;  %v2265_v33 = vor.u32 %v2264_v56, %v8034_v25  ;;  %v6448_v1 = vld [vmem:[%s6578_s29 + $0xc0] sm:$0xff]   ;;  %v5522_v13 = vld [vmem:[%s6578_s29 + $0x6c] sm:$0xe] }
 0x11a   : > { %6018 = vmatmul.mubr.msk.bf16.gmra.mrb[36].mxu0 %vm710_vm3, %v5496_v47  ;;  %v2213_v47 = vsel %vm6602_vm4, %v2208_v46, %v7943_v37  ;;  %v2268_v46 = vshll.u32 %v6489_v19, 16  ;;  %v4421_v12 = vrot.slane %v8497_v39, 5  ;;  %v2242_v21 = vrot.slane %v2241_v45, 4 }
 0x11b   : > { %6021 = vmatprep.mubr.msk.bf16.mxu0 %vm710_vm3, %v5497_v2  ;;  %v2223_v2 = vsel %vm6602_vm4, %v2218_v15, %v2222_v27  ;;  %v5521_v15 = vld [vmem:[%s6578_s29 + $0x60] sm:$0xe]  ;;  %v2256_v55 = vrot.slane %v2255_v59, 4  ;;  %v2278_v49 = vrot.slane %v2276_v61, 5  ;;  %v8499_v56 = vcombine.low %v7871_v44, %v7879_v38  ;;  %v6491_v61 = vld [vmem:[%s6578_s29 + $0x7c] sm:$0xf] }
 0x11c   : > { %v8030_v36 = vpop.f32.mrb[8].mxu0  ;;  %v8054_v7 = vcombine.low %v2213_v47, %v2223_v2  ;;  %v2246_v47 = vrot.slane %v2244_v51, 5  ;;  %v2270_v2 = vrot.slane %v2268_v46, 5  ;;  %v5537_v19 = vrot.slane %v5521_v15, 9 }
 0x11d   : > { %v8036_v37 = vpop.f32.mrb[9].mxu0  ;;  %v8073_v39 = vrot.slane %v2282_v63, 5  ;;  %v2288_v45 = vrot.slane %v2286_v3, 4  ;;  %v2266_v59 = vrot.slane %v2265_v33, 4  ;;  %v4423_v15 = vrot.slane %v4421_v12, 4 }
 0x11e   : > { %5882 = vmatmul.mubr.msk.bf16.gmra.mrb[12].mxu1 %vm710_vm3, %v6446_v52  ;;  %v8046_v27 = vpop.f32.mrb[10].mxu0  ;;  %v2275_v52 = vrot.slane %v2273_v8, 4  ;;  %v4424_v8 = vrot.slane %v7530_v4, 5  ;;  %v2247_v38 = vsel %vm6602_vm4, %v2242_v21, %v2246_v47  ;;  %v5538_v44 = vrot.slane %v5522_v13, 9 }
 0x11f   : > { %8495 = vst [vmem:[#allocation2_spill] sm:$0xff] %v8046_v27  ;;  %5885 = vmatprep.mubr.msk.bf16.mxu1 %vm710_vm3, %v6447_v41  ;;  %v8052_v28 = vpop.f32.mrb[11].mxu0  ;;  %v5250_v41 = vld [vmem:[%s6578_s29 + $0x78] sm:$0xf]  ;;  %v2310_v63 = vshrl.u32 %v6491_v61, 16  ;;  %v8085_v3 = vsel %vm6889_vm7, %v5537_v19, %v4421_v12  ;;  %v2261_v4 = vsel %vm6602_vm4, %v2256_v55, %v8034_v25  ;;  %v2289_v21 = vor.u32 %v2288_v45, %v8073_v39 }
 0x120   : > { %8496 = vst [vmem:[#allocation3_spill] sm:$0xff] %v8052_v28  ;;  %v8498_v28 = vld [vmem:[#allocation6_spill] sm:$0xff]  ;;  %v2297_v51 = vshrl.u32 %v5250_v41, 16  ;;  %v2300_v46 = vshll.u32 %v5250_v41, 16  ;;  %v2271_v12 = vsel %vm6602_vm4, %v2266_v59, %v2270_v2  ;;  %v4431_v19 = vrot.slane %v7536_v35, 5 }
 0x121   : > { %v4428_v27 = vrot.slane %v8498_v28, 5  ;;  %v2306_v28 = vshll.u32 %v6491_v61, 16  ;;  %v2312_v25 = vrot.slane %v2310_v63, 4  ;;  %v2290_v61 = vrot.slane %v2289_v21, 4 }
 0x122   : > { %6022 = vmatmul.mubr.msk.bf16.gmra.mrb[40].mxu0 %vm710_vm3, %v7970_v57  ;;  %v2237_v57 = vsel %vm6602_vm4, %v2232_v53, %v8003_v58  ;;  %v2279_v58 = vor.u32 %v2278_v49, %v2275_v52  ;;  %v6492_v53 = vld [vmem:[%s6578_s29 + $0x74] sm:$0x1]  ;;  %v2299_v47 = vrot.slane %v2297_v51, 4  ;;  %v8099_v52 = vsel %vm6889_vm7, %v4423_v15, %v4424_v8  ;;  %v5523_v15 = vld [vmem:[%s6578_s29 + $0x78] sm:$0xe] }
 0x123   : > { %6027 = vmatprep.mubr.msk.bf16.mxu0 %vm710_vm3, %v8499_v56  ;;  %v4430_v41 = vrot.slane %v4428_v27, 4  ;;  %v2292_v33 = vshll.u32 %v6492_v53, 16  ;;  %v5253_v56 = vld [vmem:[%s6578_s29 + $0x84] sm:$0xf]  ;;  %v8103_v49 = vrot.slane %v2306_v28, 5  ;;  %v8500_v51 = vcombine.low %v7891_v10, %v7911_v14 }
 0x124   : > { %v2321_v55 = vshrl.u32 %v5253_v56, 16  ;;  %v2324_v45 = vshll.u32 %v5253_v56, 16  ;;  %v8109_v2 = vcombine.low %v2237_v57, %v2247_v38  ;;  %v2280_v35 = vrot.slane %v2279_v58, 4  ;;  %v5524_v10 = vld [vmem:[%s6578_s29 + $0x84] sm:$0xe] }
 0x125   : > { %v2294_v59 = vrot.slane %v2292_v33, 5  ;;  %v8501_v8 = vcombine.low %v7915_v24, %v7924_v5  ;;  %v6494_v14 = vld [vmem:[%s6578_s29 + $0x88] sm:$0xf]  ;;  %v8122_v38 = vcombine.low %v2261_v4, %v2271_v12  ;;  %v4435_v24 = vrot.slane %v7546_v9, 5  ;;  %v5256_v56 = vld [vmem:[%s6578_s29 + $0x90] sm:$0xf] }
 0x126   : > { %5886 = vmatmul.mubr.msk.bf16.gmra.mrb[16].mxu1 %vm710_vm3, %v6448_v1  ;;  %v2302_v1 = vrot.slane %v2300_v46, 5  ;;  %v8113_v46 = vsel %vm6889_vm7, %v5538_v44, %v4428_v27  ;;  %v2330_v63 = vshll.u32 %v6494_v14, 16  ;;  %v2334_v57 = vshrl.u32 %v6494_v14, 16  ;;  %v5259_v14 = vld [vmem:[%s6578_s29 + $0x9c] sm:$0xf] }
 0x127   : > { %5895 = vmatprep.mubr.msk.bf16.mxu1 %vm710_vm3, %v7982_v18  ;;  %v6493_v18 = vld [vmem:[%s6578_s29 + $0x80] sm:$0x1]  ;;  %v5554_v27 = vcombine.low %v8085_v3, %v8099_v52  ;;  %v8128_v44 = vsel %vm6889_vm7, %v4430_v41, %v4431_v19  ;;  %v2313_v5 = vor.u32 %v2312_v25, %v8103_v49  ;;  %v2323_v53 = vrot.slane %v2321_v55, 4  ;;  %v6499_v3 = vld [vmem:[%s6578_s29 + $0xa4] sm:$0x1] }
 0x128   : > { %v2316_v13 = vshll.u32 %v6493_v18, 16  ;;  %v2303_v28 = vor.u32 %v2302_v1, %v2299_v47  ;;  %v2326_v33 = vrot.slane %v2324_v45, 5  ;;  %v2285_v4 = vsel %vm6602_vm4, %v2280_v35, %v8073_v39 }
 0x129   : > { %v5539_v21 = vrot.slane %v5523_v15, 9  ;;  %v5540_v47 = vrot.slane %v5524_v10, 9  ;;  %v4442_v41 = vrot.slane %v7579_v11, 5  ;;  %v2295_v9 = vsel %vm6602_vm4, %v2290_v61, %v2294_v59  ;;  %v6495_v11 = vld [vmem:[%s6578_s29 + $0x94] sm:$0xf] }
 0x12a   : > { %6028 = vmatmul.mubr.msk.bf16.vlgmr.msra.gmra.mrb[12].mxu0 %vm710_vm3, %v8500_v51  ;;  %v2318_v58 = vrot.slane %v2316_v13, 5  ;;  %v2304_v1 = vrot.slane %v2303_v28, 4  ;;  %v8143_v12 = vrot.slane %v2330_v63, 5  ;;  %v2336_v19 = vrot.slane %v2334_v57, 4  ;;  %v6496_v28 = vld [vmem:[%s6578_s29 + $0x8c] sm:$0x1] }
 0x12b   : > { %6031 = vmatprep.mubr.msk.bf16.mxu0 %vm710_vm3, %v8501_v8  ;;  %v4438_v18 = vrot.slane %v7582_v43, 5  ;;  %v2345_v13 = vshrl.u32 %v5256_v56, 16  ;;  %v2348_v39 = vshll.u32 %v5256_v56, 16  ;;  %v2314_v25 = vrot.slane %v2313_v5, 4 }
 0x12c   : > { %v2327_v55 = vor.u32 %v2326_v33, %v2323_v53  ;;  %v2354_v45 = vshll.u32 %v6495_v11, 16  ;;  %v2358_v51 = vshrl.u32 %v6495_v11, 16  ;;  %v5555_v35 = vcombine.low %v8113_v46, %v8128_v44  ;;  %v5525_v33 = vld [vmem:[%s6578_s29 + $0x90] sm:$0xe] }
 0x12d   : > { %v8153_v59 = vcombine.low %v2285_v4, %v2295_v9  ;;  %v8157_v43 = vsel %vm6889_vm7, %v5539_v21, %v4435_v24  ;;  %v8161_v15 = vsel %vm6889_vm7, %v5540_v47, %v4442_v41  ;;  %v8503_v8 = vcombine.low %v8012_v32, %v8023_v16  ;;  %v6497_v21 = vld [vmem:[%s6578_s29 + $0xa0] sm:$0xf] }
 0x12e   : > { %5896 = vmatmul.mubr.msk.bf16.vlgmr.msra.gmra.mrb[24].mxu1 %vm710_vm3, %v7733_v22  ;;  %v4437_v22 = vrot.slane %v4435_v24, 4  ;;  %v2337_v61 = vor.u32 %v2336_v19, %v8143_v12  ;;  %v2340_v10 = vshll.u32 %v6496_v28, 16  ;;  %v4445_v32 = vrot.slane %v7630_v0, 5 }
 0x12f   : > { %5899 = vmatprep.mubr.msk.bf16.mxu1 %vm710_vm3, %v8048_v60  ;;  %v8502_v60 = vcombine.low %v7935_v50, %v7939_v48  ;;  %v2309_v50 = vsel %vm6602_vm4, %v2304_v1, %v8103_v49  ;;  %v4444_v48 = vrot.slane %v4442_v41, 4  ;;  %v2347_v16 = vrot.slane %v2345_v13, 4 }
 0x130   : > { %v8175_v63 = vsel %vm6889_vm7, %v4437_v22, %v4438_v18  ;;  %v2350_v57 = vrot.slane %v2348_v39, 5  ;;  %v2319_v24 = vsel %vm6602_vm4, %v2314_v25, %v2318_v58  ;;  %v2328_v5 = vrot.slane %v2327_v55, 4  ;;  %v6498_v22 = vld [vmem:[%s6578_s29 + $0x98] sm:$0x1]  ;;  %v5526_v39 = vld [vmem:[%s6578_s29 + $0x9c] sm:$0xe] }
 0x131   : > { %v8180_v49 = vrot.slane %v2354_v45, 5  ;;  %v2360_v53 = vrot.slane %v2358_v51, 4  ;;  %v2369_v56 = vshrl.u32 %v5259_v14, 16  ;;  %v2372_v4 = vshll.u32 %v5259_v14, 16  ;;  %v6500_v14 = vld [vmem:[%s6578_s29 + $0xac] sm:$0xf] }
 0x132   : > { %6032 = vmatmul.mubr.msk.bf16.gmra.mrb[16].mxu0 %vm710_vm3, %v8502_v60  ;;  %v2378_v47 = vshll.u32 %v6497_v21, 16  ;;  %v2382_v0 = vshrl.u32 %v6497_v21, 16  ;;  %v5556_v58 = vcombine.low %v8157_v43, %v8175_v63  ;;  %v2338_v41 = vrot.slane %v2337_v61, 4  ;;  %v6501_v21 = vld [vmem:[%s6578_s29 + $0xb8] sm:$0xf] }
 0x133   : > { %6035 = vmatprep.mubr.msk.bf16.mxu0 %vm710_vm3, %v8503_v8  ;;  %v2342_v9 = vrot.slane %v2340_v10, 5  ;;  %v4449_v1 = vrot.slane %v7608_v54, 5  ;;  %v8191_v19 = vcombine.low %v2309_v50, %v2319_v24  ;;  %v2364_v18 = vshll.u32 %v6498_v22, 16  ;;  %v5262_v8 = vld [vmem:[%s6578_s29 + $0xa8] sm:$0xf] }
 0x134   : > { %v5541_v13 = vrot.slane %v5525_v33, 9  ;;  %v8197_v25 = vsel %vm6889_vm7, %v4444_v48, %v4445_v32  ;;  %v2361_v55 = vor.u32 %v2360_v53, %v8180_v49  ;;  %v4452_v54 = vrot.slane %v7661_v26, 5  ;;  %v5265_v32 = vld [vmem:[%s6578_s29 + $0xb4] sm:$0xf] }
 0x135   : > { %v8504_v11 = vcombine.low %v8027_v23, %v8040_v34  ;;  %v2371_v45 = vrot.slane %v2369_v56, 4  ;;  %v2374_v51 = vrot.slane %v2372_v4, 5  ;;  %v8208_v60 = vrot.slane %v2378_v47, 5 }
 0x136   : > { %5900 = vmatmul.mubr.msk.bf16.gmra.mrb[28].mxu1 %vm710_vm3, %v8054_v7  ;;  %v2351_v7 = vor.u32 %v2350_v57, %v2347_v16  ;;  %v2384_v43 = vrot.slane %v2382_v0, 4  ;;  %v2343_v26 = vsel %vm6602_vm4, %v2338_v41, %v2342_v9  ;;  %v4451_v23 = vrot.slane %v4449_v1, 4 }
 0x137   : > { %5903 = vmatprep.mubr.msk.bf16.mxu1 %vm710_vm3, %v8109_v2  ;;  %v2333_v2 = vsel %vm6602_vm4, %v2328_v5, %v8143_v12  ;;  %v5542_v34 = vrot.slane %v5526_v39, 9  ;;  %v4456_v12 = vrot.slane %v7625_v40, 5  ;;  %v5557_v50 = vcombine.low %v8161_v15, %v8197_v25 }
 0x138   : > { %v2352_v48 = vrot.slane %v2351_v7, 4  ;;  %v2366_v61 = vrot.slane %v2364_v18, 5  ;;  %v8222_v28 = vsel %vm6889_vm7, %v5541_v13, %v4449_v1  ;;  %v2388_v52 = vshll.u32 %v6499_v3, 16  ;;  %v5527_v13 = vld [vmem:[%s6578_s29 + $0xa8] sm:$0xe] }
 0x139   : > { %v2393_v10 = vshrl.u32 %v5262_v8, 16  ;;  %v2402_v63 = vshll.u32 %v6500_v14, 16  ;;  %v5282_v40 = vcombine.low %v2333_v2, %v2343_v26  ;;  %v2375_v16 = vor.u32 %v2374_v51, %v2371_v45 }
 0x13a   : > { %6036 = vmatmul.mubr.msk.bf16.gmra.mrb[20].mxu0 %vm710_vm3, %v8504_v11  ;;  %v2385_v57 = vor.u32 %v2384_v43, %v8208_v60  ;;  %v2406_v24 = vshrl.u32 %v6500_v14, 16  ;;  %v2362_v5 = vrot.slane %v2361_v55, 4  ;;  %v4453_v53 = vsel %vm6889_vm7, %v4451_v23, %v4452_v54 }
 0x13b   : > { %6039 = vmatprep.mubr.msk.bf16.mxu0 %vm710_vm3, %v5554_v27  ;;  %v2396_v27 = vshll.u32 %v5262_v8, 16  ;;  %v8236_v33 = vsel %vm6889_vm7, %v5542_v34, %v4456_v12  ;;  %v4458_v56 = vrot.slane %v4456_v12, 4  ;;  %v2417_v4 = vshrl.u32 %v5265_v32, 16 }
 0x13c   : > { %v2426_v47 = vshll.u32 %v6501_v21, 16  ;;  %v2430_v0 = vshrl.u32 %v6501_v21, 16  ;;  %v2390_v41 = vrot.slane %v2388_v52, 5  ;;  %v2395_v9 = vrot.slane %v2393_v10, 4  ;;  %v6504_v10 = vld [vmem:[%s6578_s29 + $0xbc] sm:$0x1] }
 0x13d   : > { %v2398_v1 = vrot.slane %v2396_v27, 5  ;;  %v8239_v7 = vrot.slane %v2402_v63, 5  ;;  %v2386_v22 = vrot.slane %v2385_v57, 4  ;;  %v2408_v18 = vrot.slane %v2406_v24, 4 }
 0x13e   : > { %5904 = vmatmul.mubr.msk.bf16.gmra.mrb[0].mxu1 %vm710_vm3, %v8122_v38  ;;  %v2420_v38 = vshll.u32 %v5265_v32, 16  ;;  %v4463_v39 = vrot.slane %v7658_v17, 5  ;;  %v2357_v2 = vsel %vm6602_vm4, %v2352_v48, %v8180_v49  ;;  %v2367_v55 = vsel %vm6602_vm4, %v2362_v5, %v2366_v61  ;;  %v5268_v17 = vld [vmem:[%s6578_s29 + $0xc0] sm:$0xf]  ;;  %v6503_v61 = vld [vmem:[%s6578_s29 + $0xc4] sm:$0xf] }
 0x13f   : > { %5907 = vmatprep.mubr.msk.bf16.mxu1 %vm710_vm3, %v8153_v59  ;;  %v2376_v59 = vrot.slane %v2375_v16, 4  ;;  %v5558_v46 = vcombine.low %v8222_v28, %v4453_v53  ;;  %v4459_v44 = vrot.slane %v7673_v6, 5  ;;  %v8255_v11 = vrot.slane %v2426_v47, 5  ;;  %v8505_v32 = vld [vmem:[#allocation8_spill] sm:$0xff] }
 0x140   : > { %v2422_v54 = vrot.slane %v2420_v38, 5  ;;  %v2432_v45 = vrot.slane %v2430_v0, 4  ;;  %v2399_v51 = vor.u32 %v2398_v1, %v2395_v9  ;;  %v5543_v8 = vrot.slane %v5527_v13, 9  ;;  %v5528_v53 = vld [vmem:[%s6578_s29 + $0xb4] sm:$0xe]  ;;  %v8506_v0 = vld [vmem:[#allocation9_spill] sm:$0xff] }
 0x141   : > { %v4466_v49 = vrot.slane %v7698_v20, 5  ;;  %v2381_v6 = vsel %vm6602_vm4, %v2376_v59, %v8208_v60  ;;  %v2391_v26 = vsel %vm6602_vm4, %v2386_v22, %v2390_v41  ;;  %v2409_v23 = vor.u32 %v2408_v18, %v8239_v7 }
 0x142   : > { %6040 = vmatmul.mubr.msk.bf16.gmra.mrb[24].mxu0 %vm710_vm3, %v5555_v35  ;;  %v2419_v35 = vrot.slane %v2417_v4, 4  ;;  %v4465_v34 = vrot.slane %v4463_v39, 4  ;;  %v2441_v12 = vshrl.u32 %v5268_v17, 16  ;;  %v2444_v48 = vshll.u32 %v5268_v17, 16  ;;  %v8508_v17 = vld [vmem:[#allocation13_spill] sm:$0xff] }
 0x143   : > { %6043 = vmatprep.mubr.msk.bf16.mxu0 %vm710_vm3, %v5556_v58  ;;  %v6502_v58 = vld [vmem:[%s6578_s29 + $0xb0] sm:$0x1]  ;;  %v2450_v28 = vshll.u32 %v6503_v61, 16  ;;  %v2454_v20 = vshrl.u32 %v6503_v61, 16  ;;  %v5283_v3 = vcombine.low %v2357_v2, %v2367_v55  ;;  %v2433_v52 = vor.u32 %v2432_v45, %v8255_v11 }
 0x144   : > { %v2412_v43 = vshll.u32 %v6502_v58, 16  ;;  %v2436_v60 = vshll.u32 %v6504_v10, 16  ;;  %v4460_v27 = vsel %vm6889_vm7, %v4458_v56, %v4459_v44  ;;  %v2400_v14 = vrot.slane %v2399_v51, 4  ;;  %v6505_v44 = vld [vmem:[%s6578_s29 + $0xc8] sm:$0x1] }
 0x145   : > { %v5284_v16 = vcombine.low %v2381_v6, %v2391_v26  ;;  %v2410_v57 = vrot.slane %v2409_v23, 4  ;;  %v4464_v24 = vsel %vm6889_vm7, %v5543_v8, %v4463_v39  ;;  %v4467_v5 = vsel %vm6889_vm7, %v4465_v34, %v4466_v49  ;;  %v8507_v39 = vld [vmem:[#allocation11_spill] sm:$0xff]  ;;  %v8509_v49 = vld [vmem:[#allocation10_spill] sm:$0xff] }
 0x146   : > { %5908 = vmatmul.mubr.msk.bf16.gmra.mrb[4].mxu1 %vm710_vm3, %v8191_v19  ;;  %v2423_v19 = vor.u32 %v2422_v54, %v2419_v35  ;;  %v2414_v63 = vrot.slane %v2412_v43, 5  ;;  %v2443_v56 = vrot.slane %v2441_v12, 4  ;;  %v2446_v4 = vrot.slane %v2444_v48, 5  ;;  %v5530_v12 = vld [vmem:[%s6578_s29 + $0xcc] sm:$0xe] }
 0x147   : > { %5911 = vmatprep.mubr.msk.bf16.mxu1 %vm710_vm3, %v5282_v40  ;;  %v4470_v40 = vrot.slane %v8505_v32, 5  ;;  %v2452_v38 = vrot.slane %v2450_v28, 5  ;;  %v2456_v21 = vrot.slane %v2454_v20, 4  ;;  %v2434_v15 = vrot.slane %v2433_v52, 4 }
 0x148   : > { %v2424_v47 = vrot.slane %v2423_v19, 4  ;;  %v2438_v25 = vrot.slane %v2436_v60, 5  ;;  %v4477_v41 = vrot.slane %v8506_v0, 5  ;;  %v5559_v9 = vcombine.low %v8236_v33, %v4460_v27  ;;  %v8510_v60 = vld [vmem:[#allocation16_spill] sm:$0xff] }
 0x149   : > { %v5544_v1 = vrot.slane %v5528_v53, 9  ;;  %v4472_v59 = vrot.slane %v4470_v40, 4  ;;  %v2405_v22 = vsel %vm6602_vm4, %v2400_v14, %v8239_v7  ;;  %v2415_v18 = vsel %vm6602_vm4, %v2410_v57, %v2414_v63 }
 0x14a   : > { %6044 = vmatmul.mubr.msk.bf16.gmra.mrb[28].mxu0 %vm710_vm3, %v5557_v50  ;;  %v5529_v50 = vld [vmem:[%s6578_s29 + $0xc0] sm:$0xe]  ;;  %v5560_v13 = vcombine.low %v4464_v24, %v4467_v5  ;;  %v4473_v2 = vrot.slane %v8507_v39, 5  ;;  %v2447_v55 = vor.u32 %v2446_v4, %v2443_v56  ;;  %v2460_v33 = vshll.u32 %v6505_v44, 16  ;;  %v4895_v5 = vld [vmem:[%s8440_s3 + $0x18] sm:$0xff]  ;;  %v4897_v4 = vld [vmem:[%s8440_s3 + $0x28] sm:$0xff] }
 0x14b   : > { %6047 = vmatprep.mubr.msk.bf16.mxu0 %vm710_vm3, %v5558_v46  ;;  %v2457_v46 = vor.u32 %v2456_v21, %v2452_v38  ;;  %v5545_v35 = vrot.slane %v5529_v50, 9  ;;  %v2429_v54 = vsel %vm6602_vm4, %v2424_v47, %v8255_v11  ;;  %v2439_v7 = vsel %vm6602_vm4, %v2434_v15, %v2438_v25  ;;  %v4896_v56 = vld [vmem:[%s8440_s3 + $0x20] sm:$0xff]  ;;  %v4898_v21 = vld [vmem:[%s8440_s3 + $0x30] sm:$0xff]  ;;  %v4899_v47 = vld [vmem:[%s8440_s3 + $0x38] sm:$0xff] }
 0x14c   : > { %v4479_v45 = vrot.slane %v4477_v41, 4  ;;  %v4480_v51 = vrot.slane %v8508_v17, 5  ;;  %v5285_v58 = vcombine.low %v2405_v22, %v2415_v18  ;;  %v4471_v43 = vsel %vm6889_vm7, %v5544_v1, %v4470_v40  ;;  %v4900_v25 = vld [vmem:[%s8440_s3 + $0x40] sm:$0xff]  ;;  %v4901_v50 = vld [vmem:[%s8440_s3 + $0x48] sm:$0xff] }
 0x14d   : > { %v4474_v8 = vsel %vm6889_vm7, %v4472_v59, %v4473_v2  ;;  %v4484_v6 = vrot.slane %v8509_v49, 5  ;;  %v5286_v11 = vcombine.low %v2429_v54, %v2439_v7  ;;  %v2448_v26 = vrot.slane %v2447_v55, 4  ;;  %v8512_v22 = vld [vmem:[#allocation14_spill] sm:$0xff]  ;;  %v8513_v39 = vld [vmem:[#allocation15_spill] sm:$0xff] }
 0x14e   : > { %5912 = vmatmul.mubr.msk.bf16.gmra.mrb[8].mxu1 %vm710_vm3, %v5283_v3  ;;  %v2458_v23 = vrot.slane %v2457_v46, 4  ;;  %v2462_v34 = vrot.slane %v2460_v33, 5  ;;  %v4478_v48 = vsel %vm6889_vm7, %v5545_v35, %v4477_v41  ;;  %v4481_v61 = vsel %vm6889_vm7, %v4479_v45, %v4480_v51  ;;  %v8514_v46 = vld [vmem:[#allocation17_spill] sm:$0xff]  ;;  %v4902_v33 = vld [vmem:[%s8440_s3 + $0x50] sm:$0xff]  ;;  %v4904_v7 = vld [vmem:[%s8440_s3 + $0x60] sm:$0xff] }
 0x14f   : > { %5915 = vmatprep.mubr.msk.bf16.mxu1 %vm710_vm3, %v5284_v16  ;;  %v5561_v28 = vcombine.low %v4471_v43, %v4474_v8  ;;  %v5546_v20 = vrot.slane %v5530_v12, 9  ;;  %v4486_v3 = vrot.slane %v4484_v6, 4  ;;  %v2453_v19 = vsel %vm6602_vm4, %v2448_v26, %v2452_v38  ;;  %v4893_v16 = vld [vmem:[%s8440_s3 + $0x8] sm:$0xff]  ;;  %v4903_v35 = vld [vmem:[%s8440_s3 + $0x58] sm:$0xff]  ;;  %v4906_v51 = vld [vmem:[%s8440_s3 + $0x70] sm:$0xff] }
 0x150   : > { %v2463_v52 = vsel %vm6602_vm4, %v2458_v23, %v2462_v34  ;;  %v5562_v10 = vcombine.low %v4478_v48, %v4481_v61  ;;  %v4487_v27 = vrot.slane %v8510_v60, 5  ;;  %v6514_v57 = vmov 0.0|0.0   ;;  %v4905_v45 = vld [vmem:[%s8440_s3 + $0x68] sm:$0xff]  ;;  %v8515_v60 = vld [vmem:[#allocation18_spill] sm:$0xff] }
 0x151   : > { %v5287_v14 = vcombine.low %v2453_v19, %v2463_v52  ;;  %v4485_v63 = vsel %vm6889_vm7, %v5546_v20, %v4484_v6  ;;  %6094 = vmatprep.subr.bf16.mxu1 %v6514_v57  ;;  %v6095_v24 = vpack.c.bf16 %v4893_v16, %v4892_v29  ;;  %v6098_v53 = vpack.c.bf16 %v4895_v5, %v4894_v30 }
 0x152   : > { %6048 = vmatmul.mubr.msk.bf16.gmra.mrb[32].mxu0 %vm710_vm3, %v5559_v9  ;;  %v4488_v32 = vsel %vm6889_vm7, %v4486_v3, %v4487_v27  ;;  %v6101_v38 = vpack.c.bf16 %v4897_v4, %v4896_v56  ;;  %v6104_v15 = vpack.c.bf16 %v4899_v47, %v4898_v21  ;;  %v6107_v0 = vpack.c.bf16 %v4901_v50, %v4900_v25  ;;  %v8511_v9 = vld [vmem:[#allocation12_spill] sm:$0xff] }
 0x153   : > { %6051 = vmatprep.mubr.msk.bf16.mxu0 %vm710_vm3, %v5560_v13  ;;  %v5563_v40 = vcombine.low %v4485_v63, %v4488_v32  ;;  %6096 = vmatpush3.bf16.msra.mxu1 %v6095_v24  ;;  %v6110_v54 = vpack.c.bf16 %v4903_v35, %v4902_v33  ;;  %v6113_v17 = vpack.c.bf16 %v4905_v45, %v4904_v7  ;;  %v6516_v8 = vmov 0.0   ;;  %v8517_v33 = vld [vmem:[#allocation3_spill] sm:$0xff] }
 0x154   : > { %6097 = vmatprep.subr.bf16.mxu1 %v6514_v57 }
 0x156   : > { %5916 = vmatmul.mubr.msk.bf16.gmra.mrb[12].mxu1 %vm710_vm3, %v5285_v58  ;;  %v4907_v58 = vld [vmem:[%s8440_s3 + $0x78] sm:$0xff] }
 0x157   : > { %5919 = vmatprep.mubr.msk.bf16.mxu1 %vm710_vm3, %v5286_v11  ;;  %6099 = vmatpush3.bf16.msra.mxu1 %v6098_v53  ;;  %v6116_v43 = vpack.c.bf16 %v4907_v58, %v4906_v51  ;;  %v8385_v11 = vld [vmem:[%s8439_s2] ss:$0 sm:$0xff] }
 0x158   : > { %6100 = vmatprep.subr.bf16.mxu1 %v6514_v57 }
 0x15a   : > { %6052 = vmatmul.mubr.msk.bf16.gmra.mrb[36].mxu0 %vm710_vm3, %v5561_v28 }
 0x15b   : > { %6055 = vmatprep.mubr.msk.bf16.mxu0 %vm710_vm3, %v5562_v10  ;;  %6102 = vmatpush3.bf16.msra.mxu1 %v6101_v38 }
 0x15c   : > { %6103 = vmatprep.subr.bf16.mxu1 %v6514_v57 }
 0x15e   : > { %5920 = vmatmul.mubr.msk.bf16.gmra.mrb[16].mxu1 %vm710_vm3, %v5287_v14 }
 0x15f   : > { %6105 = vmatpush3.bf16.msra.mxu1 %v6104_v15  ;;  %6091 = vmatprep.mubr.msk.f32.mxu1 %vm6515_vm8, %v6516_v8 }
 0x160   : > { %6106 = vmatprep.subr.bf16.mxu1 %v6514_v57 }
 0x162   : > { %6056 = vmatmul.mubr.msk.bf16.gmra.mrb[40].mxu0 %vm710_vm3, %v5563_v40 }
 0x163   : > { %6108 = vmatpush3.bf16.msra.mxu1 %v6107_v0 }
 0x164   : > { %6109 = vmatprep.subr.bf16.mxu1 %v6514_v57 }
 0x167   : > { %6111 = vmatpush3.bf16.msra.mxu1 %v6110_v54 }
 0x168   : > { %6112 = vmatprep.subr.bf16.mxu1 %v6514_v57 }
 0x16b   : > { %6114 = vmatpush3.bf16.msra.mxu1 %v6113_v17 }
 0x16c   : > { %6115 = vmatprep.subr.bf16.mxu1 %v6514_v57 }
 0x16f   : > { %6117 = vmatpush3.bf16.msra.mxu1 %v6116_v43 }
 0x1c1   : > { %v5859_v41 = vpop.f32.mrb[20].mxu1 }
 0x1c2   : > { %v6122_v1 = vadd.f32 %v5859_v41, %v8511_v9  ;;  %v1873_v59 = vpop.f32.mrb[21].mxu1 }
 0x1c3   : > { %v6124_v18 = vadd.f32 %v1873_v59, %v8512_v22  ;;  %v5860_v13 = vpop.f32.mrb[22].mxu1 }
 0x1c4   : > { %v6126_v2 = vadd.f32 %v5860_v13, %v8513_v39  ;;  %v1876_v55 = vpop.f32.mrb[23].mxu1  ;;  %v8516_v13 = vld [vmem:[#allocation2_spill] sm:$0xff] }
 0x1c5   : > { %v6128_v44 = vadd.f32 %v1876_v55, %v8514_v46 }
 0x1fd   : > { %v6029_v49 = vpop.f32.mrb[12].mxu0 }
 0x1fe   : > { %v6123_v6 = vadd.f32 %v6122_v1, %v6029_v49  ;;  %v4624_v26 = vpop.f32.mrb[13].mxu0 }
 0x1ff   : > { %v6125_v23 = vadd.f32 %v6124_v18, %v4624_v26  ;;  %v6030_v34 = vpop.f32.mrb[14].mxu0 }
 0x200   : > { %v6127_v12 = vadd.f32 %v6126_v2, %v6030_v34  ;;  %v4627_v48 = vpop.f32.mrb[15].mxu0  ;;  %v4792_v52 = vadd.f32 %v6123_v6, %v8385_v11 }
 0x201   : > { %v4790_v61 = vadd.f32 %v6125_v23, %v8385_v11  ;;  %v6129_v28 = vadd.f32 %v6128_v44, %v4627_v48  ;;  %v5897_v20 = vpop.f32.mrb[24].mxu1 }
 0x202   : > { %v6130_v3 = vadd.f32 %v5897_v20, %v7904_v31  ;;  %v2615_v19 = vpop.f32.mrb[25].mxu1  ;;  %v4793_v29 = vadd.f32 %v6127_v12, %v8385_v11  ;;  %v4824_v5 = vmax.f32 %v4792_v52, 0.0 }
 0x203   : > { %v4791_v10 = vadd.f32 %v6129_v28, %v8385_v11  ;;  %v6132_v27 = vadd.f32 %v2615_v19, %v8515_v60  ;;  %v5898_v14 = vpop.f32.mrb[26].mxu1  ;;  %v4822_v40 = vmax.f32 %v4790_v61, 0.0 }
 0x204   : > { %v6134_v63 = vadd.f32 %v5898_v14, %v7917_v42  ;;  %v2618_v32 = vpop.f32.mrb[27].mxu1  ;;  %v4825_v47 = vmax.f32 %v4793_v29, 0.0 }
 0x205   : > { %v4823_v16 = vmax.f32 %v4791_v10, 0.0  ;;  %v6136_v57 = vadd.f32 %v2618_v32, %v7929_v62  ;;  %v6033_v24 = vpop.f32.mrb[16].mxu0 }
 0x206   : > { %v6131_v30 = vadd.f32 %v6130_v3, %v6033_v24  ;;  %v4640_v31 = vpop.f32.mrb[17].mxu0 }
 0x207   : > { %v4854_v53 = vadd.f32 %v4823_v16, %v4822_v40  ;;  %v6133_v56 = vadd.f32 %v6132_v27, %v4640_v31  ;;  %v6034_v4 = vpop.f32.mrb[18].mxu0 }
 0x208   : > { %v6135_v38 = vadd.f32 %v6134_v63, %v6034_v4  ;;  %v4643_v21 = vpop.f32.mrb[19].mxu0  ;;  %v4796_v0 = vadd.f32 %v6131_v30, %v8385_v11 }
 0x209   : > { %v4855_v15 = vadd.f32 %v4854_v53, %v4824_v5  ;;  %v4794_v42 = vadd.f32 %v6133_v56, %v8385_v11  ;;  %v6137_v25 = vadd.f32 %v6136_v57, %v4643_v21  ;;  %v5901_v50 = vpop.f32.mrb[28].mxu1 }
 0x20a   : > { %v6138_v41 = vadd.f32 %v5901_v50, %v8030_v36  ;;  %v2631_v62 = vpop.f32.mrb[29].mxu1  ;;  %v4797_v46 = vadd.f32 %v6135_v38, %v8385_v11  ;;  %v4828_v45 = vmax.f32 %v4796_v0, 0.0 }
 0x20b   : > { %v4826_v9 = vmax.f32 %v4794_v42, 0.0  ;;  %v4856_v1 = vadd.f32 %v4855_v15, %v4825_v47  ;;  %v4795_v59 = vadd.f32 %v6137_v25, %v8385_v11  ;;  %v6140_v22 = vadd.f32 %v2631_v62, %v8036_v37  ;;  %v5902_v18 = vpop.f32.mrb[30].mxu1 }
 0x20c   : > { %v6142_v39 = vadd.f32 %v5902_v18, %v8516_v13  ;;  %v2634_v2 = vpop.f32.mrb[31].mxu1  ;;  %v4829_v37 = vmax.f32 %v4797_v46, 0.0 }
 0x20d   : > { %v4857_v55 = vadd.f32 %v4856_v1, %v4826_v9  ;;  %v4827_v44 = vmax.f32 %v4795_v59, 0.0  ;;  %v6144_v35 = vadd.f32 %v2634_v2, %v8517_v33  ;;  %v6037_v54 = vpop.f32.mrb[20].mxu0 }
 0x20e   : > { %v6139_v7 = vadd.f32 %v6138_v41, %v6037_v54  ;;  %v4656_v36 = vpop.f32.mrb[21].mxu0 }
 0x20f   : > { %v4858_v17 = vadd.f32 %v4857_v55, %v4827_v44  ;;  %v6141_v51 = vadd.f32 %v6140_v22, %v4656_v36  ;;  %v6038_v58 = vpop.f32.mrb[22].mxu0 }
 0x210   : > { %v6143_v43 = vadd.f32 %v6142_v39, %v6038_v58  ;;  %v4659_v8 = vpop.f32.mrb[23].mxu0  ;;  %v4800_v12 = vadd.f32 %v6139_v7, %v8385_v11 }
 0x211   : > { %v4859_v49 = vadd.f32 %v4858_v17, %v4828_v45  ;;  %v4798_v6 = vadd.f32 %v6141_v51, %v8385_v11  ;;  %v6145_v26 = vadd.f32 %v6144_v35, %v4659_v8  ;;  %v5905_v23 = vpop.f32.mrb[0].mxu1 }
 0x212   : > { %v2647_v34 = vpop.f32.mrb[1].mxu1  ;;  %v4801_v52 = vadd.f32 %v6143_v43, %v8385_v11  ;;  %v4832_v63 = vmax.f32 %v4800_v12, 0.0 }
 0x213   : > { %v4830_v48 = vmax.f32 %v4798_v6, 0.0  ;;  %v4860_v61 = vadd.f32 %v4859_v49, %v4829_v37  ;;  %v4799_v28 = vadd.f32 %v6145_v26, %v8385_v11  ;;  %v5906_v20 = vpop.f32.mrb[2].mxu1 }
 0x214   : > { %v2650_v3 = vpop.f32.mrb[3].mxu1  ;;  %v4833_v24 = vmax.f32 %v4801_v52, 0.0 }
 0x215   : > { %v4861_v19 = vadd.f32 %v4860_v61, %v4830_v48  ;;  %v4831_v10 = vmax.f32 %v4799_v28, 0.0  ;;  %v6041_v60 = vpop.f32.mrb[24].mxu0 }
 0x216   : > { %v6146_v27 = vadd.f32 %v6041_v60, %v5905_v23  ;;  %v4672_v14 = vpop.f32.mrb[25].mxu0 }
 0x217   : > { %v4862_v32 = vadd.f32 %v4861_v19, %v4831_v10  ;;  %v6147_v40 = vadd.f32 %v4672_v14, %v2647_v34  ;;  %v6042_v29 = vpop.f32.mrb[26].mxu0 }
 0x218   : > { %v6148_v16 = vadd.f32 %v6042_v29, %v5906_v20  ;;  %v4675_v57 = vpop.f32.mrb[27].mxu0  ;;  %v4804_v4 = vadd.f32 %v6146_v27, %v8385_v11 }
 0x219   : > { %v4863_v30 = vadd.f32 %v4862_v32, %v4832_v63  ;;  %v4802_v31 = vadd.f32 %v6147_v40, %v8385_v11  ;;  %v6149_v5 = vadd.f32 %v4675_v57, %v2650_v3  ;;  %v5909_v53 = vpop.f32.mrb[4].mxu1 }
 0x21a   : > { %v2663_v56 = vpop.f32.mrb[5].mxu1  ;;  %v4805_v50 = vadd.f32 %v6148_v16, %v8385_v11  ;;  %v4836_v1 = vmax.f32 %v4804_v4, 0.0 }
 0x21b   : > { %v4834_v38 = vmax.f32 %v4802_v31, 0.0  ;;  %v4864_v21 = vadd.f32 %v4863_v30, %v4833_v24  ;;  %v4803_v47 = vadd.f32 %v6149_v5, %v8385_v11  ;;  %v5910_v15 = vpop.f32.mrb[6].mxu1 }
 0x21c   : > { %v2666_v42 = vpop.f32.mrb[7].mxu1  ;;  %v4837_v2 = vmax.f32 %v4805_v50, 0.0 }
 0x21d   : > { %v4865_v25 = vadd.f32 %v4864_v21, %v4834_v38  ;;  %v4835_v0 = vmax.f32 %v4803_v47, 0.0  ;;  %v6045_v41 = vpop.f32.mrb[28].mxu0 }
 0x21e   : > { %v6150_v62 = vadd.f32 %v6045_v41, %v5909_v53  ;;  %v4688_v9 = vpop.f32.mrb[29].mxu0 }
 0x21f   : > { %v4866_v59 = vadd.f32 %v4865_v25, %v4835_v0  ;;  %v6151_v22 = vadd.f32 %v4688_v9, %v2663_v56  ;;  %v6046_v18 = vpop.f32.mrb[30].mxu0 }
 0x220   : > { %v6152_v13 = vadd.f32 %v6046_v18, %v5910_v15  ;;  %v4691_v39 = vpop.f32.mrb[31].mxu0  ;;  %v4808_v54 = vadd.f32 %v6150_v62, %v8385_v11 }
 0x221   : > { %v4867_v55 = vadd.f32 %v4866_v59, %v4836_v1  ;;  %v4806_v46 = vadd.f32 %v6151_v22, %v8385_v11  ;;  %v6153_v44 = vadd.f32 %v4691_v39, %v2666_v42  ;;  %v5913_v33 = vpop.f32.mrb[8].mxu1 }
 0x222   : > { %v2679_v35 = vpop.f32.mrb[9].mxu1  ;;  %v4809_v43 = vadd.f32 %v6152_v13, %v8385_v11  ;;  %v4840_v26 = vmax.f32 %v4808_v54, 0.0 }
 0x223   : > { %v4838_v7 = vmax.f32 %v4806_v46, 0.0  ;;  %v4868_v36 = vadd.f32 %v4867_v55, %v4837_v2  ;;  %v4807_v45 = vadd.f32 %v6153_v44, %v8385_v11  ;;  %v5914_v17 = vpop.f32.mrb[10].mxu1 }
 0x224   : > { %v2682_v51 = vpop.f32.mrb[11].mxu1  ;;  %v4841_v28 = vmax.f32 %v4809_v43, 0.0 }
 0x225   : > { %v4869_v58 = vadd.f32 %v4868_v36, %v4838_v7  ;;  %v4839_v8 = vmax.f32 %v4807_v45, 0.0  ;;  %v6049_v37 = vpop.f32.mrb[32].mxu0 }
 0x226   : > { %v6154_v49 = vadd.f32 %v6049_v37, %v5913_v33  ;;  %v4704_v6 = vpop.f32.mrb[33].mxu0 }
 0x227   : > { %v4870_v23 = vadd.f32 %v4869_v58, %v4839_v8  ;;  %v6155_v34 = vadd.f32 %v4704_v6, %v2679_v35  ;;  %v6050_v12 = vpop.f32.mrb[34].mxu0 }
 0x228   : > { %v6156_v48 = vadd.f32 %v6050_v12, %v5914_v17  ;;  %v4707_v61 = vpop.f32.mrb[35].mxu0  ;;  %v4812_v60 = vadd.f32 %v6154_v49, %v8385_v11 }
 0x229   : > { %v4871_v20 = vadd.f32 %v4870_v23, %v4840_v26  ;;  %v4810_v3 = vadd.f32 %v6155_v34, %v8385_v11  ;;  %v6157_v19 = vadd.f32 %v4707_v61, %v2682_v51  ;;  %v5917_v52 = vpop.f32.mrb[12].mxu1 }
 0x22a   : > { %v2695_v10 = vpop.f32.mrb[13].mxu1  ;;  %v4813_v16 = vadd.f32 %v6156_v48, %v8385_v11  ;;  %v4844_v5 = vmax.f32 %v4812_v60, 0.0 }
 0x22b   : > { %v4842_v27 = vmax.f32 %v4810_v3, 0.0  ;;  %v4872_v14 = vadd.f32 %v4871_v20, %v4841_v28  ;;  %v4811_v63 = vadd.f32 %v6157_v19, %v8385_v11  ;;  %v5918_v32 = vpop.f32.mrb[14].mxu1 }
 0x22c   : > { %v2698_v40 = vpop.f32.mrb[15].mxu1  ;;  %v4845_v47 = vmax.f32 %v4813_v16, 0.0 }
 0x22d   : > { %v4873_v29 = vadd.f32 %v4872_v14, %v4842_v27  ;;  %v4843_v57 = vmax.f32 %v4811_v63, 0.0  ;;  %v6053_v24 = vpop.f32.mrb[36].mxu0  ;;  %v4979_v14 = vlaneseq }
 0x22e   : > { %v6158_v30 = vadd.f32 %v6053_v24, %v5917_v52  ;;  %v4720_v31 = vpop.f32.mrb[37].mxu0 }
 0x22f   : > { %v4874_v53 = vadd.f32 %v4873_v29, %v4843_v57  ;;  %v6159_v56 = vadd.f32 %v4720_v31, %v2695_v10  ;;  %v6054_v4 = vpop.f32.mrb[38].mxu0  ;;  %v4980_v63 = vshrl.u32 %v4979_v14, 7 }
 0x230   : > { %v6160_v38 = vadd.f32 %v6054_v4, %v5918_v32  ;;  %v4723_v21 = vpop.f32.mrb[39].mxu0  ;;  %v4816_v41 = vadd.f32 %v6158_v30, %v8385_v11 }
 0x231   : > { %v4875_v15 = vadd.f32 %v4874_v53, %v4844_v5  ;;  %v4814_v42 = vadd.f32 %v6159_v56, %v8385_v11  ;;  %v6161_v25 = vadd.f32 %v4723_v21, %v2698_v40  ;;  %v5921_v50 = vpop.f32.mrb[16].mxu1  ;;  %v4981_v32 = vsub.s32 0, %v4980_v63 }
 0x232   : > { %v2711_v0 = vpop.f32.mrb[17].mxu1  ;;  %v4817_v13 = vadd.f32 %v6160_v38, %v8385_v11  ;;  %v4848_v44 = vmax.f32 %v4816_v41, 0.0 }
 0x233   : > { %v4846_v62 = vmax.f32 %v4814_v42, 0.0  ;;  %v4876_v9 = vadd.f32 %v4875_v15, %v4845_v47  ;;  %v4815_v1 = vadd.f32 %v6161_v25, %v8385_v11  ;;  %v5922_v59 = vpop.f32.mrb[18].mxu1 }
 0x234   : > { %v2714_v22 = vpop.f32.mrb[19].mxu1  ;;  %v4849_v45 = vmax.f32 %v4817_v13, 0.0 }
 0x235   : > { %v4877_v18 = vadd.f32 %v4876_v9, %v4846_v62  ;;  %v4847_v39 = vmax.f32 %v4815_v1, 0.0  ;;  %v6057_v2 = vpop.f32.mrb[40].mxu0 }
 0x236   : > { %v6162_v55 = vadd.f32 %v6057_v2, %v5921_v50  ;;  %v4736_v46 = vpop.f32.mrb[41].mxu0 }
 0x237   : > { %v4878_v33 = vadd.f32 %v4877_v18, %v4847_v39  ;;  %v6163_v35 = vadd.f32 %v4736_v46, %v2711_v0  ;;  %v6058_v54 = vpop.f32.mrb[42].mxu0 }
 0x238   : > { %v6164_v7 = vadd.f32 %v6058_v54, %v5922_v59  ;;  %v4739_v36 = vpop.f32.mrb[43].mxu0  ;;  %v4820_v43 = vadd.f32 %v6162_v55, %v8385_v11 }
 0x239   : > { %v4879_v17 = vadd.f32 %v4878_v33, %v4848_v44  ;;  %v4818_v51 = vadd.f32 %v6163_v35, %v8385_v11  ;;  %v6165_v58 = vadd.f32 %v4739_v36, %v2714_v22 }
 0x23a   : > { %v4821_v26 = vadd.f32 %v6164_v7, %v8385_v11  ;;  %v4852_v34 = vmax.f32 %v4820_v43, 0.0 }
 0x23b   : > { %v4850_v8 = vmax.f32 %v4818_v51, 0.0  ;;  %v4880_v37 = vadd.f32 %v4879_v17, %v4849_v45  ;;  %v4819_v49 = vadd.f32 %v6165_v58, %v8385_v11  ;;  %v4908_v11 = vld [vmem:[%s8441_s4] sm:$0x1] }
 0x23c   : > { %v4853_v48 = vmax.f32 %v4821_v26, 0.0 }
 0x23d   : > { %v4881_v6 = vadd.f32 %v4880_v37, %v4850_v8  ;;  %v4851_v23 = vmax.f32 %v4819_v49, 0.0 }
 0x23f   : > { %v4882_v12 = vadd.f32 %v4881_v6, %v4851_v23 }
 0x241   : > { %v4883_v61 = vadd.f32 %v4882_v12, %v4852_v34 }
 0x243   : > { %v4884_v28 = vadd.f32 %v4883_v61, %v4853_v48 }
 0x245   : > { %v4885_v20 = vrot.slane %v4884_v28, 4 }
 0x247   : > { %v4886_v3 = vadd.f32 %v4885_v20, %v4884_v28 }
 0x249   : > { %v4887_v19 = vrot.slane %v4886_v3, 2 }
 0x24b   : > { %v4888_v52 = vadd.f32 %v4887_v19, %v4886_v3 }
 0x24d   : > { %v4889_v10 = vrot.slane %v4888_v52, 1 }
 0x24f   : > { %v4890_v60 = vadd.f32 %v4889_v10, %v4888_v52 }
 0x251   : > { %v4891_v27 = vmul.f32 0.00390625, %v4890_v60 }
 0x253   : > { %6092 = vmatmul.mubr.f32.vlgmr.msra.gmra.mrb[32].mxu1 %v4891_v27 }
 0x326   : > { %v4975_v40 = vpop.f32.mrb[32].mxu1 }
 0x327   : > { %v4976_v29 = vadd.f32 %v4975_v40, %v4908_v11  ;;  %v6093_v16 = vpop.f32.mrb[33].mxu1 }
 0x329   : > { %v4982_v57 = vrot.slane %v4976_v29, %v4981_v32 }
 0x32b   : > { %4983 = vst [vmem:[%s222_s12] sm:$0xff] %v4982_v57 }
 0x32c PF: > { %s15_s18 = sadd.s32 1, %s6512_s18  }
 0x32d   : > { %p12_p4 = scmp.ge.s32.totalorder %s15_s18, 4  }
 0x32f   :  { %14 = sbr.rel (!%p12_p4) target bundleno = 1 (0x1), region = 80 }

</bundles_post_ra>
